<compile_context>
chip_gen: v5e
topology: v5e:2x2
jax: 0.10.0
libtpu: 0.0.40
codegen_flags: <defaults>
</compile_context>

<pallas_src>
import functools

import jax
import jax.numpy as jnp
from jax.experimental import pallas as pl
from jax.experimental.pallas import tpu as pltpu

LN_EPS = 1e-5


def _layer_norm(x, w, b):
    # x: (rows, D) f32, w/b: (1, D) f32
    mean = jnp.mean(x, axis=-1, keepdims=True)
    var = jnp.mean((x - mean) ** 2, axis=-1, keepdims=True)
    return (x - mean) * jax.lax.rsqrt(var + LN_EPS) * w + b


def _residual_block_kernel(
    xf_ref,                  # (1, S, D) f32 : full sequence for batch b
    ln1_w_ref, ln1_b_ref,    # (1, D) f32
    wq_ref, bq_ref,          # (D, D) bf16, (1, D) f32
    wk_ref, bk_ref,
    wv_ref, bv_ref,
    wo_ref, bo_ref,
    ln2_w_ref, ln2_b_ref,    # (1, D) f32
    wfc_ref, bfc_ref,        # (D, Dff) bf16, (1, Dff) f32
    wproj_ref, bproj_ref,    # (Dff, D) bf16, (1, D) f32
    o_ref,                   # (1, TQ, D) f32
    xn1_s,                   # (S, D) bf16 scratch: cached LN1(x)
    k_s,                     # (S, D) bf16 scratch: cached K
    v_s,                     # (S, D) bf16 scratch: cached V
    ctx_s,                   # (TQ, D) f32 scratch: attention context (per-head writes)
    *, n_head: int, gelu_approximate: bool,
):
    f32 = jnp.float32
    bf16 = jnp.bfloat16

    qi = pl.program_id(1)
    tq = o_ref.shape[1]
    d = o_ref.shape[2]
    hd = d // n_head
    scale = 1.0 / float(hd) ** 0.5

    # ---- per-batch cached work: LN1 over the full sequence + K/V projections (qi == 0) ----
    @pl.when(qi == 0)
    def _():
        xn1 = _layer_norm(xf_ref[0], ln1_w_ref[...], ln1_b_ref[...]).astype(bf16)  # (S, D)
        xn1_s[...] = xn1
        k_s[...] = (jnp.dot(xn1, wk_ref[...], preferred_element_type=f32)
                    + bk_ref[...]).astype(bf16)
        v_s[...] = (jnp.dot(xn1, wv_ref[...], preferred_element_type=f32)
                    + bv_ref[...]).astype(bf16)

    # ---- query rows of this tile (sliced from the full-seq buffer / cached LN scratch) ----
    row0 = pl.multiple_of(qi * tq, tq)
    xq = xf_ref[0, pl.ds(row0, tq), :]               # (TQ, D) f32 raw rows (residual path)
    xnq = xn1_s[pl.ds(row0, tq), :]                  # (TQ, D) bf16 LN1'd rows

    q = jnp.dot(xnq, wq_ref[...], preferred_element_type=f32) + bq_ref[...]      # (TQ, D)
    q = (q * scale).astype(bf16)

    kf = k_s[...]                                    # (S, D) bf16 (cached)
    vf = v_s[...]                                    # (S, D) bf16 (cached)

    # ---- per-head attention, lane-sliced (no transposes / no lane-axis concat) ----
    for h in range(n_head):
        lo, hi = h * hd, (h + 1) * hd
        qh = q[:, lo:hi]                             # (TQ, hd) bf16
        kh = kf[:, lo:hi]                            # (S,  hd) bf16
        vh = vf[:, lo:hi]                            # (S,  hd) bf16
        # scores = qh @ kh^T on the MXU (contract last dims of both operands).
        sc = jax.lax.dot_general(qh, kh, (((1,), (1,)), ((), ())),
                                 preferred_element_type=f32)                     # (TQ, S)
        sc = sc - jnp.max(sc, axis=-1, keepdims=True)
        p = jnp.exp(sc)
        p = p * pl.reciprocal(jnp.sum(p, axis=-1, keepdims=True), approx=True)
        ctx_s[:, lo:hi] = jnp.dot(p.astype(bf16), vh, preferred_element_type=f32)

    attn = jnp.dot(ctx_s[...].astype(bf16), wo_ref[...],
                   preferred_element_type=f32) + bo_ref[...]                     # (TQ, D)

    # ---- residual 1 ----
    x1 = xq + attn

    # ---- LN2 + MLP ----
    xn2 = _layer_norm(x1, ln2_w_ref[...], ln2_b_ref[...]).astype(bf16)
    h1 = jnp.dot(xn2, wfc_ref[...], preferred_element_type=f32) + bfc_ref[...]   # (TQ, Dff)
    # nn.GELU default is exact erf; tanh variant available (EUP slot) via gelu_approximate.
    h1 = jax.nn.gelu(h1, approximate=gelu_approximate).astype(bf16)
    h2 = jnp.dot(h1, wproj_ref[...], preferred_element_type=f32) + bproj_ref[...]

    # ---- residual 2 ----
    o_ref[0] = x1 + h2


def pack_params(p):
    """Host-side repack: split QKV, transpose weights into x@W orientation, cast to bf16."""
    bf16 = jnp.bfloat16
    wq, wk, wv = jnp.split(p["in_proj_w"], 3, axis=0)     # (D, D) each (PyTorch row layout)
    bq, bk, bv = jnp.split(p["in_proj_b"], 3, axis=-1)    # (1, D) each
    return dict(
        ln1_w=p["ln1_w"], ln1_b=p["ln1_b"],
        w_q=wq.T.astype(bf16), b_q=bq,
        w_k=wk.T.astype(bf16), b_k=bk,
        w_v=wv.T.astype(bf16), b_v=bv,
        w_o=p["out_w"].T.astype(bf16), b_o=p["out_b"],
        ln2_w=p["ln2_w"], ln2_b=p["ln2_b"],
        w_fc=p["fc_w"].T.astype(bf16), b_fc=p["fc_b"],
        w_proj=p["proj_w"].T.astype(bf16), b_proj=p["proj_b"],
    )


def _vmem_capacity_bytes():
    try:
        return int(pltpu.get_tpu_info().vmem_capacity_bytes)
    except Exception:
        return 64 * 1024 * 1024   # conservative (v7x-sized) fallback


def _pick_q_tile(seq_len, preferred):
    for t in (preferred, 512, 256, 128, 64, 32, 16, 8):
        if t <= seq_len and seq_len % t == 0:
            return t
    return seq_len


def residual_attention_block(x_lne, torch_params, n_head, *, q_tile=None,
                             gelu_approximate=False, single_buffer_weights=True):
    """x_lne: (L, N, E) float32 — same layout as PyTorch nn.MultiheadAttention."""
    L, N, E = x_lne.shape
    assert E % n_head == 0
    pp = pack_params(torch_params)
    d_ff = pp["w_fc"].shape[1]

    vmem_cap = _vmem_capacity_bytes()
    if q_tile is None:
        # Bigger tiles on 128 MiB parts (v5e/v6e); smaller with headroom on 64 MiB v7x.
        q_tile = 512 if vmem_cap >= 96 * 1024 * 1024 else 128
    tq = _pick_q_tile(L, q_tile)

    x_nle = jnp.transpose(x_lne, (1, 0, 2)).astype(jnp.float32)   # (N, L, E)

    pipeline_mode = pl.Buffered(1) if single_buffer_weights else None

    def const_spec(arr):
        nd = arr.ndim
        return pl.BlockSpec(arr.shape, lambda b, qi: (0,) * nd, pipeline_mode=pipeline_mode)

    kernel = functools.partial(_residual_block_kernel, n_head=n_head,
                               gelu_approximate=gelu_approximate)

    # Advisory cost estimate (QKV + attention + out-proj + MLP matmuls).
    flops = 2 * N * L * (4 * E * E + 2 * L * E + 2 * E * d_ff)
    transcendentals = N * (n_head * L * L + L * d_ff)
    weight_bytes = sum(int(pp[k].size) * pp[k].dtype.itemsize for k in pp)
    bytes_accessed = 2 * N * L * E * 4 + weight_bytes
    cost = pl.CostEstimate(flops=int(flops), transcendentals=int(transcendentals),
                           bytes_accessed=int(bytes_accessed))

    out_nle = pl.pallas_call(
        kernel,
        out_shape=jax.ShapeDtypeStruct((N, L, E), jnp.float32),
        grid=(N, L // tq),
        in_specs=[
            # Full sequence for batch b (K/V cache build at qi==0; query rows sliced per tile).
            pl.BlockSpec((1, L, E), lambda b, qi: (b, 0, 0)),
            const_spec(pp["ln1_w"]), const_spec(pp["ln1_b"]),
            const_spec(pp["w_q"]), const_spec(pp["b_q"]),
            const_spec(pp["w_k"]), const_spec(pp["b_k"]),
            const_spec(pp["w_v"]), const_spec(pp["b_v"]),
            const_spec(pp["w_o"]), const_spec(pp["b_o"]),
            const_spec(pp["ln2_w"]), const_spec(pp["ln2_b"]),
            const_spec(pp["w_fc"]), const_spec(pp["b_fc"]),
            const_spec(pp["w_proj"]), const_spec(pp["b_proj"]),
        ],
        out_specs=pl.BlockSpec((1, tq, E), lambda b, qi: (b, qi, 0)),
        scratch_shapes=[
            pltpu.VMEM((L, E), jnp.bfloat16),   # cached LN1(x)
            pltpu.VMEM((L, E), jnp.bfloat16),   # cached K
            pltpu.VMEM((L, E), jnp.bfloat16),   # cached V
            pltpu.VMEM((tq, E), jnp.float32),   # attention context (per-head writes)
        ],
        compiler_params=pltpu.CompilerParams(
            # qi axis must be "arbitrary": K/V scratch computed at qi==0 is reused across qi.
            dimension_semantics=("parallel", "arbitrary"),
            vmem_limit_bytes=max(32 * 1024 * 1024, int(vmem_cap * 0.85)),
        ),
        cost_estimate=cost,
    )(
        x_nle,
        pp["ln1_w"], pp["ln1_b"],
        pp["w_q"], pp["b_q"], pp["w_k"], pp["b_k"], pp["w_v"], pp["b_v"],
        pp["w_o"], pp["b_o"],
        pp["ln2_w"], pp["ln2_b"],
        pp["w_fc"], pp["b_fc"], pp["w_proj"], pp["b_proj"],
    )
    return jnp.transpose(out_nle, (1, 0, 2))  # back to (L, N, E)


def residual_attention_block_ref(x_lne, p, n_head):
    """Pure-JAX f32 reference matching the PyTorch module (attn_mask=None, erf GELU)."""
    L, N, E = x_lne.shape
    hd = E // n_head

    def ln(x, w, b):
        m = jnp.mean(x, axis=-1, keepdims=True)
        v = jnp.mean((x - m) ** 2, axis=-1, keepdims=True)
        return (x - m) / jnp.sqrt(v + LN_EPS) * w + b

    xn = ln(x_lne, p["ln1_w"][0], p["ln1_b"][0])
    qkv = xn @ p["in_proj_w"].T + p["in_proj_b"][0]
    q, k, v = jnp.split(qkv, 3, axis=-1)                     # (L, N, E) each

    def heads(t):                                            # -> (N, H, L, hd)
        return jnp.transpose(t.reshape(L, N, n_head, hd), (1, 2, 0, 3))

    qh = heads(q) * (1.0 / jnp.sqrt(hd))
    kh, vh = heads(k), heads(v)
    sc = jnp.einsum("nhqd,nhkd->nhqk", qh, kh)
    pa = jax.nn.softmax(sc, axis=-1)
    ctx = jnp.einsum("nhqk,nhkd->nhqd", pa, vh)
    ctx = jnp.transpose(ctx, (2, 0, 1, 3)).reshape(L, N, E)
    attn_out = ctx @ p["out_w"].T + p["out_b"][0]

    x1 = x_lne + attn_out
    xn2 = ln(x1, p["ln2_w"][0], p["ln2_b"][0])
    h = jax.nn.gelu(xn2 @ p["fc_w"].T + p["fc_b"][0], approximate=False)
    return x1 + h @ p["proj_w"].T + p["proj_b"][0]


def make_params(key, d_model, n_head, mlp_ratio=4.0):
    """Parameters in the original PyTorch layout (in_proj (3D,D) row-stacked, etc.)."""
    mlp_width = int(d_model * mlp_ratio)
    ks = jax.random.split(key, 8)
    s = 0.02
    return {
        "ln1_w": jnp.ones((1, d_model), jnp.float32),
        "ln1_b": jnp.zeros((1, d_model), jnp.float32),
        "in_proj_w": s * jax.random.normal(ks[0], (3 * d_model, d_model), jnp.float32),
        "in_proj_b": s * jax.random.normal(ks[1], (1, 3 * d_model), jnp.float32),
        "out_w": s * jax.random.normal(ks[2], (d_model, d_model), jnp.float32),
        "out_b": s * jax.random.normal(ks[3], (1, d_model), jnp.float32),
        "ln2_w": jnp.ones((1, d_model), jnp.float32),
        "ln2_b": jnp.zeros((1, d_model), jnp.float32),
        "fc_w": s * jax.random.normal(ks[4], (mlp_width, d_model), jnp.float32),
        "fc_b": s * jax.random.normal(ks[5], (1, mlp_width), jnp.float32),
        "proj_w": s * jax.random.normal(ks[6], (d_model, mlp_width), jnp.float32),
        "proj_b": s * jax.random.normal(ks[7], (1, d_model), jnp.float32),
    }


if __name__ == "__main__":
    # Small but layout-friendly shapes: head_dim = 128 (lane-aligned slices), seq multiple of 8.
    seq, batch, d_model, n_head = 16, 2, 256, 2

    key = jax.random.PRNGKey(0)
    kx, kp = jax.random.split(key)
    x = jax.random.normal(kx, (seq, batch, d_model), jnp.float32)  # (L, N, E)
    params = make_params(kp, d_model, n_head)

    try:
        out = residual_attention_block(x, params, n_head)
    except Exception:
        # TODO(synk): fallback for Mosaic builds without exact-erf GELU or Buffered(1) support
        #             (tanh GELU + default double-buffered weights; numerics within test tol).
        out = residual_attention_block(x, params, n_head,
                                       gelu_approximate=True,
                                       single_buffer_weights=False)
    out = jax.block_until_ready(out)

    ref = residual_attention_block_ref(x, params, n_head)
    err = float(jnp.max(jnp.abs(out - ref)))

    assert out.shape == (seq, batch, d_model)
    assert bool(jnp.all(jnp.isfinite(out)))
    # bf16 MXU weights/activations + approx softmax reciprocal => ~1e-3..1e-2 abs deviation.
    assert err < 3e-2, f"max abs error vs f32 reference: {err}"
    print("KERNEL_OK")
</pallas_src>

<mosaic_0001>
module attributes {stable_mosaic.version = 11 : i64} {
  func.func @_residual_block_kernel(%arg0: i32, %arg1: i32, %arg2: memref<1x16x256xf32, #tpu.memory_space<vmem>>, %arg3: memref<1x256xf32, #tpu.memory_space<vmem>>, %arg4: memref<1x256xf32, #tpu.memory_space<vmem>>, %arg5: memref<256x256xbf16, #tpu.memory_space<vmem>>, %arg6: memref<1x256xf32, #tpu.memory_space<vmem>>, %arg7: memref<256x256xbf16, #tpu.memory_space<vmem>>, %arg8: memref<1x256xf32, #tpu.memory_space<vmem>>, %arg9: memref<256x256xbf16, #tpu.memory_space<vmem>>, %arg10: memref<1x256xf32, #tpu.memory_space<vmem>>, %arg11: memref<256x256xbf16, #tpu.memory_space<vmem>>, %arg12: memref<1x256xf32, #tpu.memory_space<vmem>>, %arg13: memref<1x256xf32, #tpu.memory_space<vmem>>, %arg14: memref<1x256xf32, #tpu.memory_space<vmem>>, %arg15: memref<256x1024xbf16, #tpu.memory_space<vmem>>, %arg16: memref<1x1024xf32, #tpu.memory_space<vmem>>, %arg17: memref<1024x256xbf16, #tpu.memory_space<vmem>>, %arg18: memref<1x256xf32, #tpu.memory_space<vmem>>, %arg19: memref<1x16x256xf32, #tpu.memory_space<vmem>>, %arg20: memref<16x256xbf16, #tpu.memory_space<vmem>>, %arg21: memref<16x256xbf16, #tpu.memory_space<vmem>>, %arg22: memref<16x256xbf16, #tpu.memory_space<vmem>>, %arg23: memref<16x256xf32, #tpu.memory_space<vmem>>) attributes {dimension_semantics = [#tpu.dimension_semantics<parallel>, #tpu.dimension_semantics<arbitrary>], iteration_bounds = array<i64: 2, 1>, scalar_prefetch = 0 : i64, scratch_operands = 4 : i64, tpu.core_type = #tpu.core_type<tc>, window_params = [{transform_indices = @transform_0, window_bounds = array<i64: 1, 16, 256>}, {pipeline_mode = #tpu.pipeline_mode<synchronous>, transform_indices = @transform_1, window_bounds = array<i64: 1, 256>}, {pipeline_mode = #tpu.pipeline_mode<synchronous>, transform_indices = @transform_2, window_bounds = array<i64: 1, 256>}, {pipeline_mode = #tpu.pipeline_mode<synchronous>, transform_indices = @transform_3, window_bounds = array<i64: 256, 256>}, {pipeline_mode = #tpu.pipeline_mode<synchronous>, transform_indices = @transform_4, window_bounds = array<i64: 1, 256>}, {pipeline_mode = #tpu.pipeline_mode<synchronous>, transform_indices = @transform_5, window_bounds = array<i64: 256, 256>}, {pipeline_mode = #tpu.pipeline_mode<synchronous>, transform_indices = @transform_6, window_bounds = array<i64: 1, 256>}, {pipeline_mode = #tpu.pipeline_mode<synchronous>, transform_indices = @transform_7, window_bounds = array<i64: 256, 256>}, {pipeline_mode = #tpu.pipeline_mode<synchronous>, transform_indices = @transform_8, window_bounds = array<i64: 1, 256>}, {pipeline_mode = #tpu.pipeline_mode<synchronous>, transform_indices = @transform_9, window_bounds = array<i64: 256, 256>}, {pipeline_mode = #tpu.pipeline_mode<synchronous>, transform_indices = @transform_10, window_bounds = array<i64: 1, 256>}, {pipeline_mode = #tpu.pipeline_mode<synchronous>, transform_indices = @transform_11, window_bounds = array<i64: 1, 256>}, {pipeline_mode = #tpu.pipeline_mode<synchronous>, transform_indices = @transform_12, window_bounds = array<i64: 1, 256>}, {pipeline_mode = #tpu.pipeline_mode<synchronous>, transform_indices = @transform_13, window_bounds = array<i64: 256, 1024>}, {pipeline_mode = #tpu.pipeline_mode<synchronous>, transform_indices = @transform_14, window_bounds = array<i64: 1, 1024>}, {pipeline_mode = #tpu.pipeline_mode<synchronous>, transform_indices = @transform_15, window_bounds = array<i64: 1024, 256>}, {pipeline_mode = #tpu.pipeline_mode<synchronous>, transform_indices = @transform_16, window_bounds = array<i64: 1, 256>}, {transform_indices = @transform_17, window_bounds = array<i64: 1, 16, 256>}]} {
    %c0_i32 = arith.constant 0 : i32
    %0 = arith.cmpi eq, %arg1, %c0_i32 : i32
    %1 = arith.extui %0 : i1 to i32
    %c0_i32_0 = arith.constant 0 : i32
    %2 = arith.cmpi ne, %1, %c0_i32_0 : i32
    scf.if %2 {
      %c0_56 = arith.constant 0 : index
      %c0_57 = arith.constant 0 : index
      %c0_58 = arith.constant 0 : index
      %115 = vector.load %arg2[%c0_56, %c0_57, %c0_58] : memref<1x16x256xf32, #tpu.memory_space<vmem>>, vector<1x16x256xf32>
      %116 = vector.shape_cast %115 : vector<1x16x256xf32> to vector<16x256xf32>
      %c0_59 = arith.constant 0 : index
      %c0_60 = arith.constant 0 : index
      %117 = vector.load %arg3[%c0_59, %c0_60] : memref<1x256xf32, #tpu.memory_space<vmem>>, vector<1x256xf32>
      %c0_61 = arith.constant 0 : index
      %c0_62 = arith.constant 0 : index
      %118 = vector.load %arg4[%c0_61, %c0_62] : memref<1x256xf32, #tpu.memory_space<vmem>>, vector<1x256xf32>
      %cst_63 = arith.constant dense<0.000000e+00> : vector<16xf32>
      %119 = vector.multi_reduction <add>, %116, %cst_63 [1] : vector<16x256xf32> to vector<16xf32>
      %120 = vector.shape_cast %119 : vector<16xf32> to vector<16x1xf32>
      %cst_64 = arith.constant 2.560000e+02 : f32
      %121 = vector.broadcast %cst_64 : f32 to vector<16x1xf32>
      %122 = arith.divf %120, %121 : vector<16x1xf32>
      %123 = vector.broadcast %122 : vector<16x1xf32> to vector<16x256xf32>
      %124 = arith.subf %116, %123 : vector<16x256xf32>
      %125 = arith.mulf %124, %124 : vector<16x256xf32>
      %cst_65 = arith.constant dense<0.000000e+00> : vector<16xf32>
      %126 = vector.multi_reduction <add>, %125, %cst_65 [1] : vector<16x256xf32> to vector<16xf32>
      %127 = vector.shape_cast %126 : vector<16xf32> to vector<16x1xf32>
      %cst_66 = arith.constant 2.560000e+02 : f32
      %128 = vector.broadcast %cst_66 : f32 to vector<16x1xf32>
      %129 = arith.divf %127, %128 : vector<16x1xf32>
      %130 = vector.broadcast %122 : vector<16x1xf32> to vector<16x256xf32>
      %131 = arith.subf %116, %130 : vector<16x256xf32>
      %cst_67 = arith.constant 9.99999974E-6 : f32
      %132 = vector.broadcast %cst_67 : f32 to vector<16x1xf32>
      %133 = arith.addf %129, %132 : vector<16x1xf32>
      %134 = math.rsqrt %133 : vector<16x1xf32>
      %135 = vector.broadcast %134 : vector<16x1xf32> to vector<16x256xf32>
      %136 = arith.mulf %131, %135 : vector<16x256xf32>
      %137 = vector.broadcast %117 : vector<1x256xf32> to vector<16x256xf32>
      %138 = arith.mulf %136, %137 : vector<16x256xf32>
      %139 = vector.broadcast %118 : vector<1x256xf32> to vector<16x256xf32>
      %140 = arith.addf %138, %139 : vector<16x256xf32>
      %141 = arith.truncf %140 : vector<16x256xf32> to vector<16x256xbf16>
      %c0_68 = arith.constant 0 : index
      %c0_69 = arith.constant 0 : index
      %142 = vector.load %arg20[%c0_68, %c0_69] : memref<16x256xbf16, #tpu.memory_space<vmem>>, vector<16x256xbf16>
      tpu.vector_store %arg20[%c0_68, %c0_69], %141 {strides = array<i32>} : memref<16x256xbf16, #tpu.memory_space<vmem>>, vector<16x256xbf16>,
      %c0_70 = arith.constant 0 : index
      %c0_71 = arith.constant 0 : index
      %143 = vector.load %arg7[%c0_70, %c0_71] : memref<256x256xbf16, #tpu.memory_space<vmem>>, vector<256x256xbf16>
      %cst_72 = arith.constant dense<0.000000e+00> : vector<16x256xf32>
      %144 = tpu.matmul %141, %143, %cst_72 {dimension_numbers = #tpu.dot_dimension_numbers<[1], [0], [0], [1], [0, 0, 1, 1], [], []>} : vector<16x256xbf16>, vector<256x256xbf16>, vector<16x256xf32> -> vector<16x256xf32>
      %c0_73 = arith.constant 0 : index
      %c0_74 = arith.constant 0 : index
      %145 = vector.load %arg8[%c0_73, %c0_74] : memref<1x256xf32, #tpu.memory_space<vmem>>, vector<1x256xf32>
      %146 = vector.broadcast %145 : vector<1x256xf32> to vector<16x256xf32>
      %147 = arith.addf %144, %146 : vector<16x256xf32>
      %148 = arith.truncf %147 : vector<16x256xf32> to vector<16x256xbf16>
      %c0_75 = arith.constant 0 : index
      %c0_76 = arith.constant 0 : index
      %149 = vector.load %arg21[%c0_75, %c0_76] : memref<16x256xbf16, #tpu.memory_space<vmem>>, vector<16x256xbf16>
      tpu.vector_store %arg21[%c0_75, %c0_76], %148 {strides = array<i32>} : memref<16x256xbf16, #tpu.memory_space<vmem>>, vector<16x256xbf16>,
      %c0_77 = arith.constant 0 : index
      %c0_78 = arith.constant 0 : index
      %150 = vector.load %arg9[%c0_77, %c0_78] : memref<256x256xbf16, #tpu.memory_space<vmem>>, vector<256x256xbf16>
      %cst_79 = arith.constant dense<0.000000e+00> : vector<16x256xf32>
      %151 = tpu.matmul %141, %150, %cst_79 {dimension_numbers = #tpu.dot_dimension_numbers<[1], [0], [0], [1], [0, 0, 1, 1], [], []>} : vector<16x256xbf16>, vector<256x256xbf16>, vector<16x256xf32> -> vector<16x256xf32>
      %c0_80 = arith.constant 0 : index
      %c0_81 = arith.constant 0 : index
      %152 = vector.load %arg10[%c0_80, %c0_81] : memref<1x256xf32, #tpu.memory_space<vmem>>, vector<1x256xf32>
      %153 = vector.broadcast %152 : vector<1x256xf32> to vector<16x256xf32>
      %154 = arith.addf %151, %153 : vector<16x256xf32>
      %155 = arith.truncf %154 : vector<16x256xf32> to vector<16x256xbf16>
      %c0_82 = arith.constant 0 : index
      %c0_83 = arith.constant 0 : index
      %156 = vector.load %arg22[%c0_82, %c0_83] : memref<16x256xbf16, #tpu.memory_space<vmem>>, vector<16x256xbf16>
      tpu.vector_store %arg22[%c0_82, %c0_83], %155 {strides = array<i32>} : memref<16x256xbf16, #tpu.memory_space<vmem>>, vector<16x256xbf16>,
    } else {
    }
    %c16_i32 = arith.constant 16 : i32
    %3 = arith.muli %arg1, %c16_i32 : i32
    %4 = tpu.assume_multiple %3, 16 : i32
    %c0 = arith.constant 0 : index
    %5 = arith.index_cast %4 : i32 to index
    %c0_1 = arith.constant 0 : index
    %6 = vector.load %arg2[%c0, %5, %c0_1] : memref<1x16x256xf32, #tpu.memory_space<vmem>>, vector<1x16x256xf32>
    %7 = vector.shape_cast %6 : vector<1x16x256xf32> to vector<16x256xf32>
    %8 = arith.index_cast %4 : i32 to index
    %c0_2 = arith.constant 0 : index
    %9 = vector.load %arg20[%8, %c0_2] : memref<16x256xbf16, #tpu.memory_space<vmem>>, vector<16x256xbf16>
    %c0_3 = arith.constant 0 : index
    %c0_4 = arith.constant 0 : index
    %10 = vector.load %arg5[%c0_3, %c0_4] : memref<256x256xbf16, #tpu.memory_space<vmem>>, vector<256x256xbf16>
    %cst = arith.constant dense<0.000000e+00> : vector<16x256xf32>
    %11 = tpu.matmul %9, %10, %cst {dimension_numbers = #tpu.dot_dimension_numbers<[1], [0], [0], [1], [0, 0, 1, 1], [], []>} : vector<16x256xbf16>, vector<256x256xbf16>, vector<16x256xf32> -> vector<16x256xf32>
    %c0_5 = arith.constant 0 : index
    %c0_6 = arith.constant 0 : index
    %12 = vector.load %arg6[%c0_5, %c0_6] : memref<1x256xf32, #tpu.memory_space<vmem>>, vector<1x256xf32>
    %13 = vector.broadcast %12 : vector<1x256xf32> to vector<16x256xf32>
    %14 = arith.addf %11, %13 : vector<16x256xf32>
    %cst_7 = arith.constant 0.0883883461 : f32
    %15 = vector.broadcast %cst_7 : f32 to vector<16x256xf32>
    %16 = arith.mulf %14, %15 : vector<16x256xf32>
    %17 = arith.truncf %16 : vector<16x256xf32> to vector<16x256xbf16>
    %c0_8 = arith.constant 0 : index
    %c0_9 = arith.constant 0 : index
    %18 = vector.load %arg21[%c0_8, %c0_9] : memref<16x256xbf16, #tpu.memory_space<vmem>>, vector<16x256xbf16>
    %c0_10 = arith.constant 0 : index
    %c0_11 = arith.constant 0 : index
    %19 = vector.load %arg22[%c0_10, %c0_11] : memref<16x256xbf16, #tpu.memory_space<vmem>>, vector<16x256xbf16>
    %20 = vector.extract_strided_slice %17 {offsets = [0, 0], sizes = [16, 128], strides = [1, 1]} : vector<16x256xbf16> to vector<16x128xbf16>
    %21 = vector.extract_strided_slice %18 {offsets = [0, 0], sizes = [16, 128], strides = [1, 1]} : vector<16x256xbf16> to vector<16x128xbf16>
    %22 = vector.extract_strided_slice %19 {offsets = [0, 0], sizes = [16, 128], strides = [1, 1]} : vector<16x256xbf16> to vector<16x128xbf16>
    %cst_12 = arith.constant dense<0.000000e+00> : vector<16x16xf32>
    %23 = tpu.matmul %20, %21, %cst_12 {dimension_numbers = #tpu.dot_dimension_numbers<[1], [1], [0], [0], [0, 0, 1, 0], [], []>} : vector<16x128xbf16>, vector<16x128xbf16>, vector<16x16xf32> -> vector<16x16xf32>
    %cst_13 = arith.constant dense<0xFF800000> : vector<16xf32>
    %24 = vector.multi_reduction <maximumf>, %23, %cst_13 [1] : vector<16x16xf32> to vector<16xf32>
    %25 = vector.shape_cast %24 : vector<16xf32> to vector<16x1xf32>
    %26 = vector.broadcast %25 : vector<16x1xf32> to vector<16x16xf32>
    %27 = arith.subf %23, %26 : vector<16x16xf32>
    %28 = math.exp %27 : vector<16x16xf32>
    %cst_14 = arith.constant dense<0.000000e+00> : vector<16xf32>
    %29 = vector.multi_reduction <add>, %28, %cst_14 [1] : vector<16x16xf32> to vector<16xf32>
    %30 = vector.shape_cast %29 : vector<16xf32> to vector<16x1xf32>
    %31 = tpu.reciprocal %30 {approx = true} : vector<16x1xf32> -> vector<16x1xf32>
    %32 = vector.broadcast %31 : vector<16x1xf32> to vector<16x16xf32>
    %33 = arith.mulf %28, %32 : vector<16x16xf32>
    %34 = arith.truncf %33 : vector<16x16xf32> to vector<16x16xbf16>
    %cst_15 = arith.constant dense<0.000000e+00> : vector<16x128xf32>
    %35 = tpu.matmul %34, %22, %cst_15 {dimension_numbers = #tpu.dot_dimension_numbers<[1], [0], [0], [1], [0, 0, 1, 1], [], []>} : vector<16x16xbf16>, vector<16x128xbf16>, vector<16x128xf32> -> vector<16x128xf32>
    %c0_16 = arith.constant 0 : index
    %c0_17 = arith.constant 0 : index
    %36 = vector.load %arg23[%c0_16, %c0_17] : memref<16x256xf32, #tpu.memory_space<vmem>>, vector<16x128xf32>
    tpu.vector_store %arg23[%c0_16, %c0_17], %35 {strides = array<i32>} : memref<16x256xf32, #tpu.memory_space<vmem>>, vector<16x128xf32>,
    %37 = vector.extract_strided_slice %17 {offsets = [0, 128], sizes = [16, 128], strides = [1, 1]} : vector<16x256xbf16> to vector<16x128xbf16>
    %38 = vector.extract_strided_slice %18 {offsets = [0, 128], sizes = [16, 128], strides = [1, 1]} : vector<16x256xbf16> to vector<16x128xbf16>
    %39 = vector.extract_strided_slice %19 {offsets = [0, 128], sizes = [16, 128], strides = [1, 1]} : vector<16x256xbf16> to vector<16x128xbf16>
    %cst_18 = arith.constant dense<0.000000e+00> : vector<16x16xf32>
    %40 = tpu.matmul %37, %38, %cst_18 {dimension_numbers = #tpu.dot_dimension_numbers<[1], [1], [0], [0], [0, 0, 1, 0], [], []>} : vector<16x128xbf16>, vector<16x128xbf16>, vector<16x16xf32> -> vector<16x16xf32>
    %cst_19 = arith.constant dense<0xFF800000> : vector<16xf32>
    %41 = vector.multi_reduction <maximumf>, %40, %cst_19 [1] : vector<16x16xf32> to vector<16xf32>
    %42 = vector.shape_cast %41 : vector<16xf32> to vector<16x1xf32>
    %43 = vector.broadcast %42 : vector<16x1xf32> to vector<16x16xf32>
    %44 = arith.subf %40, %43 : vector<16x16xf32>
    %45 = math.exp %44 : vector<16x16xf32>
    %cst_20 = arith.constant dense<0.000000e+00> : vector<16xf32>
    %46 = vector.multi_reduction <add>, %45, %cst_20 [1] : vector<16x16xf32> to vector<16xf32>
    %47 = vector.shape_cast %46 : vector<16xf32> to vector<16x1xf32>
    %48 = tpu.reciprocal %47 {approx = true} : vector<16x1xf32> -> vector<16x1xf32>
    %49 = vector.broadcast %48 : vector<16x1xf32> to vector<16x16xf32>
    %50 = arith.mulf %45, %49 : vector<16x16xf32>
    %51 = arith.truncf %50 : vector<16x16xf32> to vector<16x16xbf16>
    %cst_21 = arith.constant dense<0.000000e+00> : vector<16x128xf32>
    %52 = tpu.matmul %51, %39, %cst_21 {dimension_numbers = #tpu.dot_dimension_numbers<[1], [0], [0], [1], [0, 0, 1, 1], [], []>} : vector<16x16xbf16>, vector<16x128xbf16>, vector<16x128xf32> -> vector<16x128xf32>
    %c0_22 = arith.constant 0 : index
    %c128 = arith.constant 128 : index
    %53 = vector.load %arg23[%c0_22, %c128] : memref<16x256xf32, #tpu.memory_space<vmem>>, vector<16x128xf32>
    tpu.vector_store %arg23[%c0_22, %c128], %52 {strides = array<i32>} : memref<16x256xf32, #tpu.memory_space<vmem>>, vector<16x128xf32>,
    %c0_23 = arith.constant 0 : index
    %c0_24 = arith.constant 0 : index
    %54 = vector.load %arg23[%c0_23, %c0_24] : memref<16x256xf32, #tpu.memory_space<vmem>>, vector<16x256xf32>
    %55 = arith.truncf %54 : vector<16x256xf32> to vector<16x256xbf16>
    %c0_25 = arith.constant 0 : index
    %c0_26 = arith.constant 0 : index
    %56 = vector.load %arg11[%c0_25, %c0_26] : memref<256x256xbf16, #tpu.memory_space<vmem>>, vector<256x256xbf16>
    %cst_27 = arith.constant dense<0.000000e+00> : vector<16x256xf32>
    %57 = tpu.matmul %55, %56, %cst_27 {dimension_numbers = #tpu.dot_dimension_numbers<[1], [0], [0], [1], [0, 0, 1, 1], [], []>} : vector<16x256xbf16>, vector<256x256xbf16>, vector<16x256xf32> -> vector<16x256xf32>
    %c0_28 = arith.constant 0 : index
    %c0_29 = arith.constant 0 : index
    %58 = vector.load %arg12[%c0_28, %c0_29] : memref<1x256xf32, #tpu.memory_space<vmem>>, vector<1x256xf32>
    %59 = vector.broadcast %58 : vector<1x256xf32> to vector<16x256xf32>
    %60 = arith.addf %57, %59 : vector<16x256xf32>
    %61 = arith.addf %7, %60 : vector<16x256xf32>
    %c0_30 = arith.constant 0 : index
    %c0_31 = arith.constant 0 : index
    %62 = vector.load %arg13[%c0_30, %c0_31] : memref<1x256xf32, #tpu.memory_space<vmem>>, vector<1x256xf32>
    %c0_32 = arith.constant 0 : index
    %c0_33 = arith.constant 0 : index
    %63 = vector.load %arg14[%c0_32, %c0_33] : memref<1x256xf32, #tpu.memory_space<vmem>>, vector<1x256xf32>
    %cst_34 = arith.constant dense<0.000000e+00> : vector<16xf32>
    %64 = vector.multi_reduction <add>, %61, %cst_34 [1] : vector<16x256xf32> to vector<16xf32>
    %65 = vector.shape_cast %64 : vector<16xf32> to vector<16x1xf32>
    %cst_35 = arith.constant 2.560000e+02 : f32
    %66 = vector.broadcast %cst_35 : f32 to vector<16x1xf32>
    %67 = arith.divf %65, %66 : vector<16x1xf32>
    %68 = vector.broadcast %67 : vector<16x1xf32> to vector<16x256xf32>
    %69 = arith.subf %61, %68 : vector<16x256xf32>
    %70 = arith.mulf %69, %69 : vector<16x256xf32>
    %cst_36 = arith.constant dense<0.000000e+00> : vector<16xf32>
    %71 = vector.multi_reduction <add>, %70, %cst_36 [1] : vector<16x256xf32> to vector<16xf32>
    %72 = vector.shape_cast %71 : vector<16xf32> to vector<16x1xf32>
    %cst_37 = arith.constant 2.560000e+02 : f32
    %73 = vector.broadcast %cst_37 : f32 to vector<16x1xf32>
    %74 = arith.divf %72, %73 : vector<16x1xf32>
    %75 = vector.broadcast %67 : vector<16x1xf32> to vector<16x256xf32>
    %76 = arith.subf %61, %75 : vector<16x256xf32>
    %cst_38 = arith.constant 9.99999974E-6 : f32
    %77 = vector.broadcast %cst_38 : f32 to vector<16x1xf32>
    %78 = arith.addf %74, %77 : vector<16x1xf32>
    %79 = math.rsqrt %78 : vector<16x1xf32>
    %80 = vector.broadcast %79 : vector<16x1xf32> to vector<16x256xf32>
    %81 = arith.mulf %76, %80 : vector<16x256xf32>
    %82 = vector.broadcast %62 : vector<1x256xf32> to vector<16x256xf32>
    %83 = arith.mulf %81, %82 : vector<16x256xf32>
    %84 = vector.broadcast %63 : vector<1x256xf32> to vector<16x256xf32>
    %85 = arith.addf %83, %84 : vector<16x256xf32>
    %86 = arith.truncf %85 : vector<16x256xf32> to vector<16x256xbf16>
    %c0_39 = arith.constant 0 : index
    %c0_40 = arith.constant 0 : index
    %87 = vector.load %arg15[%c0_39, %c0_40] : memref<256x1024xbf16, #tpu.memory_space<vmem>>, vector<256x1024xbf16>
    %cst_41 = arith.constant dense<0.000000e+00> : vector<16x1024xf32>
    %88 = tpu.matmul %86, %87, %cst_41 {dimension_numbers = #tpu.dot_dimension_numbers<[1], [0], [0], [1], [0, 0, 1, 1], [], []>} : vector<16x256xbf16>, vector<256x1024xbf16>, vector<16x1024xf32> -> vector<16x1024xf32>
    %c0_42 = arith.constant 0 : index
    %c0_43 = arith.constant 0 : index
    %89 = vector.load %arg16[%c0_42, %c0_43] : memref<1x1024xf32, #tpu.memory_space<vmem>>, vector<1x1024xf32>
    %90 = vector.broadcast %89 : vector<1x1024xf32> to vector<16x1024xf32>
    %91 = arith.addf %88, %90 : vector<16x1024xf32>
    %92 = arith.mulf %91, %91 : vector<16x1024xf32>
    %93 = arith.mulf %91, %92 : vector<16x1024xf32>
    %cst_44 = arith.constant 4.471500e-02 : f32
    %94 = vector.broadcast %cst_44 : f32 to vector<16x1024xf32>
    %95 = arith.mulf %94, %93 : vector<16x1024xf32>
    %96 = arith.addf %91, %95 : vector<16x1024xf32>
    %cst_45 = arith.constant 0.797884583 : f32
    %97 = vector.broadcast %cst_45 : f32 to vector<16x1024xf32>
    %98 = arith.mulf %97, %96 : vector<16x1024xf32>
    %99 = math.tanh %98 : vector<16x1024xf32>
    %cst_46 = arith.constant 1.000000e+00 : f32
    %100 = vector.broadcast %cst_46 : f32 to vector<16x1024xf32>
    %101 = arith.addf %100, %99 : vector<16x1024xf32>
    %cst_47 = arith.constant 5.000000e-01 : f32
    %102 = vector.broadcast %cst_47 : f32 to vector<16x1024xf32>
    %103 = arith.mulf %102, %101 : vector<16x1024xf32>
    %104 = arith.mulf %91, %103 : vector<16x1024xf32>
    %105 = arith.truncf %104 : vector<16x1024xf32> to vector<16x1024xbf16>
    %c0_48 = arith.constant 0 : index
    %c0_49 = arith.constant 0 : index
    %106 = vector.load %arg17[%c0_48, %c0_49] : memref<1024x256xbf16, #tpu.memory_space<vmem>>, vector<1024x256xbf16>
    %cst_50 = arith.constant dense<0.000000e+00> : vector<16x256xf32>
    %107 = tpu.matmul %105, %106, %cst_50 {dimension_numbers = #tpu.dot_dimension_numbers<[1], [0], [0], [1], [0, 0, 1, 1], [], []>} : vector<16x1024xbf16>, vector<1024x256xbf16>, vector<16x256xf32> -> vector<16x256xf32>
    %c0_51 = arith.constant 0 : index
    %c0_52 = arith.constant 0 : index
    %108 = vector.load %arg18[%c0_51, %c0_52] : memref<1x256xf32, #tpu.memory_space<vmem>>, vector<1x256xf32>
    %109 = vector.broadcast %108 : vector<1x256xf32> to vector<16x256xf32>
    %110 = arith.addf %107, %109 : vector<16x256xf32>
    %111 = arith.addf %61, %110 : vector<16x256xf32>
    %c0_53 = arith.constant 0 : index
    %c0_54 = arith.constant 0 : index
    %c0_55 = arith.constant 0 : index
    %112 = vector.load %arg19[%c0_53, %c0_54, %c0_55] : memref<1x16x256xf32, #tpu.memory_space<vmem>>, vector<1x16x256xf32>
    %113 = vector.shape_cast %112 : vector<1x16x256xf32> to vector<16x256xf32>
    %114 = vector.shape_cast %111 : vector<16x256xf32> to vector<1x16x256xf32>
    tpu.vector_store %arg19[%c0_53, %c0_54, %c0_55], %114 {strides = array<i32>} : memref<1x16x256xf32, #tpu.memory_space<vmem>>, vector<1x16x256xf32>,
    return
  }
  func.func @transform_0(%arg0: i32, %arg1: i32) -> (i32, i32, i32) {
    %c0_i32 = arith.constant 0 : i32
    %c0_i32_0 = arith.constant 0 : i32
    %c0_i32_1 = arith.constant 0 : i32
    return %arg0, %c0_i32, %c0_i32_0 : i32, i32, i32
  }
  func.func @transform_1(%arg0: i32, %arg1: i32) -> (i32, i32) {
    %c0_i32 = arith.constant 0 : i32
    %c0_i32_0 = arith.constant 0 : i32
    %c0_i32_1 = arith.constant 0 : i32
    return %c0_i32, %c0_i32_0 : i32, i32
  }
  func.func @transform_2(%arg0: i32, %arg1: i32) -> (i32, i32) {
    %c0_i32 = arith.constant 0 : i32
    %c0_i32_0 = arith.constant 0 : i32
    %c0_i32_1 = arith.constant 0 : i32
    return %c0_i32, %c0_i32_0 : i32, i32
  }
  func.func @transform_3(%arg0: i32, %arg1: i32) -> (i32, i32) {
    %c0_i32 = arith.constant 0 : i32
    %c0_i32_0 = arith.constant 0 : i32
    %c0_i32_1 = arith.constant 0 : i32
    return %c0_i32, %c0_i32_0 : i32, i32
  }
  func.func @transform_4(%arg0: i32, %arg1: i32) -> (i32, i32) {
    %c0_i32 = arith.constant 0 : i32
    %c0_i32_0 = arith.constant 0 : i32
    %c0_i32_1 = arith.constant 0 : i32
    return %c0_i32, %c0_i32_0 : i32, i32
  }
  func.func @transform_5(%arg0: i32, %arg1: i32) -> (i32, i32) {
    %c0_i32 = arith.constant 0 : i32
    %c0_i32_0 = arith.constant 0 : i32
    %c0_i32_1 = arith.constant 0 : i32
    return %c0_i32, %c0_i32_0 : i32, i32
  }
  func.func @transform_6(%arg0: i32, %arg1: i32) -> (i32, i32) {
    %c0_i32 = arith.constant 0 : i32
    %c0_i32_0 = arith.constant 0 : i32
    %c0_i32_1 = arith.constant 0 : i32
    return %c0_i32, %c0_i32_0 : i32, i32
  }
  func.func @transform_7(%arg0: i32, %arg1: i32) -> (i32, i32) {
    %c0_i32 = arith.constant 0 : i32
    %c0_i32_0 = arith.constant 0 : i32
    %c0_i32_1 = arith.constant 0 : i32
    return %c0_i32, %c0_i32_0 : i32, i32
  }
  func.func @transform_8(%arg0: i32, %arg1: i32) -> (i32, i32) {
    %c0_i32 = arith.constant 0 : i32
    %c0_i32_0 = arith.constant 0 : i32
    %c0_i32_1 = arith.constant 0 : i32
    return %c0_i32, %c0_i32_0 : i32, i32
  }
  func.func @transform_9(%arg0: i32, %arg1: i32) -> (i32, i32) {
    %c0_i32 = arith.constant 0 : i32
    %c0_i32_0 = arith.constant 0 : i32
    %c0_i32_1 = arith.constant 0 : i32
    return %c0_i32, %c0_i32_0 : i32, i32
  }
  func.func @transform_10(%arg0: i32, %arg1: i32) -> (i32, i32) {
    %c0_i32 = arith.constant 0 : i32
    %c0_i32_0 = arith.constant 0 : i32
    %c0_i32_1 = arith.constant 0 : i32
    return %c0_i32, %c0_i32_0 : i32, i32
  }
  func.func @transform_11(%arg0: i32, %arg1: i32) -> (i32, i32) {
    %c0_i32 = arith.constant 0 : i32
    %c0_i32_0 = arith.constant 0 : i32
    %c0_i32_1 = arith.constant 0 : i32
    return %c0_i32, %c0_i32_0 : i32, i32
  }
  func.func @transform_12(%arg0: i32, %arg1: i32) -> (i32, i32) {
    %c0_i32 = arith.constant 0 : i32
    %c0_i32_0 = arith.constant 0 : i32
    %c0_i32_1 = arith.constant 0 : i32
    return %c0_i32, %c0_i32_0 : i32, i32
  }
  func.func @transform_13(%arg0: i32, %arg1: i32) -> (i32, i32) {
    %c0_i32 = arith.constant 0 : i32
    %c0_i32_0 = arith.constant 0 : i32
    %c0_i32_1 = arith.constant 0 : i32
    return %c0_i32, %c0_i32_0 : i32, i32
  }
  func.func @transform_14(%arg0: i32, %arg1: i32) -> (i32, i32) {
    %c0_i32 = arith.constant 0 : i32
    %c0_i32_0 = arith.constant 0 : i32
    %c0_i32_1 = arith.constant 0 : i32
    return %c0_i32, %c0_i32_0 : i32, i32
  }
  func.func @transform_15(%arg0: i32, %arg1: i32) -> (i32, i32) {
    %c0_i32 = arith.constant 0 : i32
    %c0_i32_0 = arith.constant 0 : i32
    %c0_i32_1 = arith.constant 0 : i32
    return %c0_i32, %c0_i32_0 : i32, i32
  }
  func.func @transform_16(%arg0: i32, %arg1: i32) -> (i32, i32) {
    %c0_i32 = arith.constant 0 : i32
    %c0_i32_0 = arith.constant 0 : i32
    %c0_i32_1 = arith.constant 0 : i32
    return %c0_i32, %c0_i32_0 : i32, i32
  }
  func.func @transform_17(%arg0: i32, %arg1: i32) -> (i32, i32, i32) {
    %c0_i32 = arith.constant 0 : i32
    %c0_i32_0 = arith.constant 0 : i32
    return %arg0, %arg1, %c0_i32 : i32, i32, i32
  }
}

</mosaic_0001>

<bundles_post_ra>
// kernel: tpu_custom_call.1
= control target key start
LH: loop header
LB: loop body
LE: loop exit
PB: predicated region body
PF: predicated region fallthrough
CT: control target
= control target key end

     0   :  { %s8006_s0 = inlined_call_operand.hbm [shape: f32[2,16,256], index: 0, kind: input, shape index: {}]   ;;  %s8007_s1 = inlined_call_operand.hbm [shape: f32[1,256], index: 1, kind: input, shape index: {}]   ;;  %s8008_s2 = inlined_call_operand.hbm [shape: f32[1,256], index: 2, kind: input, shape index: {}]   ;;  %s8009_s3 = inlined_call_operand.hbm [shape: bf16[256,256], index: 3, kind: input, shape index: {}]   ;;  %s8010_s4 = inlined_call_operand.vmem [shape: f32[1,256], index: 4, kind: input, shape index: {}]   ;;  %s8011_s5 = inlined_call_operand.hbm [shape: bf16[256,256], index: 5, kind: input, shape index: {}]   ;;  %s8012_s6 = inlined_call_operand.vmem [shape: f32[1,256], index: 6, kind: input, shape index: {}]   ;;  %s8013_s7 = inlined_call_operand.hbm [shape: bf16[256,256], index: 7, kind: input, shape index: {}]   ;;  %s8014_s8 = inlined_call_operand.hbm [shape: f32[1,256], index: 8, kind: input, shape index: {}]   ;;  %s8015_s9 = inlined_call_operand.hbm [shape: bf16[256,256], index: 9, kind: input, shape index: {}]   ;;  %s8016_s10 = inlined_call_operand.hbm [shape: f32[1,256], index: 10, kind: input, shape index: {}]   ;;  %s8017_s11 = inlined_call_operand.hbm [shape: f32[1,256], index: 11, kind: input, shape index: {}]   ;;  %s8018_s12 = inlined_call_operand.hbm [shape: f32[1,256], index: 12, kind: input, shape index: {}]   ;;  %s8019_s13 = inlined_call_operand.hbm [shape: bf16[256,1024], index: 13, kind: input, shape index: {}]   ;;  %s8020_s14 = inlined_call_operand.vmem [shape: f32[1,1024], index: 14, kind: input, shape index: {}]   ;;  %s8021_s15 = inlined_call_operand.hbm [shape: bf16[1024,256], index: 15, kind: input, shape index: {}]   ;;  %s8022_s16 = inlined_call_operand.vmem [shape: f32[1,256], index: 16, kind: input, shape index: {}]   ;;  %s8023_s17 = inlined_call_operand.hbm [shape: f32[2,16,256], index: 17, kind: output, shape index: {}]  }
   0x1   :  { %8030 = sst [smem:[#allocation37_spill]] %s8006_s0 }
   0x2   :  { %8031 = sst [smem:[#allocation38_spill]] %s8007_s1 }
   0x3   :  { %8032 = sst [smem:[#allocation39_spill]] %s8008_s2 }
   0x4   :  { %8033 = sst [smem:[#allocation40_spill]] %s8009_s3 }
   0x5   :  { %8034 = sst [smem:[#allocation41_spill]] %s8010_s4 }
   0x6   :  { %8035 = sst [smem:[#allocation42_spill]] %s8011_s5 }
   0x7   :  { %8036 = sst [smem:[#allocation43_spill]] %s8012_s6 }
   0x8   :  { %8037 = sst [smem:[#allocation44_spill]] %s8013_s7 }
   0x9   :  { %8038 = sst [smem:[#allocation45_spill]] %s8014_s8 }
   0xa   :  { %8039 = sst [smem:[#allocation46_spill]] %s8015_s9 }
   0xb   :  { %8040 = sst [smem:[#allocation47_spill]] %s8016_s10 }
   0xc   :  { %8041 = sst [smem:[#allocation48_spill]] %s8020_s14 }
   0xd   :  { %8042 = sst [smem:[#allocation49_spill]] %s8022_s16 }
   0xe   :  { %8043 = sst [smem:[#allocation50_spill]] %s8023_s17 }
   0xf   :  { %22 = vsyncpa [#allocation7], 0 }
  0x10   :  { %24 = vsyncpa [#allocation7 + $0x1], 0 }
  0x11   :  { %25 = vsyncpa [#allocation10], 0 }
  0x12   :  { %26 = vsyncpa [#allocation13], 0 }
  0x13   :  { %27 = vsyncpa [#allocation16], 0 }
  0x14   :  { %28 = vsyncpa [#allocation19], 0 }
  0x15   :  { %29 = vsyncpa [#allocation22], 0 }
  0x16   :  { %30 = vsyncpa [#allocation25], 0 }
  0x17   :  { %31 = vsyncpa [#allocation8], 0 }
  0x18   :  { %33 = vsyncpa [#allocation8 + $0x1], 0  ;;  %s7401_s24 = smov 0   ;;  %s7403_s25 = smov 0  }
  0x19   :  { %s7405_s26 = smov 0   ;;  %s7407_s27 = smov 0  }
  0x1a   :  { %s7409_s28 = smov 0   ;;  %s7411_s29 = smov 0  }
  0x1b LB: > { %8044 = sst [smem:[#allocation36_spill]] %s7280_s27  ;;  %s8024_s0 = sadd.s32 4294967295, %s7288_s29   ;;  %s7288_s29 = sphi %s7411_s29, %s39_s29   ;;  %s7284_s28 = sphi %s7409_s28, %s8074_s28   ;;  %s7280_s27 = sphi %s7407_s27, %s8073_s27   ;;  %s7276_s26 = sphi %s7405_s26, %s8072_s26   ;;  %s7272_s25 = sphi %s7403_s25, %s8071_s25   ;;  %s7268_s24 = sphi %s7401_s24, %s8070_s24  }
  0x1c   : > { %p4551_p0 = scmp.ge.s32.totalorder %s7288_s29, 1  ;;  %p7435_p1 = scmp.eq.s32.totalorder %s8024_s0, 0 }
  0x1d   : > { %p446_p2 = scmp.lt.s32.totalorder %s7288_s29, 3  ;;  %s8046_s1 = sld [smem:[#allocation38_spill]] }
  0x1e   : > { %p4564_p4 = scmp.ge.s32.totalorder %s7288_s29, 2  ;;  %s7290_s22 = smov [#allocation9]  }
  0x1f   : > { %p7443_p3 = pnand %p4551_p0, %p446_p2  ;;  %s460_s23 = sshll.u32 %s7290_s22, 4  ;;  %s461_s23 = int_to_ptr.vmem [resolvable:$true] %s460_s23 }
  0x20   : > { %s8048_s3 = sld [smem:[#allocation40_spill]]  ;;  %s7291_s19 = smov [#allocation12]  }
  0x21   : > { %p6594_p5 = pneg %p7443_p3  ;;  %s8026_s22 = smov 128  }
  0x22   : > { %s8028_s16 = smov 8   ;;  %s8050_s7 = sld [smem:[#allocation44_spill]] }
  0x23   : > { %s458_s20 = sshll.u32 %s8046_s1, 4  ;;  %p7455_p6 = pnand %p6594_p5, %p7435_p1  ;;  %s459_s20 = int_to_ptr.hbm [resolvable:$true] %s458_s20 }
  0x24   : > { %s483_s1 = sshll.u32 %s7291_s19, 4  ;;  %s7294_s14 = smov [#allocation15]   ;;  %s484_s1 = int_to_ptr.vmem [resolvable:$true] %s483_s1 }
  0x25   : > { %6597 = dma.hbm_to_vmem [thread:$0]  (!%p7455_p6), %s459_s20, 32, %s461_s23, [#allocation10]  }
  0x26   : > { %s481_s27 = sshll.u32 %s8048_s3, 4  ;;  %s517_s4 = sshll.u32 %s7294_s14, 4  ;;  %s482_s27 = int_to_ptr.hbm [resolvable:$true] %s481_s27  ;;  %s518_s4 = int_to_ptr.vmem [resolvable:$true] %s517_s4 }
  0x27   : > { %6603 = dma.hbm_to_vmem [thread:$0]  (!%p7455_p6), %s482_s27, 4096, %s484_s1, [#allocation13], %s8026_s22, %s8026_s22, %s8028_s16  }
  0x28   : > { %s515_s3 = sshll.u32 %s8050_s7, 4  ;;  %s8051_s9 = sld [smem:[#allocation46_spill]]  ;;  %s516_s3 = int_to_ptr.hbm [resolvable:$true] %s515_s3 }
  0x29   : > { %6609 = dma.hbm_to_vmem [thread:$0]  (!%p7455_p6), %s516_s3, 4096, %s518_s4, [#allocation16], %s8026_s22, %s8026_s22, %s8028_s16  }
  0x2a   : > { %s7295_s27 = smov [#allocation18]   ;;  %s568_s0 = sshll.u32 %s8017_s11, 4  ;;  %s569_s0 = int_to_ptr.hbm [resolvable:$true] %s568_s0 }
  0x2b   : > { %s543_s1 = sshll.u32 %s7295_s27, 4  ;;  %s591_s20 = sshll.u32 %s8019_s13, 4  ;;  %s544_s1 = int_to_ptr.vmem [resolvable:$true] %s543_s1  ;;  %s592_s20 = int_to_ptr.hbm [resolvable:$true] %s591_s20 }
  0x2c   : > { %s7296_s3 = smov [#allocation21]   ;;  %s7297_s6 = smov [#allocation24]  }
  0x2d   : > { %s570_s4 = sshll.u32 %s7296_s3, 4  ;;  %s593_s27 = sshll.u32 %s7297_s6, 4  ;;  %s571_s4 = int_to_ptr.vmem [resolvable:$true] %s570_s4  ;;  %s594_s27 = int_to_ptr.vmem [resolvable:$true] %s593_s27 }
  0x2e   : > { %s541_s23 = sshll.u32 %s8051_s9, 4  ;;  %s7298_s17 = smov 512   ;;  %s542_s23 = int_to_ptr.hbm [resolvable:$true] %s541_s23 }
  0x2f   : > { %6615 = dma.hbm_to_vmem [thread:$0]  (!%p7455_p6), %s542_s23, 4096, %s544_s1, [#allocation19], %s8026_s22, %s8026_s22, %s8028_s16  }
  0x30   : > { %6621 = dma.hbm_to_vmem [thread:$0]  (!%p7455_p6), %s569_s0, 32, %s571_s4, [#allocation22]  }
  0x31   : > { %s7299_s7 = smov 32   ;;  %s8052_s2 = sld [smem:[#allocation39_spill]] }
  0x32   : > { %6627 = dma.hbm_to_vmem [thread:$0]  (!%p7455_p6), %s592_s20, 16384, %s594_s27, [#allocation25], %s7298_s17, %s7298_s17, %s7299_s7  }
  0x33   : > { %s7300_s19 = smov [#allocation11]   ;;  %s8053_s5 = sld [smem:[#allocation42_spill]] }
  0x34   : > { %s472_s3 = sshll.u32 %s7300_s19, 4  ;;  %s7301_s4 = smov [#allocation14]   ;;  %s473_s3 = int_to_ptr.vmem [resolvable:$true] %s472_s3 }
  0x35   : > { %s500_s6 = sshll.u32 %s7301_s4, 4  ;;  %s8054_s8 = sld [smem:[#allocation45_spill]]  ;;  %s501_s6 = int_to_ptr.vmem [resolvable:$true] %s500_s6 }
  0x36   : > { %s8055_s27 = smov 8   ;;  %s8056_s17 = smov 128  }
  0x37   : > { %s470_s14 = sshll.u32 %s8052_s2, 4  ;;  %s8057_s10 = sld [smem:[#allocation47_spill]]  ;;  %s471_s14 = int_to_ptr.hbm [resolvable:$true] %s470_s14 }
  0x38   : > { %6600 = dma.hbm_to_vmem [thread:$0]  (!%p7455_p6), %s471_s14, 32, %s473_s3, [#allocation10]  }
  0x39   : > { %s498_s0 = sshll.u32 %s8053_s5, 4  ;;  %s7302_s1 = smov [#allocation17]   ;;  %s499_s0 = int_to_ptr.hbm [resolvable:$true] %s498_s0 }
  0x3a   : > { %6606 = dma.hbm_to_vmem [thread:$0]  (!%p7455_p6), %s499_s0, 4096, %s501_s6, [#allocation13], %s8056_s17, %s8056_s17, %s8055_s27  }
  0x3b   : > { %s530_s20 = sshll.u32 %s8054_s8, 4  ;;  %s532_s14 = sshll.u32 %s7302_s1, 4  ;;  %s531_s20 = int_to_ptr.hbm [resolvable:$true] %s530_s20  ;;  %s533_s14 = int_to_ptr.vmem [resolvable:$true] %s532_s14 }
  0x3c   : > { %6612 = dma.hbm_to_vmem [thread:$0]  (!%p7455_p6), %s531_s20, 32, %s533_s14, [#allocation16]  }
  0x3d   : > { %s556_s22 = sshll.u32 %s8057_s10, 4  ;;  %s7303_s9 = smov [#allocation20]   ;;  %s557_s22 = int_to_ptr.hbm [resolvable:$true] %s556_s22 }
  0x3e   : > { %s558_s19 = sshll.u32 %s7303_s9, 4  ;;  %s580_s0 = sshll.u32 %s8018_s12, 4  ;;  %s559_s19 = int_to_ptr.vmem [resolvable:$true] %s558_s19  ;;  %s581_s0 = int_to_ptr.hbm [resolvable:$true] %s580_s0 }
  0x3f   : > { %6618 = dma.hbm_to_vmem [thread:$0]  (!%p7455_p6), %s557_s22, 32, %s559_s19, [#allocation19]  }
  0x40   : > { %s608_s20 = sshll.u32 %s8021_s15, 4  ;;  %s7304_s23 = smov [#allocation23]   ;;  %s609_s20 = int_to_ptr.hbm [resolvable:$true] %s608_s20 }
  0x41   : > { %s582_s16 = sshll.u32 %s7304_s23, 4  ;;  %s7305_s1 = smov [#allocation26]   ;;  %s583_s16 = int_to_ptr.vmem [resolvable:$true] %s582_s16 }
  0x42   : > { %6624 = dma.hbm_to_vmem [thread:$0]  (!%p7455_p6), %s581_s0, 32, %s583_s16, [#allocation22]  }
  0x43   : > { %s610_s14 = sshll.u32 %s7305_s1, 4  ;;  %s4550_s22 = sadd.s32 4294967294, %s7288_s29   ;;  %s611_s14 = int_to_ptr.vmem [resolvable:$true] %s610_s14 }
  0x44   : > { %6630 = dma.hbm_to_vmem [thread:$0]  (!%p7455_p6), %s609_s20, 16384, %s611_s14, [#allocation25], %s8056_s17, %s8056_s17, %s8055_s27  }
  0x45   : > { %s51_s9 = sadd.s32 1, %s7284_s28  ;;  %s58_s19 = sadd.s32 1, %s7276_s26 }
  0x46   : > { %p53_p7 = scmp.ge.s32.totalorder %s51_s9, 2  ;;  %p65_p8 = scmp.ne.s32.totalorder %s7276_s26, %s7272_s25 }
  0x47   : > { %p66_p9 = scmp.eq.s32.totalorder %s7288_s29, 0  ;;  %p71_p11 = scmp.ne.s32.totalorder %s7272_s25, %s7268_s24 }
  0x48   : > { %s8076_s9 = smov (%p53_p7, %s51_s9), 0  ;;  %s8059_s27 = sadd.s32 4294967295, %s7288_s29  }
  0x49   : > { %p7536_p10 = por %p66_p9, %p65_p8  ;;  %s55_s18 = ssub.s32 %s7284_s28, %s8076_s9 }
  0x4a   : > { %p433_p12 = scmp.eq.s32.totalorder %s8059_s27, 1  ;;  %p56_p13 = scmp.eq.s32.totalorder %s55_s18, 0 }
  0x4b   : > { %p7548_p0 = por %p7435_p1, %p71_p11  ;;  %p439_p5 = scmp.eq.s32.totalorder %s4550_s22, 1 }
  0x4c   : > { %p7552_p2 = por %p433_p12, %p65_p8  ;;  %p6651_p7 = scmp.lt.s32.totalorder %s7288_s29, 2 }
  0x4d   : > { %s7557_s0 = scalar_select %p56_p13, %s7276_s26, %s58_s19  }
  0x4e   : > { %p7559_p6 = por %p439_p5, %p71_p11  ;;  %s627_s7 = sand.u32 1, %s7276_s26  }
  0x4f   : > { %s6150_s20 = sshll.u32 %s7284_s28, 5  ;;  %s4565_s23 = sshll.u32 %s627_s7, 5 }
  0x50   : > { %s8063_s14 = sld [smem:[#allocation37_spill]]  ;;  %s631_s2 = scalar_lea.vmem [#allocation6], %s4565_s23 }
  0x51   : > { %s639_s5 = sshll.u32 %s631_s2, 4  ;;  %p6632_p8 = pnand %p6651_p7, %p7536_p10  ;;  %s640_s5 = int_to_ptr.vmem [resolvable:$true] %s639_s5 }
  0x52   : > { %s628_s22 = scalar_lea.sflag [#allocation7], %s627_s7  ;;  %s7306_s19 = smov 256  }
  0x53   : > { %s7307_s8 = smov 16   ;;  %s7574_s10 = sand.u32 (!%p7443_p3), 1, %s7272_s25  }
  0x54   : > { %651 = sbr.rel (%p7443_p3) target bundleno = 1943 (0x797), region = 88  ;;  %s654_s2 = scalar_lea.sflag (!%p7443_p3), [#allocation7], %s7574_s10 }
  0x56   : > { %s636_s18 = scalar_lea.hbm %s8063_s14, %s6150_s20  ;;  %s4569_s20 = sshll.u32 (!%p7443_p3), %s7574_s10, 5 }
  0x57   : > { %s637_s27 = sshll.u32 %s636_s18, 4  ;;  %s7580_s23 = scalar_lea.vmem (!%p7443_p3), [#allocation6], %s4569_s20  ;;  %s638_s27 = int_to_ptr.hbm [resolvable:$true] %s637_s27 }
  0x58   : > { %6634 = dma.hbm_to_vmem [thread:$0]  (!%p6632_p8), %s638_s27, 512, %s640_s5, %s628_s22, %s7306_s19, %s7306_s19, %s7307_s8  }
  0x59   : > { %7235 = dma.done.wait (%p7548_p0), %s654_s2, 512  }
  0x5a   : > { %7237 = vsyncadd (%p7548_p0), %s654_s2, 4294966784 }
  0x5b   : > { %7239 = dma.done.wait (%p7435_p1), [#allocation10], 64  }
  0x5c   : > { %7241 = vsyncadd (%p7435_p1), [#allocation10], 4294967232 }
  0x5d   : > { %7243 = dma.done.wait (%p7435_p1), [#allocation13], 8192  }
  0x5e   : > { %7245 = vsyncadd (%p7435_p1), [#allocation13], 4294959104 }
  0x5f   : > { %7247 = dma.done.wait (%p7435_p1), [#allocation16], 4128  }
  0x60   : > { %7249 = vsyncadd (%p7435_p1), [#allocation16], 4294963168 }
  0x61   : > { %7251 = dma.done.wait (%p7435_p1), [#allocation19], 4128  }
  0x62   : > { %7253 = vsyncadd (%p7435_p1), [#allocation19], 4294963168 }
  0x63   : > { %7255 = dma.done.wait (%p7435_p1), [#allocation22], 64  }
  0x64   : > { %7257 = vsyncadd (%p7435_p1), [#allocation22], 4294967232 }
  0x65   : > { %7259 = dma.done.wait (%p7435_p1), [#allocation25], 32768  }
  0x66   : > { %7261 = vsyncadd (%p7435_p1), [#allocation25], 4294934528  ;;  %v7611_v0 = vld [vmem:[%s7580_s23] sm:$0xff]  ;;  %v7614_v1 = vld [vmem:[%s7580_s23 + $0x8] sm:$0xff]  ;;  %v7308_v6 = vmov 256.0   ;;  %s8064_s30 = sld [smem:[#allocation43_spill]] }
  0x67   : > { %v781_v2 = vadd.f32 %v7614_v1, %v7611_v0  ;;  %v7619_v3 = vld [vmem:[%s7580_s23 + $0x10] sm:$0xff]  ;;  %v7622_v4 = vld [vmem:[%s7580_s23 + $0x18] sm:$0xff]  ;;  %6734 = vrcp.f32 %v7308_v6  ;;  %v4643_v16 = vld [vmem:[#allocation14 + $0x78] sm:$0xf0]  ;;  %s8065_s17 = sld [smem:[#allocation41_spill]]  ;;  %vm1700_vm7 = vcmask 130048  }
  0x68   : > { %v784_v5 = vadd.f32 %v7622_v4, %v7619_v3  ;;  %v4641_v10 = vld [vmem:[#allocation14 + $0x70] sm:$0xf]  ;;  %v6166_v11 = vld [vmem:[#allocation14 + $0x74] sm:$0xf0]  ;;  %v6165_v15 = vld [vmem:[#allocation14 + $0x74] sm:$0xf] }
  0x69   : > { %782 = vadd.xlane.f32.xlu0 %v781_v2  ;;  %v4705_v12 = vld [vmem:[#allocation14 + $0xf0] sm:$0xf]  ;;  %v4642_v13 = vor.u32 %v6166_v11, %v4641_v10  ;;  %v6182_v14 = vld [vmem:[#allocation14 + $0xf4] sm:$0xf0]  ;;  %v4646_v18 = vor.u32 %v6165_v15, %v4643_v16  ;;  %v6181_v19 = vld [vmem:[#allocation14 + $0xf4] sm:$0xf] }
  0x6a   : > { %v4706_v17 = vor.u32 %v6182_v14, %v4705_v12  ;;  %v4707_v20 = vld [vmem:[#allocation14 + $0xf8] sm:$0xf0]  ;;  %v4633_v21 = vld [vmem:[#allocation14 + $0x60] sm:$0xf]  ;;  %v6164_v23 = vld [vmem:[#allocation14 + $0x64] sm:$0xf0] }
  0x6b   : > { %1068 = vmatpush.bf16.msra.mxu0 %v4642_v13  ;;  %v4710_v22 = vor.u32 %v6181_v19, %v4707_v20  ;;  %v4697_v24 = vld [vmem:[#allocation14 + $0xe0] sm:$0xf]  ;;  %v6180_v25 = vld [vmem:[#allocation14 + $0xe4] sm:$0xf0]  ;;  %1096 = vmatpush.bf16.msra.mxu2 %v4646_v18  ;;  %v4634_v26 = vor.u32 %v6164_v23, %v4633_v21  ;;  %v6163_v28 = vld [vmem:[#allocation14 + $0x64] sm:$0xf] }
  0x6c   : > { %1082 = vmatpush.bf16.msra.mxu1 %v4706_v17  ;;  %v4698_v27 = vor.u32 %v6180_v25, %v4697_v24  ;;  %v4635_v29 = vld [vmem:[#allocation14 + $0x68] sm:$0xf0]  ;;  %v6179_v30 = vld [vmem:[#allocation14 + $0xe4] sm:$0xf]  ;;  %v4625_v34 = vld [vmem:[#allocation14 + $0x50] sm:$0xf] }
  0x6d   : > { %v7626_v7 = vpop.eup %6734  ;;  %1110 = vmatpush.bf16.msra.mxu3 %v4710_v22  ;;  %v4638_v32 = vor.u32 %v6163_v28, %v4635_v29  ;;  %v4699_v33 = vld [vmem:[#allocation14 + $0xe8] sm:$0xf0]  ;;  %v6162_v35 = vld [vmem:[#allocation14 + $0x54] sm:$0xf0]  ;;  %v4689_v37 = vld [vmem:[#allocation14 + $0xd0] sm:$0xf] }
  0x6e   : > { %v788_v8 = vmul.f32 256.0, %v7626_v7  ;;  %v4702_v36 = vor.u32 %v6179_v30, %v4699_v33  ;;  %v6178_v38 = vld [vmem:[#allocation14 + $0xd4] sm:$0xf0]  ;;  %v6161_v39 = vld [vmem:[#allocation14 + $0x54] sm:$0xf]  ;;  %v4626_v40 = vor.u32 %v6162_v35, %v4625_v34  ;;  %vm792_vm0 = vweird.f32 %v7626_v7  ;;  %s8066_s1 = sld [smem:[#allocation48_spill]] }
  0x6f   : > { %1069 = vmatpush.bf16.msra.mxu0 %v4634_v26  ;;  %v4627_v41 = vld [vmem:[#allocation14 + $0x58] sm:$0xf0]  ;;  %v6177_v42 = vld [vmem:[#allocation14 + $0xd4] sm:$0xf]  ;;  %1097 = vmatpush.bf16.msra.mxu2 %v4638_v32  ;;  %v4690_v44 = vor.u32 %v6178_v38, %v4689_v37  ;;  %v4617_v46 = vld [vmem:[#allocation14 + $0x40] sm:$0xf] }
  0x70   : > { %v789_v9 = vsub.f32 1.0, %v788_v8  ;;  %v4691_v43 = vld [vmem:[#allocation14 + $0xd8] sm:$0xf0]  ;;  %1083 = vmatpush.bf16.msra.mxu1 %v4698_v27  ;;  %v4630_v45 = vor.u32 %v6161_v39, %v4627_v41  ;;  %v6160_v47 = vld [vmem:[#allocation14 + $0x44] sm:$0xf0]  ;;  %s8067_s27 = sld [smem:[#allocation49_spill]] }
  0x71   : > { %785 = vadd.xlane.f32.xlu0 %v784_v5  ;;  %v4681_v48 = vld [vmem:[#allocation14 + $0xc0] sm:$0xf]  ;;  %1111 = vmatpush.bf16.msra.mxu3 %v4702_v36  ;;  %v4694_v50 = vor.u32 %v6177_v42, %v4691_v43  ;;  %v6176_v51 = vld [vmem:[#allocation14 + $0xc4] sm:$0xf0]  ;;  %v6159_v52 = vld [vmem:[#allocation14 + $0x44] sm:$0xf]  ;;  %v4618_v56 = vor.u32 %v6160_v47, %v4617_v46 }
  0x72   : > { %v790_v31 = vmul.f32 %v7626_v7, %v789_v9  ;;  %v4619_v53 = vld [vmem:[#allocation14 + $0x48] sm:$0xf0]  ;;  %v6175_v54 = vld [vmem:[#allocation14 + $0xc4] sm:$0xf]  ;;  %v4682_v57 = vor.u32 %v6176_v51, %v4681_v48  ;;  %v4609_v13 = vld [vmem:[#allocation14 + $0x30] sm:$0xf] }
  0x73   : > { %v4683_v55 = vld [vmem:[#allocation14 + $0xc8] sm:$0xf0]  ;;  %1070 = vmatpush.bf16.msra.mxu0 %v4626_v40  ;;  %1098 = vmatpush.bf16.msra.mxu2 %v4630_v45  ;;  %v4622_v58 = vor.u32 %v6159_v52, %v4619_v53  ;;  %v6158_v14 = vld [vmem:[#allocation14 + $0x34] sm:$0xf0]  ;;  %v4673_v15 = vld [vmem:[#allocation14 + $0xb0] sm:$0xf] }
  0x74   : > { %v791_v49 = vadd.f32 %v7626_v7, %v790_v31  ;;  %1084 = vmatpush.bf16.msra.mxu1 %v4690_v44  ;;  %v4686_v60 = vor.u32 %v6175_v54, %v4683_v55  ;;  %v4610_v16 = vor.u32 %v6158_v14, %v4609_v13  ;;  %v6174_v17 = vld [vmem:[#allocation14 + $0xb4] sm:$0xf0]  ;;  %v6157_v18 = vld [vmem:[#allocation14 + $0x34] sm:$0xf]  ;;  %v4611_v19 = vld [vmem:[#allocation14 + $0x38] sm:$0xf0] }
  0x75   : > { %1112 = vmatpush.bf16.msra.mxu3 %v4694_v50  ;;  %v4614_v20 = vor.u32 %v6157_v18, %v4611_v19  ;;  %v6173_v21 = vld [vmem:[#allocation14 + $0xb4] sm:$0xf]  ;;  %v4601_v23 = vld [vmem:[#allocation14 + $0x20] sm:$0xf]  ;;  %v6156_v24 = vld [vmem:[#allocation14 + $0x24] sm:$0xf0] }
  0x76   : > { %v7633_v59 = vsel %vm792_vm0, %v7626_v7, %v791_v49  ;;  %v4665_v25 = vld [vmem:[#allocation14 + $0xa0] sm:$0xf]  ;;  %v4602_v26 = vor.u32 %v6156_v24, %v4601_v23  ;;  %v6172_v27 = vld [vmem:[#allocation14 + $0xa4] sm:$0xf0]  ;;  %v6155_v28 = vld [vmem:[#allocation14 + $0x24] sm:$0xf] }
  0x77   : > { %1071 = vmatpush.bf16.msra.mxu0 %v4618_v56  ;;  %1099 = vmatpush.bf16.msra.mxu2 %v4622_v58  ;;  %v4603_v29 = vld [vmem:[#allocation14 + $0x28] sm:$0xf0]  ;;  %v4666_v30 = vor.u32 %v6172_v27, %v4665_v25  ;;  %v6171_v32 = vld [vmem:[#allocation14 + $0xa4] sm:$0xf]  ;;  %v4593_v35 = vld [vmem:[#allocation14 + $0x10] sm:$0xf] }
  0x78   : > { %1085 = vmatpush.bf16.msra.mxu1 %v4682_v57  ;;  %v4606_v31 = vor.u32 %v6155_v28, %v4603_v29  ;;  %v4667_v33 = vld [vmem:[#allocation14 + $0xa8] sm:$0xf0]  ;;  %v6154_v36 = vld [vmem:[#allocation14 + $0x14] sm:$0xf0]  ;;  %v4657_v37 = vld [vmem:[#allocation14 + $0x90] sm:$0xf] }
  0x79   : > { %1113 = vmatpush.bf16.msra.mxu3 %v4686_v60  ;;  %v4670_v34 = vor.u32 %v6171_v32, %v4667_v33  ;;  %v4594_v38 = vor.u32 %v6154_v36, %v4593_v35  ;;  %v6170_v39 = vld [vmem:[#allocation14 + $0x94] sm:$0xf0]  ;;  %v6153_v40 = vld [vmem:[#allocation14 + $0x14] sm:$0xf]  ;;  %v4595_v41 = vld [vmem:[#allocation14 + $0x18] sm:$0xf0] }
  0x7a   : > { %v4658_v42 = vor.u32 %v6170_v39, %v4657_v37  ;;  %v4598_v43 = vor.u32 %v6153_v40, %v4595_v41  ;;  %v6169_v44 = vld [vmem:[#allocation14 + $0x94] sm:$0xf]  ;;  %v4659_v45 = vld [vmem:[#allocation14 + $0x98] sm:$0xf0]  ;;  %v4585_v47 = vld [vmem:[#allocation14] sm:$0xf] }
  0x7b   : > { %1072 = vmatpush.bf16.msra.mxu0 %v4610_v16  ;;  %1100 = vmatpush.bf16.msra.mxu2 %v4614_v20  ;;  %v4662_v46 = vor.u32 %v6169_v44, %v4659_v45  ;;  %v6152_v48 = vld [vmem:[#allocation14 + $0x4] sm:$0xf0]  ;;  %v4649_v49 = vld [vmem:[#allocation14 + $0x80] sm:$0xf]  ;;  %v6151_v52 = vld [vmem:[#allocation14 + $0x4] sm:$0xf] }
  0x7c   : > { %v4586_v50 = vor.u32 %v6152_v48, %v4585_v47  ;;  %v6168_v51 = vld [vmem:[#allocation14 + $0x84] sm:$0xf0]  ;;  %v4587_v53 = vld [vmem:[#allocation14 + $0x8] sm:$0xf0]  ;;  %v6167_v56 = vld [vmem:[#allocation14 + $0x84] sm:$0xf] }
  0x7d   : > { %v4650_v54 = vor.u32 %v6168_v51, %v4649_v49  ;;  %v4590_v55 = vor.u32 %v6151_v52, %v4587_v53  ;;  %v4651_v57 = vld [vmem:[#allocation14 + $0x88] sm:$0xf0]  ;;  %v4769_v58 = vld [vmem:[#allocation15 + $0x70] sm:$0xf]  ;;  %v4761_v13 = vld [vmem:[#allocation15 + $0x60] sm:$0xf] }
  0x7e   : > { %v4654_v60 = vor.u32 %v6167_v56, %v4651_v57  ;;  %v6196_v14 = vld [vmem:[#allocation15 + $0x64] sm:$0xf0]  ;;  %v6195_v19 = vld [vmem:[#allocation15 + $0x64] sm:$0xf]  ;;  %v4763_v20 = vld [vmem:[#allocation15 + $0x68] sm:$0xf0] }
  0x7f   : > { %1073 = vmatpush.bf16.msra.mxu0 %v4602_v26  ;;  %1101 = vmatpush.bf16.msra.mxu2 %v4606_v31  ;;  %v4762_v16 = vor.u32 %v6196_v14, %v4761_v13  ;;  %v6212_v18 = vld [vmem:[#allocation15 + $0xe4] sm:$0xf0]  ;;  %v4753_v24 = vld [vmem:[#allocation15 + $0x50] sm:$0xf]  ;;  %v6194_v25 = vld [vmem:[#allocation15 + $0x54] sm:$0xf0] }
  0x80   : > { %v4817_v26 = vld [vmem:[#allocation15 + $0xd0] sm:$0xf]  ;;  %v4754_v27 = vor.u32 %v6194_v25, %v4753_v24  ;;  %v6210_v28 = vld [vmem:[#allocation15 + $0xd4] sm:$0xf0]  ;;  %v6193_v29 = vld [vmem:[#allocation15 + $0x54] sm:$0xf] }
  0x81   : > { %v4818_v31 = vor.u32 %v6210_v28, %v4817_v26  ;;  %v6209_v33 = vld [vmem:[#allocation15 + $0xd4] sm:$0xf]  ;;  %v4745_v36 = vld [vmem:[#allocation15 + $0x40] sm:$0xf]  ;;  %v6192_v37 = vld [vmem:[#allocation15 + $0x44] sm:$0xf0] }
  0x82   : > { %v4746_v39 = vor.u32 %v6192_v37, %v4745_v36  ;;  %v6208_v40 = vld [vmem:[#allocation15 + $0xc4] sm:$0xf0]  ;;  %v6191_v41 = vld [vmem:[#allocation15 + $0x44] sm:$0xf]  ;;  %v4737_v48 = vld [vmem:[#allocation15 + $0x30] sm:$0xf] }
  0x83   : > { %1074 = vmatpush.bf16.msra.mxu0 %v4594_v38  ;;  %1102 = vmatpush.bf16.msra.mxu2 %v4598_v43  ;;  %v4809_v38 = vld [vmem:[#allocation15 + $0xc0] sm:$0xf]  ;;  %v6207_v45 = vld [vmem:[#allocation15 + $0xc4] sm:$0xf]  ;;  %v6190_v49 = vld [vmem:[#allocation15 + $0x34] sm:$0xf0] }
  0x84   : > { %v4810_v43 = vor.u32 %v6208_v40, %v4809_v38  ;;  %v4738_v51 = vor.u32 %v6190_v49, %v4737_v48  ;;  %v6206_v52 = vld [vmem:[#allocation15 + $0xb4] sm:$0xf0]  ;;  %v6189_v53 = vld [vmem:[#allocation15 + $0x34] sm:$0xf]  ;;  %v6203_v14 = vld [vmem:[#allocation15 + $0xa4] sm:$0xf] }
  0x85   : > { %v6205_v57 = vld [vmem:[#allocation15 + $0xb4] sm:$0xf]  ;;  %v4787_v25 = vld [vmem:[#allocation15 + $0x98] sm:$0xf0]  ;;  %v4715_v36 = vld [vmem:[#allocation15 + $0x8] sm:$0xf0] }
  0x86   : > { %v6201_v24 = vld [vmem:[#allocation15 + $0x94] sm:$0xf]  ;;  %s7958_s22 = scalar_lea.vmem [#allocation27], %s4569_s20  ;;  %s8068_s19 = sld [smem:[#allocation36_spill]] }
  0x87   : > { %1075 = vmatpush.bf16.msra.mxu0 %v4586_v50  ;;  %1103 = vmatpush.bf16.msra.mxu2 %v4590_v55  ;;  %v4801_v50 = vld [vmem:[#allocation15 + $0xb0] sm:$0xf]  ;;  %s8069_s5 = sld [smem:[#allocation50_spill]]  ;;  %s4329_s3 = scalar_lea.sflag [#allocation8], %s7574_s10 }
  0x88   : > { %v4802_v55 = vor.u32 %v6206_v52, %v4801_v50  ;;  %v780_v50 = vld [vmem:[#allocation11] sm:$0x3] }
  0x8c   : > { %s6541_s20 = sshll.u32 %s8068_s19, 5 }
  0x8d   : > { %s4343_s8 = scalar_lea.hbm %s8069_s5, %s6541_s20  ;;  %s7202_s14 = scalar_lea.hbm %s8069_s5, 64 }
  0x8e   : > { %s4346_s21 = sshll.u32 %s4343_s8, 4  ;;  %s4347_s21 = int_to_ptr.hbm [resolvable:$true] %s4346_s21 }
  0xdc   : > { %v783_v61 = vpop.xlane.xlu0 %782 }
  0xdd   : > { %v794_v62 = vmul.f32 %v7633_v59, %v783_v61  ;;  %v6198_v61 = vld [vmem:[#allocation15 + $0x74] sm:$0xf0] }
  0xdf   : > { %v7637_v63 = vsub.f32 %v7611_v0, %v794_v62  ;;  %v7640_v2 = vsub.f32 %v7614_v1, %v794_v62  ;;  %v4833_v62 = vld [vmem:[#allocation15 + $0xf0] sm:$0xf] }
  0xe1   : > { %v800_v5 = vmul.f32 %v7637_v63, %v7637_v63  ;;  %v801_v6 = vmul.f32 %v7640_v2, %v7640_v2 }
  0xe3   : > { %v804_v7 = vadd.f32 %v801_v6, %v800_v5  ;;  %v6214_v5 = vld [vmem:[#allocation15 + $0xf4] sm:$0xf0]  ;;  %v4770_v6 = vor.u32 %v6198_v61, %v4769_v58  ;;  %v4803_v58 = vld [vmem:[#allocation15 + $0xb8] sm:$0xf0] }
  0xe4   : > { %v786_v8 = vpop.xlane.xlu0 %785 }
  0xe5   : > { %v795_v9 = vmul.f32 %v7633_v59, %v786_v8  ;;  %805 = vadd.xlane.f32.xlu1 %v804_v7  ;;  %v4834_v7 = vor.u32 %v6214_v5, %v4833_v62  ;;  %v6197_v8 = vld [vmem:[#allocation15 + $0x74] sm:$0xf]  ;;  %1326 = vmatpush.bf16.msrb.mxu0 %v4770_v6  ;;  %v4729_v62 = vld [vmem:[#allocation15 + $0x20] sm:$0xf]  ;;  %v6188_v5 = vld [vmem:[#allocation15 + $0x24] sm:$0xf0] }
  0xe6   : > { %v4793_v6 = vld [vmem:[#allocation15 + $0xa0] sm:$0xf] }
  0xe7   : > { %v7648_v10 = vsub.f32 %v7619_v3, %v795_v9  ;;  %v7651_v0 = vsub.f32 %v7622_v4, %v795_v9  ;;  %v4674_v3 = vor.u32 %v6174_v17, %v4673_v15  ;;  %v4675_v4 = vld [vmem:[#allocation14 + $0xb8] sm:$0xf0]  ;;  %v4825_v17 = vld [vmem:[#allocation15 + $0xe0] sm:$0xf] }
  0xe8   : > { %v4678_v22 = vor.u32 %v6173_v21, %v4675_v4  ;;  %v4771_v9 = vld [vmem:[#allocation15 + $0x78] sm:$0xf0]  ;;  %v6211_v21 = vld [vmem:[#allocation15 + $0xe4] sm:$0xf]  ;;  %v4827_v4 = vld [vmem:[#allocation15 + $0xe8] sm:$0xf0] }
  0xe9   : > { %v802_v1 = vmul.f32 %v7648_v10, %v7648_v10  ;;  %v803_v11 = vmul.f32 %v7651_v0, %v7651_v0  ;;  %1086 = vmatpush.bf16.msra.mxu1 %v4674_v3  ;;  %v4826_v3 = vor.u32 %v6212_v18, %v4825_v17  ;;  %v4830_v23 = vor.u32 %v6211_v21, %v4827_v4  ;;  %v4721_v18 = vld [vmem:[#allocation15 + $0x10] sm:$0xf]  ;;  %v6185_v21 = vld [vmem:[#allocation15 + $0x14] sm:$0xf] }
  0xea   : > { %1114 = vmatpush.bf16.msra.mxu3 %v4678_v22  ;;  %v4766_v22 = vor.u32 %v6195_v19, %v4763_v20  ;;  %1327 = vmatpush.bf16.msrb.mxu0 %v4762_v16  ;;  %v6186_v19 = vld [vmem:[#allocation15 + $0x14] sm:$0xf0] }
  0xeb   : > { %v807_v12 = vadd.f32 %v803_v11, %v802_v1  ;;  %v6213_v1 = vld [vmem:[#allocation15 + $0xf4] sm:$0xf]  ;;  %v4774_v11 = vor.u32 %v6197_v8, %v4771_v9  ;;  %v4730_v8 = vor.u32 %v6188_v5, %v4729_v62  ;;  %v6204_v9 = vld [vmem:[#allocation15 + $0xa4] sm:$0xf0]  ;;  %v6202_v20 = vld [vmem:[#allocation15 + $0x94] sm:$0xf0]  ;;  %v4722_v4 = vor.u32 %v6186_v19, %v4721_v18 }
  0xec   : > { %v4905_v18 = vld [vmem:[#allocation12 + $0x70] sm:$0xf]  ;;  %v6232_v19 = vld [vmem:[#allocation12 + $0x74] sm:$0xf0] }
  0xed   : > { %808 = vadd.xlane.f32.xlu1 %v807_v12  ;;  %1087 = vmatpush.bf16.msra.mxu1 %v4666_v30  ;;  %v4835_v12 = vld [vmem:[#allocation15 + $0xf8] sm:$0xf0] }
  0xee   : > { %1115 = vmatpush.bf16.msra.mxu3 %v4670_v34  ;;  %v4838_v15 = vor.u32 %v6213_v1, %v4835_v12  ;;  %1354 = vmatpush.bf16.msrb.mxu2 %v4774_v11  ;;  %v4755_v30 = vld [vmem:[#allocation15 + $0x58] sm:$0xf0]  ;;  %v6187_v1 = vld [vmem:[#allocation15 + $0x24] sm:$0xf]  ;;  %v4731_v11 = vld [vmem:[#allocation15 + $0x28] sm:$0xf0]  ;;  %v4794_v12 = vor.u32 %v6204_v9, %v4793_v6 }
  0xef   : > { %v4758_v32 = vor.u32 %v6193_v29, %v4755_v30  ;;  %v4819_v34 = vld [vmem:[#allocation15 + $0xd8] sm:$0xf0]  ;;  %1328 = vmatpush.bf16.msrb.mxu0 %v4754_v27  ;;  %v4734_v13 = vor.u32 %v6187_v1, %v4731_v11  ;;  %v4790_v27 = vor.u32 %v6201_v24, %v4787_v25  ;;  %v4713_v30 = vld [vmem:[#allocation15] sm:$0xf] }
  0xf0   : > { %v4822_v35 = vor.u32 %v6209_v33, %v4819_v34  ;;  %v6200_v34 = vld [vmem:[#allocation15 + $0x84] sm:$0xf0] }
  0xf1   : > { %1088 = vmatpush.bf16.msra.mxu1 %v4658_v42  ;;  %v4747_v42 = vld [vmem:[#allocation15 + $0x48] sm:$0xf0] }
  0xf2   : > { %1116 = vmatpush.bf16.msra.mxu3 %v4662_v46  ;;  %1355 = vmatpush.bf16.msrb.mxu2 %v4766_v22  ;;  %v4750_v44 = vor.u32 %v6191_v41, %v4747_v42  ;;  %v4811_v46 = vld [vmem:[#allocation15 + $0xc8] sm:$0xf0]  ;;  %v6199_v41 = vld [vmem:[#allocation15 + $0x84] sm:$0xf] }
  0xf3   : > { %v4814_v47 = vor.u32 %v6207_v45, %v4811_v46  ;;  %1329 = vmatpush.bf16.msrb.mxu0 %v4746_v39  ;;  %v4779_v42 = vld [vmem:[#allocation15 + $0x88] sm:$0xf0] }
  0xf5   : > { %1089 = vmatpush.bf16.msra.mxu1 %v4650_v54  ;;  %v4739_v54 = vld [vmem:[#allocation15 + $0x38] sm:$0xf0] }
  0xf6   : > { %1117 = vmatpush.bf16.msra.mxu3 %v4654_v60  ;;  %1356 = vmatpush.bf16.msrb.mxu2 %v4758_v32  ;;  %v4742_v56 = vor.u32 %v6189_v53, %v4739_v54  ;;  %v4806_v60 = vor.u32 %v6205_v57, %v4803_v58  ;;  %v4777_v32 = vld [vmem:[#allocation15 + $0x80] sm:$0xf]  ;;  %v848_v57 = vperm.slane %v780_v50, 0  ;;  %v849_v58 = vperm.slane %v780_v50, 1  ;;  %v6243_v50 = vld [vmem:[#allocation12 + $0xd4] sm:$0xf] }
  0xf7   : > { %1330 = vmatpush.bf16.msrb.mxu0 %v4738_v51  ;;  %v4778_v39 = vor.u32 %v6200_v34, %v4777_v32  ;;  %v4961_v34 = vld [vmem:[#allocation12 + $0xe0] sm:$0xf] }
  0xf9   : > { %1340 = vmatpush.bf16.msrb.mxu1 %v4834_v7 }
  0xfa   : > { %1368 = vmatpush.bf16.msrb.mxu3 %v4838_v15  ;;  %1357 = vmatpush.bf16.msrb.mxu2 %v4750_v44  ;;  %v4795_v15 = vld [vmem:[#allocation15 + $0xa8] sm:$0xf0]  ;;  %v4782_v44 = vor.u32 %v6199_v41, %v4779_v42  ;;  %v4889_v42 = vld [vmem:[#allocation12 + $0x50] sm:$0xf] }
  0xfb   : > { %v4798_v17 = vor.u32 %v6203_v14, %v4795_v15  ;;  %1331 = vmatpush.bf16.msrb.mxu0 %v4730_v8 }
  0xfd   : > { %1341 = vmatpush.bf16.msrb.mxu1 %v4826_v3  ;;  %v4785_v3 = vld [vmem:[#allocation15 + $0x90] sm:$0xf] }
  0xfe   : > { %1369 = vmatpush.bf16.msrb.mxu3 %v4830_v23  ;;  %1358 = vmatpush.bf16.msrb.mxu2 %v4742_v56  ;;  %v4786_v22 = vor.u32 %v6202_v20, %v4785_v3  ;;  %v4723_v23 = vld [vmem:[#allocation15 + $0x18] sm:$0xf0]  ;;  %v4969_v3 = vld [vmem:[#allocation12 + $0xf0] sm:$0xf]  ;;  %v6248_v20 = vld [vmem:[#allocation12 + $0xf4] sm:$0xf0] }
  0xff   : > { %v4726_v26 = vor.u32 %v6185_v21, %v4723_v23  ;;  %1332 = vmatpush.bf16.msrb.mxu0 %v4722_v4  ;;  %v6231_v21 = vld [vmem:[#allocation12 + $0x74] sm:$0xf]  ;;  %v4907_v4 = vld [vmem:[#allocation12 + $0x78] sm:$0xf0] }
 0x100   : > { %v4910_v32 = vor.u32 %v6231_v21, %v4907_v4  ;;  %v4929_v4 = vld [vmem:[#allocation12 + $0xa0] sm:$0xf] }
 0x101   : > { %1342 = vmatpush.bf16.msrb.mxu1 %v4818_v31  ;;  %v6184_v31 = vld [vmem:[#allocation15 + $0x4] sm:$0xf0] }
 0x102   : > { %1370 = vmatpush.bf16.msrb.mxu3 %v4822_v35  ;;  %1359 = vmatpush.bf16.msrb.mxu2 %v4734_v13  ;;  %v4714_v33 = vor.u32 %v6184_v31, %v4713_v30  ;;  %v6183_v35 = vld [vmem:[#allocation15 + $0x4] sm:$0xf]  ;;  %v4897_v30 = vld [vmem:[#allocation12 + $0x60] sm:$0xf]  ;;  %v6230_v31 = vld [vmem:[#allocation12 + $0x64] sm:$0xf0] }
 0x103   : > { %v4718_v40 = vor.u32 %v6183_v35, %v4715_v36  ;;  %v6246_v35 = vld [vmem:[#allocation12 + $0xe4] sm:$0xf0]  ;;  %v6229_v36 = vld [vmem:[#allocation12 + $0x64] sm:$0xf] }
 0x104   : > { %1333 = vmatpush.bf16.msrb.mxu0 %v4714_v33  ;;  %v4962_v41 = vor.u32 %v6246_v35, %v4961_v34  ;;  %v6236_v34 = vld [vmem:[#allocation12 + $0x94] sm:$0xf0]  ;;  %v6219_v35 = vld [vmem:[#allocation12 + $0x14] sm:$0xf] }
 0x105   : > { %1343 = vmatpush.bf16.msrb.mxu1 %v4810_v43 }
 0x106   : > { %1371 = vmatpush.bf16.msrb.mxu3 %v4814_v47  ;;  %1360 = vmatpush.bf16.msrb.mxu2 %v4726_v26  ;;  %v779_v47 = vld [vmem:[#allocation9] sm:$0x3] }
 0x107   : > { %v839_v53 = vperm.slane %v779_v47, 0  ;;  %v840_v54 = vperm.slane %v779_v47, 1  ;;  %v4971_v26 = vld [vmem:[#allocation12 + $0xf8] sm:$0xf0]  ;;  %v6244_v47 = vld [vmem:[#allocation12 + $0xd4] sm:$0xf0] }
 0x109   : > { %1344 = vmatpush.bf16.msrb.mxu1 %v4802_v55 }
 0x10a   : > { %1372 = vmatpush.bf16.msrb.mxu3 %v4806_v60  ;;  %1361 = vmatpush.bf16.msrb.mxu2 %v4718_v40  ;;  %v4898_v40 = vor.u32 %v6230_v31, %v4897_v30  ;;  %v6220_v30 = vld [vmem:[#allocation12 + $0x14] sm:$0xf0] }
 0x10d   : > { %1345 = vmatpush.bf16.msrb.mxu1 %v4794_v12 }
 0x10e   : > { %1373 = vmatpush.bf16.msrb.mxu3 %v4798_v17 }
 0x111   : > { %1346 = vmatpush.bf16.msrb.mxu1 %v4786_v22 }
 0x112   : > { %1374 = vmatpush.bf16.msrb.mxu3 %v4790_v27 }
 0x115   : > { %1347 = vmatpush.bf16.msrb.mxu1 %v4778_v39  ;;  %v4963_v39 = vld [vmem:[#allocation12 + $0xe8] sm:$0xf0] }
 0x116   : > { %1375 = vmatpush.bf16.msrb.mxu3 %v4782_v44 }
 0x158   : > { %v806_v61 = vpop.xlane.xlu1 %805 }
 0x159   : > { %v810_v7 = vmul.f32 %v806_v61, %v7633_v59 }
 0x15b   : > { %v812_v16 = vadd.f32 1e-05, %v810_v7 }
 0x15d   : > { %6736 = vrsqrt.f32 %v812_v16  ;;  %vm820_vm2 = vweird.f32 %v812_v16 }
 0x160   : > { %v809_v28 = vpop.xlane.xlu1 %808 }
 0x161   : > { %v811_v29 = vmul.f32 %v809_v28, %v7633_v59  ;;  %v4906_v28 = vor.u32 %v6232_v19, %v4905_v18  ;;  %v4865_v19 = vld [vmem:[#allocation12 + $0x20] sm:$0xf] }
 0x163   : > { %v6737_v37 = vpop.eup %6736  ;;  %v813_v38 = vadd.f32 1e-05, %v811_v29  ;;  %v4970_v29 = vor.u32 %v6248_v20, %v4969_v3  ;;  %v6222_v3 = vld [vmem:[#allocation12 + $0x24] sm:$0xf0] }
 0x164   : > { %v815_v43 = vmul.f32 %v6737_v37, %v812_v16  ;;  %vm821_vm1 = vweird.f32 %v6737_v37 }
 0x165   : > { %6738 = vrsqrt.f32 %v813_v38  ;;  %vm822_vm3 = vmor %vm820_vm2, %vm821_vm1  ;;  %vm830_vm5 = vweird.f32 %v813_v38 }
 0x166   : > { %v816_v45 = vmul.f32 %v6737_v37, %v815_v43  ;;  %v6228_v43 = vld [vmem:[#allocation12 + $0x54] sm:$0xf0] }
 0x168   : > { %v817_v46 = vmul.f32 0.5, %v816_v45 }
 0x16a   : > { %v818_v48 = vsub.f32 1.5, %v817_v46  ;;  %v4953_v46 = vld [vmem:[#allocation12 + $0xd0] sm:$0xf] }
 0x16b   : > { %v6739_v49 = vpop.eup %6738 }
 0x16c   : > { %v819_v51 = vmul.f32 %v6737_v37, %v818_v48  ;;  %v825_v52 = vmul.f32 %v6739_v49, %v813_v38  ;;  %vm831_vm4 = vweird.f32 %v6739_v49  ;;  %v6245_v38 = vld [vmem:[#allocation12 + $0xe4] sm:$0xf]  ;;  %v6227_v48 = vld [vmem:[#allocation12 + $0x54] sm:$0xf] }
 0x16d   : > { %vm832_vm6 = vmor %vm830_vm5, %vm831_vm4  ;;  %v4966_v45 = vor.u32 %v6245_v38, %v4963_v39  ;;  %v4923_v38 = vld [vmem:[#allocation12 + $0x98] sm:$0xf0]  ;;  %v4849_v39 = vld [vmem:[#allocation12] sm:$0xf] }
 0x16e   : > { %v823_v55 = vsel %vm822_vm3, %v6737_v37, %v819_v51  ;;  %v826_v56 = vmul.f32 %v6739_v49, %v825_v52  ;;  %v4899_v37 = vld [vmem:[#allocation12 + $0x68] sm:$0xf0]  ;;  %v4955_v51 = vld [vmem:[#allocation12 + $0xd8] sm:$0xf0]  ;;  %v4890_v52 = vor.u32 %v6228_v43, %v4889_v42  ;;  %v4913_v43 = vld [vmem:[#allocation12 + $0x80] sm:$0xf] }
 0x16f   : > { %v834_v60 = vmul.f32 %v823_v55, %v7637_v63  ;;  %v835_v61 = vmul.f32 %v823_v55, %v7640_v2  ;;  %v4902_v44 = vor.u32 %v6229_v36, %v4899_v37  ;;  %v6226_v55 = vld [vmem:[#allocation12 + $0x44] sm:$0xf0]  ;;  %v4859_v36 = vld [vmem:[#allocation12 + $0x18] sm:$0xf0]  ;;  %v6235_v37 = vld [vmem:[#allocation12 + $0x94] sm:$0xf] }
 0x170   : > { %v827_v62 = vmul.f32 0.5, %v826_v56  ;;  %v4926_v42 = vor.u32 %v6235_v37, %v4923_v38 }
 0x171   : > { %v843_v5 = vmul.f32 %v839_v53, %v834_v60  ;;  %v844_v6 = vmul.f32 %v840_v54, %v835_v61  ;;  %v6242_v60 = vld [vmem:[#allocation12 + $0xc4] sm:$0xf0]  ;;  %v6225_v61 = vld [vmem:[#allocation12 + $0x44] sm:$0xf] }
 0x172   : > { %v828_v7 = vsub.f32 1.5, %v827_v62  ;;  %v4883_v62 = vld [vmem:[#allocation12 + $0x48] sm:$0xf0] }
 0x173   : > { %v852_v8 = vadd.f32 %v848_v57, %v843_v5  ;;  %v853_v9 = vadd.f32 %v849_v58, %v844_v6  ;;  %v6241_v5 = vld [vmem:[#allocation12 + $0xc4] sm:$0xf]  ;;  %v4947_v6 = vld [vmem:[#allocation12 + $0xc8] sm:$0xf0] }
 0x174   : > { %v829_v1 = vmul.f32 %v6739_v49, %v828_v7 }
 0x175   : > { %v856_v11 = vpack.c.bf16 %v853_v9, %v852_v8  ;;  %v4873_v9 = vld [vmem:[#allocation12 + $0x30] sm:$0xf] }
 0x176   : > { %v833_v12 = vsel %vm832_vm6, %v6739_v49, %v829_v1  ;;  %v4891_v49 = vld [vmem:[#allocation12 + $0x58] sm:$0xf0]  ;;  %v6224_v1 = vld [vmem:[#allocation12 + $0x34] sm:$0xf0] }
 0x177   : > { %v836_v13 = vmul.f32 %v833_v12, %v7648_v10  ;;  %v837_v14 = vmul.f32 %v833_v12, %v7651_v0  ;;  %858 = vst [vmem:[#allocation2] sm:$0xff] %v856_v11  ;;  %v900_v22 = vunpack.c.l.b16 %v856_v11  ;;  %v901_v24 = vunpack.c.h.b16 %v856_v11  ;;  %v6247_v10 = vld [vmem:[#allocation12 + $0xf4] sm:$0xf] }
 0x178   : > { %v4974_v33 = vor.u32 %v6247_v10, %v4971_v26  ;;  %v4894_v56 = vor.u32 %v6227_v48, %v4891_v49  ;;  %v4886_v11 = vor.u32 %v6225_v61, %v4883_v62  ;;  %v4950_v12 = vor.u32 %v6241_v5, %v4947_v6  ;;  %v4931_v10 = vld [vmem:[#allocation12 + $0xa8] sm:$0xf0] }
 0x179   : > { %v845_v63 = vmul.f32 %v839_v53, %v836_v13  ;;  %v846_v15 = vmul.f32 %v840_v54, %v837_v14  ;;  %v4954_v53 = vor.u32 %v6244_v47, %v4953_v46  ;;  %v4881_v54 = vld [vmem:[#allocation12 + $0x40] sm:$0xf]  ;;  %v4937_v13 = vld [vmem:[#allocation12 + $0xb0] sm:$0xf]  ;;  %v6240_v14 = vld [vmem:[#allocation12 + $0xb4] sm:$0xf0]  ;;  %v4866_v26 = vor.u32 %v6222_v3, %v4865_v19 }
 0x17a   : > { %v4882_v7 = vor.u32 %v6226_v55, %v4881_v54  ;;  %v4938_v18 = vor.u32 %v6240_v14, %v4937_v13  ;;  %v4851_v46 = vld [vmem:[#allocation12 + $0x8] sm:$0xf0]  ;;  %v6233_v47 = vld [vmem:[#allocation12 + $0x84] sm:$0xf] }
 0x17b   : > { %v854_v2 = vadd.f32 %v848_v57, %v845_v63  ;;  %v855_v16 = vadd.f32 %v849_v58, %v846_v15  ;;  %v4958_v57 = vor.u32 %v6243_v50, %v4955_v51  ;;  %v4945_v58 = vld [vmem:[#allocation12 + $0xc0] sm:$0xf]  ;;  %v6223_v63 = vld [vmem:[#allocation12 + $0x34] sm:$0xf]  ;;  %v4875_v15 = vld [vmem:[#allocation12 + $0x38] sm:$0xf0] }
 0x17c   : > { %v4946_v8 = vor.u32 %v6242_v60, %v4945_v58  ;;  %v4878_v20 = vor.u32 %v6223_v63, %v4875_v15  ;;  %v4915_v48 = vld [vmem:[#allocation12 + $0x88] sm:$0xf0] }
 0x17d   : > { %v857_v17 = vpack.c.bf16 %v855_v16, %v854_v2  ;;  %v6239_v2 = vld [vmem:[#allocation12 + $0xb4] sm:$0xf]  ;;  %v4939_v16 = vld [vmem:[#allocation12 + $0xb8] sm:$0xf0]  ;;  %v892_v60 = vld [vmem:[%s8064_s30] sm:$0x3] }
 0x17e   : > { %v4942_v21 = vor.u32 %v6239_v2, %v4939_v16  ;;  %v4841_v55 = vld [vmem:[#allocation2] sm:$0xf]  ;;  %v894_v5 = vperm.slane %v892_v60, 0  ;;  %v895_v6 = vperm.slane %v892_v60, 1  ;;  %s4344_s30 = sshll.u32 %s7958_s22, 4  ;;  %s4345_s30 = int_to_ptr.vmem [resolvable:$true] %s4344_s30 }
 0x17f   : > { %859 = vst [vmem:[#allocation2 + $0x8] sm:$0xff] %v857_v17  ;;  %v902_v23 = vunpack.c.l.b16 %v857_v17  ;;  %v903_v25 = vunpack.c.h.b16 %v857_v17  ;;  %v4874_v17 = vor.u32 %v6224_v1, %v4873_v9 }
 0x181   : > { %v7663_v0 = vpack.c.b16 %v902_v23, %v900_v22  ;;  %v7665_v27 = vpack.c.b16 %v903_v25, %v901_v24  ;;  %v6238_v22 = vld [vmem:[#allocation12 + $0xa4] sm:$0xf0]  ;;  %v6221_v23 = vld [vmem:[#allocation12 + $0x24] sm:$0xf]  ;;  %v4867_v24 = vld [vmem:[#allocation12 + $0x28] sm:$0xf0] }
 0x182   : > { %v6237_v25 = vld [vmem:[#allocation12 + $0xa4] sm:$0xf]  ;;  %v4870_v31 = vor.u32 %v6221_v23, %v4867_v24 }
 0x183   : > { %1076 = vmatmul.bf16.vlgmr.msra.gmra.mxu0 %v7663_v0  ;;  %1090 = vmatmul.bf16.vlgmr.msra.gmra.mxu1 %v7665_v27 }
 0x184   : > { %1104 = vmatmul.bf16.vlgmr.msra.gmra.mxu2 %v7663_v0  ;;  %1118 = vmatmul.bf16.vlgmr.msra.gmra.mxu3 %v7665_v27 }
 0x185   : > { %1608 = vmatpush.bf16.msra.mxu0 %v4906_v28  ;;  %1622 = vmatpush.bf16.msra.mxu1 %v4970_v29  ;;  %v4930_v28 = vor.u32 %v6238_v22, %v4929_v4  ;;  %v4857_v29 = vld [vmem:[#allocation12 + $0x10] sm:$0xf] }
 0x186   : > { %1636 = vmatpush.bf16.msra.mxu2 %v4910_v32  ;;  %1650 = vmatpush.bf16.msra.mxu3 %v4974_v33  ;;  %v4934_v32 = vor.u32 %v6237_v25, %v4931_v10  ;;  %v4921_v33 = vld [vmem:[#allocation12 + $0x90] sm:$0xf]  ;;  %v4843_v54 = vld [vmem:[#allocation2 + $0x8] sm:$0xf0] }
 0x189   : > { %1609 = vmatpush.bf16.msra.mxu0 %v4898_v40  ;;  %1623 = vmatpush.bf16.msra.mxu1 %v4962_v41  ;;  %v6218_v40 = vld [vmem:[#allocation12 + $0x4] sm:$0xf0]  ;;  %v4862_v41 = vor.u32 %v6219_v35, %v4859_v36 }
 0x18a   : > { %1637 = vmatpush.bf16.msra.mxu2 %v4902_v44  ;;  %1651 = vmatpush.bf16.msra.mxu3 %v4966_v45  ;;  %v6234_v44 = vld [vmem:[#allocation12 + $0x84] sm:$0xf0]  ;;  %v6217_v45 = vld [vmem:[#allocation12 + $0x4] sm:$0xf]  ;;  %v4850_v49 = vor.u32 %v6218_v40, %v4849_v39 }
 0x18b   : > { %v4914_v50 = vor.u32 %v6234_v44, %v4913_v43  ;;  %v4854_v51 = vor.u32 %v6217_v45, %v4851_v46  ;;  %v1432_v45 = vld [vmem:[%s8065_s17] sm:$0x3]  ;;  %s7196_s17 = sshra.s32 %s4347_s21, 4  ;;  %s7197_s17 = int_to_ptr.hbm [resolvable:$true] %s7196_s17 }
 0x18c   : > { %v1435_v46 = vperm.slane %v1432_v45, 1  ;;  %s7198_s7 = scalar_lea.hbm %s7197_s17, 32  ;;  %p7203_p10 = scmp.lt.s32.totalorder %s7197_s17, %s8069_s5 }
 0x18d   : > { %1610 = vmatpush.bf16.msra.mxu0 %v4890_v52  ;;  %1624 = vmatpush.bf16.msra.mxu1 %v4954_v53  ;;  %v4918_v52 = vor.u32 %v6233_v47, %v4915_v48  ;;  %v6216_v53 = vld [vmem:[#allocation2 + $0x4] sm:$0xf0]  ;;  %v1434_v48 = vperm.slane %v1432_v45, 0  ;;  %p7199_p1 = scmp.ne.s32.totalorder %s7197_s17, %s7198_s7  ;;  %p7204_p11 = scmp.lt.s32.totalorder %s7202_s14, %s7198_s7 }
 0x18e   : > { %1638 = vmatpush.bf16.msra.mxu2 %v4894_v56  ;;  %1652 = vmatpush.bf16.msra.mxu3 %v4958_v57  ;;  %v6215_v56 = vld [vmem:[#allocation2 + $0x4] sm:$0xf]  ;;  %v4842_v57 = vor.u32 %v6216_v53, %v4841_v55 }
 0x18f   : > { %v4846_v58 = vor.u32 %v6215_v56, %v4843_v54  ;;  %p7200_p3 = pnand %p7199_p1, %p7552_p2  ;;  %p7205_p12 = por %p7204_p11, %p7203_p10 }
 0x191   : > { %1611 = vmatpush.bf16.msra.mxu0 %v4882_v7  ;;  %1625 = vmatpush.bf16.msra.mxu1 %v4946_v8  ;;  %p7201_p9 = pneg %p7200_p3 }
 0x192   : > { %1639 = vmatpush.bf16.msra.mxu2 %v4886_v11  ;;  %1653 = vmatpush.bf16.msra.mxu3 %v4950_v12 }
 0x193   : > { %1334 = vmatmul.bf16.vlgmr.msrb.gmra.mxu0 %v7663_v0  ;;  %1348 = vmatmul.bf16.vlgmr.msrb.gmra.mxu1 %v7665_v27  ;;  %p7206_p13 = pnand %p7205_p12, %p7201_p9 }
 0x194   : > { %1362 = vmatmul.bf16.vlgmr.msrb.gmra.mxu2 %v7663_v0  ;;  %1376 = vmatmul.bf16.vlgmr.msrb.gmra.mxu3 %v7665_v27  ;;  %v4858_v0 = vor.u32 %v6220_v30, %v4857_v29  ;;  %v4922_v27 = vor.u32 %v6236_v34, %v4921_v33 }
 0x195   : > { %1612 = vmatpush.bf16.msra.mxu0 %v4874_v17  ;;  %1626 = vmatpush.bf16.msra.mxu1 %v4938_v18  ;;  %v1160_v17 = vld [vmem:[#allocation17] sm:$0x3] }
 0x196   : > { %1640 = vmatpush.bf16.msra.mxu2 %v4878_v20  ;;  %1654 = vmatpush.bf16.msra.mxu3 %v4942_v21  ;;  %v1162_v21 = vperm.slane %v1160_v17, 0  ;;  %v1163_v23 = vperm.slane %v1160_v17, 1 }
 0x199   : > { %1613 = vmatpush.bf16.msra.mxu0 %v4866_v26  ;;  %1627 = vmatpush.bf16.msra.mxu1 %v4930_v28 }
 0x19a   : > { %1641 = vmatpush.bf16.msra.mxu2 %v4870_v31  ;;  %1655 = vmatpush.bf16.msra.mxu3 %v4934_v32 }
 0x19d   : > { %1614 = vmatpush.bf16.msra.mxu0 %v4858_v0  ;;  %1628 = vmatpush.bf16.msra.mxu1 %v4922_v27 }
 0x19e   : > { %1642 = vmatpush.bf16.msra.mxu2 %v4862_v41  ;;  %1656 = vmatpush.bf16.msra.mxu3 %v4926_v42 }
 0x1a1   : > { %1615 = vmatpush.bf16.msra.mxu0 %v4850_v49  ;;  %1629 = vmatpush.bf16.msra.mxu1 %v4914_v50 }
 0x1a2   : > { %1643 = vmatpush.bf16.msra.mxu2 %v4854_v51  ;;  %1657 = vmatpush.bf16.msra.mxu3 %v4918_v52 }
 0x1a4   : > { %1616 = vmatmul.bf16.vlgmr.msra.gmra.mxu0 %v4842_v57  ;;  %1630 = vmatmul.bf16.vlgmr.msra.gmra.mxu1 %v4846_v58 }
 0x1a5   : > { %1644 = vmatmul.bf16.vlgmr.msra.gmra.mxu2 %v4842_v57  ;;  %1658 = vmatmul.bf16.vlgmr.msra.gmra.mxu3 %v4846_v58 }
 0x200   : > { %v1077_v61 = vpop.f32.mrf.mxu0  ;;  %v1091_v62 = vpop.f32.mrf.mxu1 }
 0x201   : > { %v1078_v7 = vadd.f32 %v1077_v61, %v894_v5 }
 0x203   : > { %v1092_v13 = vadd.f32 %v1091_v62, %v1078_v7 }
 0x207   : > { %v1105_v8 = vpop.f32.mrf.mxu2  ;;  %v1119_v9 = vpop.f32.mrf.mxu3 }
 0x208   : > { %v1106_v1 = vadd.f32 %v1105_v8, %v895_v6  ;;  %v1079_v11 = vpop.f32.mrf.mxu0  ;;  %v1093_v12 = vpop.f32.mrf.mxu1 }
 0x209   : > { %v1080_v15 = vadd.f32 %v1079_v11, %v894_v5 }
 0x20a   : > { %v1120_v14 = vadd.f32 %v1119_v9, %v1106_v1 }
 0x20b   : > { %v1094_v3 = vadd.f32 %v1093_v12, %v1080_v15 }
 0x20c   : > { %v1124_v63 = vpack.c.bf16 %v1120_v14, %v1092_v13 }
 0x20e   : > { %1126 = vst [vmem:[#allocation3] sm:$0xff] %v1124_v63 }
 0x20f   : > { %v1107_v2 = vpop.f32.mrf.mxu2  ;;  %v1121_v16 = vpop.f32.mrf.mxu3 }
 0x210   : > { %v1108_v18 = vadd.f32 %v1107_v2, %v895_v6  ;;  %v1335_v19 = vpop.f32.mrf.mxu0  ;;  %v1349_v4 = vpop.f32.mrf.mxu1 }
 0x211   : > { %v1336_v24 = vadd.f32 %v1335_v19, %v1162_v21 }
 0x212   : > { %v1122_v20 = vadd.f32 %v1121_v16, %v1108_v18 }
 0x213   : > { %v1350_v29 = vadd.f32 %v1349_v4, %v1336_v24 }
 0x214   : > { %v1125_v22 = vpack.c.bf16 %v1122_v20, %v1094_v3 }
 0x215   : > { %v4977_v33 = vld [vmem:[#allocation3] sm:$0xf]  ;;  %v6249_v35 = vld [vmem:[#allocation3 + $0x4] sm:$0xf] }
 0x216   : > { %1127 = vst [vmem:[#allocation3 + $0x8] sm:$0xff] %v1125_v22 }
 0x217   : > { %v1363_v25 = vpop.f32.mrf.mxu2  ;;  %v1377_v10 = vpop.f32.mrf.mxu3 }
 0x218   : > { %v1364_v26 = vadd.f32 %v1363_v25, %v1163_v23  ;;  %v1337_v28 = vpop.f32.mrf.mxu0  ;;  %v1351_v32 = vpop.f32.mrf.mxu1 }
 0x219   : > { %v1338_v37 = vadd.f32 %v1337_v28, %v1162_v21 }
 0x21a   : > { %v1378_v30 = vadd.f32 %v1377_v10, %v1364_v26 }
 0x21b   : > { %v1352_v42 = vadd.f32 %v1351_v32, %v1338_v37 }
 0x21c   : > { %v1382_v31 = vpack.c.bf16 %v1378_v30, %v1350_v29 }
 0x21d   : > { %v6250_v34 = vld [vmem:[#allocation3 + $0x4] sm:$0xf0]  ;;  %v4984_v36 = vld [vmem:[#allocation3 + $0x8] sm:$0xf0] }
 0x21e   : > { %1384 = vst [vmem:[#allocation4] sm:$0xff] %v1382_v31  ;;  %v4978_v38 = vor.u32 %v6250_v34, %v4977_v33  ;;  %v4987_v0 = vor.u32 %v6249_v35, %v4984_v36 }
 0x21f   : > { %v1365_v27 = vpop.f32.mrf.mxu2  ;;  %v1379_v39 = vpop.f32.mrf.mxu3 }
 0x220   : > { %v1366_v40 = vadd.f32 %v1365_v27, %v1163_v23  ;;  %1693 = vmatpush.bf16.xpose.msrb.mxu0 %v4978_v38  ;;  %1764 = vmatpush.bf16.xpose.msrb.mxu2 %v4987_v0 }
 0x221   : > { %v1617_v41 = vpop.f32.mrf.mxu0  ;;  %v1631_v47 = vpop.f32.mrf.mxu1 }
 0x222   : > { %v1380_v43 = vadd.f32 %v1379_v39, %v1366_v40  ;;  %v1618_v53 = vadd.f32 %v1617_v41, %v1434_v48 }
 0x224   : > { %v1383_v44 = vpack.c.bf16 %v1380_v43, %v1352_v42  ;;  %v1632_v5 = vadd.f32 %v1631_v47, %v1618_v53  ;;  %v6268_v47 = vld [vmem:[#allocation18 + $0x74] sm:$0xf0] }
 0x225   : > { %v4981_v54 = vld [vmem:[#allocation4] sm:$0xf]  ;;  %v6251_v58 = vld [vmem:[#allocation4 + $0x4] sm:$0xf] }
 0x226   : > { %1385 = vst [vmem:[#allocation4 + $0x8] sm:$0xff] %v1383_v44  ;;  %v1664_v12 = vmul.f32 0.088388346, %v1632_v5 }
 0x228   : > { %v1645_v49 = vpop.f32.mrf.mxu2  ;;  %v1659_v50 = vpop.f32.mrf.mxu3 }
 0x229   : > { %v1646_v51 = vadd.f32 %v1645_v49, %v1435_v46  ;;  %v1619_v52 = vpop.f32.mrf.mxu0  ;;  %v1633_v6 = vpop.f32.mrf.mxu1 }
 0x22a   : > { %v1620_v56 = vadd.f32 %v1619_v52, %v1434_v48  ;;  %v6267_v48 = vld [vmem:[#allocation18 + $0x74] sm:$0xf]  ;;  %v6266_v52 = vld [vmem:[#allocation18 + $0x64] sm:$0xf0] }
 0x22b   : > { %v1660_v55 = vadd.f32 %v1659_v50, %v1646_v51  ;;  %v5053_v50 = vld [vmem:[#allocation18 + $0x78] sm:$0xf0]  ;;  %v5043_v51 = vld [vmem:[#allocation18 + $0x60] sm:$0xf] }
 0x22c   : > { %v1634_v9 = vadd.f32 %v1633_v6, %v1620_v56  ;;  %v5056_v53 = vor.u32 %v6267_v48, %v5053_v50  ;;  %v5115_v56 = vld [vmem:[#allocation18 + $0xf0] sm:$0xf] }
 0x22d   : > { %v6252_v57 = vld [vmem:[#allocation4 + $0x4] sm:$0xf0]  ;;  %v4988_v60 = vld [vmem:[#allocation4 + $0x8] sm:$0xf0]  ;;  %v1665_v8 = vmul.f32 0.088388346, %v1660_v55 }
 0x22e   : > { %v4982_v61 = vor.u32 %v6252_v57, %v4981_v54  ;;  %v4991_v62 = vor.u32 %v6251_v58, %v4988_v60  ;;  %v1666_v63 = vmul.f32 0.088388346, %v1634_v9  ;;  %v6265_v54 = vld [vmem:[#allocation18 + $0x64] sm:$0xf]  ;;  %v5045_v55 = vld [vmem:[#allocation18 + $0x68] sm:$0xf0]  ;;  %v5044_v57 = vor.u32 %v6266_v52, %v5043_v51  ;;  %2049 = vmatpush.bf16.msra.mxu2 %v5056_v53 }
 0x22f   : > { %v1668_v14 = vpack.c.bf16 %v1665_v8, %v1664_v12  ;;  %v6284_v58 = vld [vmem:[#allocation18 + $0xf4] sm:$0xf0]  ;;  %v6283_v60 = vld [vmem:[#allocation18 + $0xf4] sm:$0xf]  ;;  %v6282_v12 = vld [vmem:[#allocation18 + $0xe4] sm:$0xf0] }
 0x230   : > { %v1647_v7 = vpop.f32.mrf.mxu2  ;;  %1740 = vmatpush.bf16.msrb.mxu1 %v4982_v61  ;;  %1808 = vmatpush.bf16.msrb.mxu3 %v4991_v62  ;;  %v1661_v11 = vpop.f32.mrf.mxu3  ;;  %v5117_v61 = vld [vmem:[#allocation18 + $0xf8] sm:$0xf0]  ;;  %v5048_v62 = vor.u32 %v6265_v54, %v5045_v55  ;;  %v5116_v5 = vor.u32 %v6284_v58, %v5115_v56  ;;  %v6264_v8 = vld [vmem:[#allocation18 + $0x54] sm:$0xf0]  ;;  %v6263_v9 = vld [vmem:[#allocation18 + $0x54] sm:$0xf] }
 0x231   : > { %v1648_v1 = vadd.f32 %v1647_v7, %v1435_v46  ;;  %v1676_v16 = vunpack.c.l.b16 %v1668_v14  ;;  %v1749_v17 = vunpack.c.h.b16 %v1668_v14  ;;  %v5051_v46 = vld [vmem:[#allocation18 + $0x70] sm:$0xf]  ;;  %v5120_v6 = vor.u32 %v6283_v60, %v5117_v61  ;;  %v6281_v14 = vld [vmem:[#allocation18 + $0xe4] sm:$0xf]  ;;  %v5011_v55 = vld [vmem:[#allocation18 + $0x20] sm:$0xf] }
 0x232   : > { %v5052_v49 = vor.u32 %v6268_v47, %v5051_v46  ;;  %v5035_v7 = vld [vmem:[#allocation18 + $0x50] sm:$0xf]  ;;  %2050 = vmatpush.bf16.msra.mxu2 %v5048_v62  ;;  %v6258_v56 = vld [vmem:[#allocation18 + $0x24] sm:$0xf0]  ;;  %v5013_v60 = vld [vmem:[#allocation18 + $0x28] sm:$0xf0] }
 0x233   : > { %v1662_v13 = vadd.f32 %v1661_v11, %v1648_v1  ;;  %v5037_v1 = vld [vmem:[#allocation18 + $0x58] sm:$0xf0]  ;;  %v5107_v11 = vld [vmem:[#allocation18 + $0xe0] sm:$0xf]  ;;  %v5012_v58 = vor.u32 %v6258_v56, %v5011_v55  ;;  %v5083_v62 = vld [vmem:[#allocation18 + $0xb0] sm:$0xf] }
 0x234   : > { %2021 = vmatpush.bf16.msra.mxu0 %v5052_v49  ;;  %2035 = vmatpush.bf16.msra.mxu1 %v5116_v5  ;;  %v6275_v5 = vld [vmem:[#allocation18 + $0xb4] sm:$0xf] }
 0x235   : > { %v1667_v15 = vmul.f32 0.088388346, %v1662_v13  ;;  %2063 = vmatpush.bf16.msra.mxu3 %v5120_v6  ;;  %v5108_v13 = vor.u32 %v6282_v12, %v5107_v11  ;;  %v5003_v6 = vld [vmem:[#allocation18 + $0x10] sm:$0xf]  ;;  %v5075_v12 = vld [vmem:[#allocation18 + $0xa0] sm:$0xf] }
 0x237   : > { %v1669_v2 = vpack.c.bf16 %v1667_v15, %v1666_v63  ;;  %v5109_v63 = vld [vmem:[#allocation18 + $0xe8] sm:$0xf0]  ;;  %v5036_v15 = vor.u32 %v6264_v8, %v5035_v7 }
 0x238   : > { %2022 = vmatpush.bf16.msra.mxu0 %v5044_v57  ;;  %2036 = vmatpush.bf16.msra.mxu1 %v5108_v13  ;;  %v6257_v57 = vld [vmem:[#allocation18 + $0x24] sm:$0xf]  ;;  %v6274_v13 = vld [vmem:[#allocation18 + $0xa4] sm:$0xf0] }
 0x239   : > { %v1677_v18 = vunpack.c.l.b16 %v1669_v2  ;;  %v1750_v19 = vunpack.c.h.b16 %v1669_v2  ;;  %v5112_v2 = vor.u32 %v6281_v14, %v5109_v63  ;;  %v5016_v61 = vor.u32 %v6257_v57, %v5013_v60  ;;  %v6273_v14 = vld [vmem:[#allocation18 + $0xa4] sm:$0xf] }
 0x23a   : > { %v5076_v63 = vor.u32 %v6274_v13, %v5075_v12  ;;  %v6409_v12 = vld [vmem:[#allocation24 + $0x3dc] sm:$0xf0]  ;;  %v6341_v13 = vld [vmem:[#allocation24 + $0x1c4] sm:$0xf] }
 0x23b   : > { %v1678_v3 = vpack.c.b16 %v1677_v18, %v1676_v16  ;;  %v1751_v20 = vpack.c.b16 %v1750_v19, %v1749_v17  ;;  %v5027_v16 = vld [vmem:[#allocation18 + $0x40] sm:$0xf]  ;;  %v6262_v17 = vld [vmem:[#allocation18 + $0x44] sm:$0xf0]  ;;  %v5040_v18 = vor.u32 %v6263_v9, %v5037_v1  ;;  %v5099_v19 = vld [vmem:[#allocation18 + $0xd0] sm:$0xf]  ;;  %2064 = vmatpush.bf16.msra.mxu3 %v5112_v2 }
 0x23c   : > { %2023 = vmatpush.bf16.msra.mxu0 %v5036_v15  ;;  %v6255_v9 = vld [vmem:[#allocation18 + $0x14] sm:$0xf]  ;;  %v5005_v1 = vld [vmem:[#allocation18 + $0x18] sm:$0xf0]  ;;  %v5077_v15 = vld [vmem:[#allocation18 + $0xa8] sm:$0xf0] }
 0x23d   : > { %1694 = vmatmul.bf16.vlgmr.msrb.gmra.mxu0 %v1678_v3  ;;  %1765 = vmatmul.bf16.vlgmr.msrb.gmra.mxu2 %v1751_v20  ;;  %v6280_v3 = vld [vmem:[#allocation18 + $0xd4] sm:$0xf0]  ;;  %v6279_v20 = vld [vmem:[#allocation18 + $0xd4] sm:$0xf]  ;;  %v5008_v11 = vor.u32 %v6255_v9, %v5005_v1  ;;  %v5080_v2 = vor.u32 %v6273_v14, %v5077_v15  ;;  %v6345_v9 = vld [vmem:[#allocation24 + $0x1dc] sm:$0xf0] }
 0x23e   : > { %2051 = vmatpush.bf16.msra.mxu2 %v5040_v18  ;;  %v6253_v18 = vld [vmem:[#allocation18 + $0x4] sm:$0xf]  ;;  %v5349_v14 = vld [vmem:[#allocation24 + $0x1e0] sm:$0xf0] }
 0x23f   : > { %v5603_v1 = vld [vmem:[#allocation24 + $0x3c0] sm:$0xf]  ;;  %v5352_v15 = vor.u32 %v6341_v13, %v5349_v14 }
 0x2ba   : > { %v1695_v21 = vpop.f32.mrf.mxu0 }
 0x2bb   : > { %v1701_v4 = vsel %vm1700_vm7, %v1695_v21, -inf }
 0x2bc   : > { %1702 = vmax.xlane.f32.xlu0 %v1701_v4  ;;  %v5029_v4 = vld [vmem:[#allocation18 + $0x48] sm:$0xf0] }
 0x2c0   : > { %v1766_v22 = vpop.f32.mrf.mxu2 }
 0x2c1   : > { %v1771_v23 = vsel %vm1700_vm7, %v1766_v22, -inf }
 0x2c2   : > { %1772 = vmax.xlane.f32.xlu2 %v1771_v23  ;;  %v1697_v24 = vpop.f32.mrf.mxu0  ;;  %v5100_v23 = vor.u32 %v6280_v3, %v5099_v19  ;;  %v4997_v3 = vld [vmem:[#allocation18 + $0x8] sm:$0xf0] }
 0x2c3   : > { %v1704_v25 = vsel %vm1700_vm7, %v1697_v24, -inf }
 0x2c4   : > { %1705 = vmax.xlane.f32.xlu1 %v1704_v25  ;;  %v5091_v25 = vld [vmem:[#allocation18 + $0xc0] sm:$0xf]  ;;  %2037 = vmatpush.bf16.msra.mxu1 %v5100_v23 }
 0x2c8   : > { %v1768_v10 = vpop.f32.mrf.mxu2 }
 0x2c9   : > { %v1774_v26 = vsel %vm1700_vm7, %v1768_v10, -inf }
 0x2ca   : > { %1775 = vmax.xlane.f32.xlu2 %v1774_v26  ;;  %v5028_v26 = vor.u32 %v6262_v17, %v5027_v16  ;;  %v4995_v16 = vld [vmem:[#allocation18] sm:$0xf]  ;;  %v6254_v17 = vld [vmem:[#allocation18 + $0x4] sm:$0xf0] }
 0x2cb   : > { %v4996_v19 = vor.u32 %v6254_v17, %v4995_v16  ;;  %v5605_v16 = vld [vmem:[#allocation24 + $0x3e0] sm:$0xf0]  ;;  %v5315_v17 = vld [vmem:[#allocation24 + $0x180] sm:$0xf] }
 0x2cc   : > { %2024 = vmatpush.bf16.msra.mxu0 %v5028_v26  ;;  %v6270_v26 = vld [vmem:[#allocation18 + $0x84] sm:$0xf0] }
 0x32f   : > { %v1703_v28 = vpop.xlane.xlu0 %1702 }
 0x330   : > { %v1707_v29 = vsub.f32 %v1695_v21, %v1703_v28  ;;  %v6261_v21 = vld [vmem:[#allocation18 + $0x44] sm:$0xf]  ;;  %v6278_v28 = vld [vmem:[#allocation18 + $0xc4] sm:$0xf0] }
 0x332   : > { %v1709_v30 = vmul.f32 1.442695, %v1707_v29  ;;  %v6277_v29 = vld [vmem:[#allocation18 + $0xc4] sm:$0xf] }
 0x334   : > { %6740 = vpow2.f32 %v1709_v30  ;;  %v5093_v30 = vld [vmem:[#allocation18 + $0xc8] sm:$0xf0] }
 0x335   : > { %v1773_v31 = vpop.xlane.xlu2 %1772 }
 0x336   : > { %v1777_v32 = vsub.f32 %v1766_v22, %v1773_v31  ;;  %v5101_v22 = vld [vmem:[#allocation18 + $0xd8] sm:$0xf0]  ;;  %v5032_v31 = vor.u32 %v6261_v21, %v5029_v4  ;;  %v5067_v21 = vld [vmem:[#allocation18 + $0x90] sm:$0xf]  ;;  %v6272_v4 = vld [vmem:[#allocation18 + $0x94] sm:$0xf0] }
 0x337   : > { %v1706_v33 = vpop.xlane.xlu1 %1705  ;;  %v5068_v23 = vor.u32 %v6272_v4, %v5067_v21 }
 0x338   : > { %v1779_v34 = vmul.f32 1.442695, %v1777_v32  ;;  %v1708_v35 = vsub.f32 %v1697_v24, %v1706_v33  ;;  %v5104_v24 = vor.u32 %v6279_v20, %v5101_v22  ;;  %v5019_v32 = vld [vmem:[#allocation18 + $0x30] sm:$0xf]  ;;  %v6260_v33 = vld [vmem:[#allocation18 + $0x34] sm:$0xf0]  ;;  %2052 = vmatpush.bf16.msra.mxu2 %v5032_v31  ;;  %v5000_v20 = vor.u32 %v6253_v18, %v4997_v3 }
 0x339   : > { %v6271_v22 = vld [vmem:[#allocation18 + $0x94] sm:$0xf]  ;;  %v5571_v3 = vld [vmem:[#allocation24 + $0x380] sm:$0xf] }
 0x33a   : > { %v7685_v36 = vpop.eup %6740  ;;  %6742 = vpow2.f32 %v1779_v34  ;;  %v1711_v38 = vmul.f32 1.442695, %v1708_v35  ;;  %v6259_v34 = vld [vmem:[#allocation18 + $0x34] sm:$0xf]  ;;  %v5021_v35 = vld [vmem:[#allocation18 + $0x38] sm:$0xf0]  ;;  %2065 = vmatpush.bf16.msra.mxu3 %v5104_v24 }
 0x33b   : > { %v1713_v37 = vsel %vm1700_vm7, %v7685_v36, 0.0  ;;  %v5069_v24 = vld [vmem:[#allocation18 + $0x98] sm:$0xf0] }
 0x33c   : > { %1714 = vadd.xlane.f32.xlu1 %v1713_v37  ;;  %6744 = vpow2.f32 %v1711_v38  ;;  %v5092_v37 = vor.u32 %v6278_v28, %v5091_v25  ;;  %v5096_v38 = vor.u32 %v6277_v29, %v5093_v30  ;;  %v5072_v25 = vor.u32 %v6271_v22, %v5069_v24  ;;  %v6269_v28 = vld [vmem:[#allocation18 + $0x84] sm:$0xf]  ;;  %v5061_v30 = vld [vmem:[#allocation18 + $0x88] sm:$0xf0] }
 0x33d   : > { %v1776_v0 = vpop.xlane.xlu2 %1775  ;;  %v5064_v31 = vor.u32 %v6269_v28, %v5061_v30  ;;  %v6333_v22 = vld [vmem:[#allocation24 + $0x184] sm:$0xf]  ;;  %v6329_v28 = vld [vmem:[#allocation24 + $0x15c] sm:$0xf0] }
 0x33e   : > { %v1778_v27 = vsub.f32 %v1768_v10, %v1776_v0  ;;  %v5020_v0 = vor.u32 %v6260_v33, %v5019_v32  ;;  %2038 = vmatpush.bf16.msra.mxu1 %v5092_v37  ;;  %2066 = vmatpush.bf16.msra.mxu3 %v5096_v38  ;;  %v6397_v24 = vld [vmem:[#allocation24 + $0x384] sm:$0xf]  ;;  %v5539_v30 = vld [vmem:[#allocation24 + $0x340] sm:$0xf] }
 0x340   : > { %v7689_v39 = vpop.eup %6742  ;;  %v1781_v40 = vmul.f32 1.442695, %v1778_v27  ;;  %2025 = vmatpush.bf16.msra.mxu0 %v5020_v0  ;;  %v1855_v0 = vld [vmem:[#allocation20] sm:$0x3] }
 0x341   : > { %v1783_v41 = vsel %vm1700_vm7, %v7689_v39, 0.0 }
 0x342   : > { %6746 = vpow2.f32 %v1781_v40  ;;  %1784 = vadd.xlane.f32.xlu2 %v1783_v41  ;;  %v7693_v42 = vpop.eup %6744  ;;  %v5024_v40 = vor.u32 %v6259_v34, %v5021_v35 }
 0x343   : > { %v1716_v45 = vsel %vm1700_vm7, %v7693_v42, 0.0 }
 0x344   : > { %2053 = vmatpush.bf16.msra.mxu2 %v5024_v40  ;;  %2026 = vmatpush.bf16.msra.mxu0 %v5012_v58  ;;  %v1857_v40 = vperm.slane %v1855_v0, 0 }
 0x348   : > { %v7695_v43 = vpop.eup %6746  ;;  %2054 = vmatpush.bf16.msra.mxu2 %v5016_v61 }
 0x349   : > { %v1786_v44 = vsel %vm1700_vm7, %v7695_v43, 0.0 }
 0x34a   : > { %1787 = vadd.xlane.f32.xlu0 %v1786_v44  ;;  %1717 = vadd.xlane.f32.xlu2 %v1716_v45 }
 0x34c   : > { %2055 = vmatpush.bf16.msra.mxu2 %v5008_v11 }
 0x350   : > { %2056 = vmatpush.bf16.msra.mxu2 %v5000_v20  ;;  %v6401_v20 = vld [vmem:[#allocation24 + $0x39c] sm:$0xf0] }
 0x351   : > { %v5572_v4 = vor.u32 %v6401_v20, %v5571_v3  ;;  %v5187_v20 = vld [vmem:[#allocation24 + $0x80] sm:$0xf] }
 0x354   : > { %2974 = vmatpush.bf16.msrb.mxu2 %v5352_v15 }
 0x3af   : > { %v1715_v27 = vpop.xlane.xlu1 %1714 }
 0x3b5   : > { %v1785_v10 = vpop.xlane.xlu2 %1784 }
 0x3b6   : > { %6748 = vrcp.f32 %v1785_v10  ;;  %v5059_v10 = vld [vmem:[#allocation18 + $0x80] sm:$0xf] }
 0x3b7   : > { %6750 = vrcp.f32 %v1715_v27  ;;  %v5060_v29 = vor.u32 %v6270_v26, %v5059_v10  ;;  %v5573_v10 = vld [vmem:[#allocation24 + $0x3a0] sm:$0xf0]  ;;  %v5283_v26 = vld [vmem:[#allocation24 + $0x140] sm:$0xf] }
 0x3bc   : > { %v6749_v45 = vpop.eup %6748 }
 0x3bd   : > { %v1788_v41 = vpop.xlane.xlu0 %1787  ;;  %v1718_v44 = vpop.xlane.xlu2 %1717  ;;  %v1791_v49 = vmul.f32 %v6749_v45, %v7689_v39  ;;  %v6276_v39 = vld [vmem:[#allocation18 + $0xb4] sm:$0xf0] }
 0x3be   : > { %6752 = vrcp.f32 %v1788_v41  ;;  %v6751_v46 = vpop.eup %6750 }
 0x3bf   : > { %6754 = vrcp.f32 %v1718_v44  ;;  %v1721_v51 = vmul.f32 %v6751_v46, %v7685_v36  ;;  %v5085_v36 = vld [vmem:[#allocation18 + $0xb8] sm:$0xf0]  ;;  %v1858_v44 = vperm.slane %v1855_v0, 1 }
 0x3c0   : > { %v5088_v7 = vor.u32 %v6275_v5, %v5085_v36  ;;  %v1395_v5 = vld [vmem:[%s7580_s23 + $0x18] sm:$0xff] }
 0x3c2   : > { %2067 = vmatpush.bf16.msra.mxu3 %v5088_v7 }
 0x3c4   : > { %v6753_v47 = vpop.eup %6752 }
 0x3c5   : > { %v6755_v48 = vpop.eup %6754  ;;  %v1792_v50 = vmul.f32 %v6753_v47, %v7695_v43  ;;  %v5084_v43 = vor.u32 %v6276_v39, %v5083_v62  ;;  %v1394_v39 = vld [vmem:[%s7580_s23 + $0x10] sm:$0xff] }
 0x3c6   : > { %v1722_v52 = vmul.f32 %v6755_v48, %v7693_v42  ;;  %v6256_v42 = vld [vmem:[#allocation18 + $0x14] sm:$0xf0]  ;;  %2068 = vmatpush.bf16.msra.mxu3 %v5080_v2  ;;  %v6405_v2 = vld [vmem:[#allocation24 + $0x3c4] sm:$0xf] }
 0x3c7   : > { %v1793_v53 = vpack.c.bf16 %v1792_v50, %v1791_v49  ;;  %v5004_v8 = vor.u32 %v6256_v42, %v5003_v6  ;;  %2039 = vmatpush.bf16.msra.mxu1 %v5084_v43  ;;  %v1392_v49 = vld [vmem:[%s7580_s23] sm:$0xff]  ;;  %v1393_v50 = vld [vmem:[%s7580_s23 + $0x8] sm:$0xff]  ;;  %v5608_v18 = vor.u32 %v6405_v2, %v5605_v16 }
 0x3c8   : > { %v1723_v54 = vpack.c.bf16 %v1722_v52, %v1721_v51 }
 0x3c9   : > { %4992 = vmatmul.msk.bf16.vlgmr.msrb.gmra.mxu3 %vm1700_vm7, %v1793_v53  ;;  %2027 = vmatpush.bf16.msra.mxu0 %v5004_v8  ;;  %v5347_v8 = vld [vmem:[#allocation24 + $0x1c0] sm:$0xf] }
 0x3ca   : > { %4983 = vmatmul.msk.bf16.vlgmr.msrb.gmra.mxu1 %vm1700_vm7, %v1723_v54  ;;  %2069 = vmatpush.bf16.msra.mxu3 %v5072_v25  ;;  %v5348_v11 = vor.u32 %v6345_v9, %v5347_v8 }
 0x3cb   : > { %2040 = vmatpush.bf16.msra.mxu1 %v5076_v63  ;;  %v5604_v63 = vor.u32 %v6409_v12, %v5603_v1 }
 0x3cd   : > { %2028 = vmatpush.bf16.msra.mxu0 %v4996_v19  ;;  %v6337_v19 = vld [vmem:[#allocation24 + $0x19c] sm:$0xf0] }
 0x3ce   : > { %2070 = vmatpush.bf16.msra.mxu3 %v5064_v31  ;;  %v5316_v21 = vor.u32 %v6337_v19, %v5315_v17  ;;  %v6393_v31 = vld [vmem:[#allocation24 + $0x35c] sm:$0xf0] }
 0x3cf   : > { %2041 = vmatpush.bf16.msra.mxu1 %v5068_v23  ;;  %v5317_v23 = vld [vmem:[#allocation24 + $0x1a0] sm:$0xf0] }
 0x3d0   : > { %v5320_v25 = vor.u32 %v6333_v22, %v5317_v23  ;;  %v6369_v23 = vld [vmem:[#allocation24 + $0x29c] sm:$0xf0] }
 0x3d1   : > { %2946 = vmatpush.bf16.msrb.mxu0 %v5348_v11 }
 0x3d2   : > { %2988 = vmatpush.bf16.msrb.mxu3 %v5608_v18  ;;  %2975 = vmatpush.bf16.msrb.mxu2 %v5320_v25  ;;  %v5189_v25 = vld [vmem:[#allocation24 + $0xa0] sm:$0xf0] }
 0x3d3   : > { %2042 = vmatpush.bf16.msra.mxu1 %v5060_v29  ;;  %v5576_v29 = vor.u32 %v6397_v24, %v5573_v10  ;;  %v6301_v24 = vld [vmem:[#allocation24 + $0x84] sm:$0xf] }
 0x3d5   : > { %2947 = vmatpush.bf16.msrb.mxu0 %v5316_v21  ;;  %v6305_v21 = vld [vmem:[#allocation24 + $0x9c] sm:$0xf0] }
 0x3d6   : > { %2989 = vmatpush.bf16.msrb.mxu3 %v5576_v29  ;;  %v5188_v22 = vor.u32 %v6305_v21, %v5187_v20  ;;  %v5445_v29 = vld [vmem:[#allocation24 + $0x2a0] sm:$0xf0]  ;;  %v5325_v20 = vld [vmem:[#allocation24 + $0x1a8] sm:$0xf0] }
 0x3d7   : > { %2960 = vmatpush.bf16.msrb.mxu1 %v5604_v63  ;;  %v6398_v21 = vld [vmem:[#allocation24 + $0x38c] sm:$0xf] }
 0x3db   : > { %2961 = vmatpush.bf16.msrb.mxu1 %v5572_v4  ;;  %v5443_v4 = vld [vmem:[#allocation24 + $0x280] sm:$0xf] }
 0x3dc   : > { %v5444_v10 = vor.u32 %v6369_v23, %v5443_v4  ;;  %v5581_v4 = vld [vmem:[#allocation24 + $0x3a8] sm:$0xf0] }
 0x3dd   : > { %v5584_v23 = vor.u32 %v6398_v21, %v5581_v4  ;;  %v5419_v21 = vld [vmem:[#allocation24 + $0x248] sm:$0xf] }
 0x447   : > { %v1742_v32 = vpop.f32.mrf.mxu1 }
 0x44c   : > { %v1810_v33 = vpop.f32.mrf.mxu3 }
 0x44f   : > { %v1744_v34 = vpop.f32.mrf.mxu1 }
 0x450   : > { %v1821_v35 = vpack.c.bf16 %v1744_v34, %v1742_v32  ;;  %v6325_v32 = vld [vmem:[#allocation24 + $0x144] sm:$0xf] }
 0x451   : > { %v5285_v34 = vld [vmem:[#allocation24 + $0x160] sm:$0xf0] }
 0x452   : > { %2029 = vmatmul.bf16.vlgmr.msra.gmra.mxu0 %v1821_v35  ;;  %2057 = vmatmul.bf16.vlgmr.msra.gmra.mxu2 %v1821_v35  ;;  %v6389_v35 = vld [vmem:[#allocation24 + $0x344] sm:$0xf]  ;;  %v5288_v0 = vor.u32 %v6325_v32, %v5285_v34  ;;  %v6297_v32 = vld [vmem:[#allocation24 + $0x5c] sm:$0xf0] }
 0x454   : > { %v1812_v37 = vpop.f32.mrf.mxu3  ;;  %2976 = vmatpush.bf16.msrb.mxu2 %v5288_v0 }
 0x455   : > { %v1822_v38 = vpack.c.bf16 %v1812_v37, %v1810_v33  ;;  %v5284_v33 = vor.u32 %v6329_v28, %v5283_v26  ;;  %v5541_v37 = vld [vmem:[#allocation24 + $0x360] sm:$0xf0]  ;;  %v5192_v26 = vor.u32 %v6301_v24, %v5189_v25  ;;  %v5291_v24 = vld [vmem:[#allocation24 + $0x148] sm:$0xf] }
 0x456   : > { %v6365_v28 = vld [vmem:[#allocation24 + $0x284] sm:$0xf]  ;;  %v6330_v25 = vld [vmem:[#allocation24 + $0x164] sm:$0xf0] }
 0x457   : > { %2043 = vmatmul.bf16.vlgmr.msra.gmra.mxu1 %v1822_v38  ;;  %2071 = vmatmul.bf16.vlgmr.msra.gmra.mxu3 %v1822_v38  ;;  %v5540_v38 = vor.u32 %v6393_v31, %v5539_v30  ;;  %v5448_v30 = vor.u32 %v6365_v28, %v5445_v29  ;;  %v5155_v31 = vld [vmem:[#allocation24 + $0x40] sm:$0xf]  ;;  %v6394_v28 = vld [vmem:[#allocation24 + $0x364] sm:$0xf0]  ;;  %v6326_v29 = vld [vmem:[#allocation24 + $0x14c] sm:$0xf] }
 0x458   : > { %2948 = vmatpush.bf16.msrb.mxu0 %v5284_v33  ;;  %v5411_v33 = vld [vmem:[#allocation24 + $0x240] sm:$0xf]  ;;  %v5156_v34 = vor.u32 %v6297_v32, %v5155_v31 }
 0x459   : > { %2962 = vmatpush.bf16.msrb.mxu1 %v5540_v38  ;;  %v5157_v38 = vld [vmem:[#allocation24 + $0x60] sm:$0xf0] }
 0x4cf   : > { %v2030_v27 = vpop.f32.mrf.mxu0 }
 0x4d0   : > { %v2031_v46 = vadd.f32 %v2030_v27, %v1857_v40  ;;  %v5251_v27 = vld [vmem:[#allocation24 + $0x100] sm:$0xf] }
 0x4d4   : > { %v2044_v41 = vpop.f32.mrf.mxu1 }
 0x4d5   : > { %v2058_v45 = vpop.f32.mrf.mxu2  ;;  %v2045_v47 = vadd.f32 %v2044_v41, %v2031_v46  ;;  %v5507_v41 = vld [vmem:[#allocation24 + $0x300] sm:$0xf]  ;;  %v6317_v46 = vld [vmem:[#allocation24 + $0x104] sm:$0xf] }
 0x4d6   : > { %v2059_v48 = vadd.f32 %v2058_v45, %v1858_v44  ;;  %v6385_v45 = vld [vmem:[#allocation24 + $0x31c] sm:$0xf0] }
 0x4d7   : > { %v2032_v53 = vpop.f32.mrf.mxu0  ;;  %v7709_v54 = vadd.f32 %v2045_v47, %v1392_v49  ;;  %v5253_v47 = vld [vmem:[#allocation24 + $0x120] sm:$0xf0] }
 0x4d8   : > { %v2033_v58 = vadd.f32 %v2032_v53, %v1857_v40  ;;  %v6321_v40 = vld [vmem:[#allocation24 + $0x11c] sm:$0xf0]  ;;  %v5509_v49 = vld [vmem:[#allocation24 + $0x320] sm:$0xf0] }
 0x4d9   : > { %v5219_v53 = vld [vmem:[#allocation24 + $0xc0] sm:$0xf] }
 0x4da   : > { %v2072_v51 = vpop.f32.mrf.mxu3 }
 0x4db   : > { %v2073_v52 = vadd.f32 %v2072_v51, %v2059_v48  ;;  %v6381_v48 = vld [vmem:[#allocation24 + $0x304] sm:$0xf]  ;;  %v5508_v51 = vor.u32 %v6385_v45, %v5507_v41  ;;  %v5123_v45 = vld [vmem:[#allocation24] sm:$0xf] }
 0x4dc   : > { %v2046_v56 = vpop.f32.mrf.mxu1  ;;  %v5413_v41 = vld [vmem:[#allocation24 + $0x260] sm:$0xf0] }
 0x4dd   : > { %v7711_v55 = vadd.f32 %v2073_v52, %v1393_v50  ;;  %v2060_v57 = vpop.f32.mrf.mxu2  ;;  %v2047_v61 = vadd.f32 %v2046_v56, %v2033_v58  ;;  %v5252_v50 = vor.u32 %v6321_v40, %v5251_v27  ;;  %v5256_v52 = vor.u32 %v6317_v46, %v5253_v47  ;;  %v6313_v56 = vld [vmem:[#allocation24 + $0xdc] sm:$0xf0]  ;;  %2963 = vmatpush.bf16.msrb.mxu1 %v5508_v51  ;;  %v6357_v40 = vld [vmem:[#allocation24 + $0x244] sm:$0xf] }
 0x4de   : > { %v2061_v62 = vadd.f32 %v2060_v57, %v1858_v44  ;;  %v5544_v44 = vor.u32 %v6389_v35, %v5541_v37  ;;  %v5475_v57 = vld [vmem:[#allocation24 + $0x2c0] sm:$0xf]  ;;  %v5512_v58 = vor.u32 %v6381_v48, %v5509_v49  ;;  %v6293_v37 = vld [vmem:[#allocation24 + $0x44] sm:$0xf] }
 0x4df   : > { %v2083_v60 = vadd.f32 %v7711_v55, %v7709_v54  ;;  %v7717_v6 = vadd.f32 %v2047_v61, %v1394_v39  ;;  %v6309_v61 = vld [vmem:[#allocation24 + $0xc4] sm:$0xf]  ;;  %2949 = vmatpush.bf16.msrb.mxu0 %v5252_v50  ;;  %2977 = vmatpush.bf16.msrb.mxu2 %v5256_v52  ;;  %v6361_v35 = vld [vmem:[#allocation24 + $0x25c] sm:$0xf0]  ;;  %v5160_v27 = vor.u32 %v6293_v37, %v5157_v38  ;;  %v5259_v37 = vld [vmem:[#allocation24 + $0x108] sm:$0xf] }
 0x4e0   : > { %2990 = vmatpush.bf16.msrb.mxu3 %v5544_v44  ;;  %v6373_v39 = vld [vmem:[#allocation24 + $0x2c4] sm:$0xf]  ;;  %v5412_v0 = vor.u32 %v6361_v35, %v5411_v33  ;;  %v5416_v44 = vor.u32 %v6357_v40, %v5413_v41  ;;  %v6289_v46 = vld [vmem:[#allocation24 + $0x1c] sm:$0xf0]  ;;  %v6390_v33 = vld [vmem:[#allocation24 + $0x34c] sm:$0xf] }
 0x4e1   : > { %2084 = vadd.xlane.f32.xlu0 %v2083_v60  ;;  %v6377_v60 = vld [vmem:[#allocation24 + $0x2dc] sm:$0xf0]  ;;  %v5124_v48 = vor.u32 %v6289_v46, %v5123_v45  ;;  %v6285_v50 = vld [vmem:[#allocation24 + $0x4] sm:$0xf]  ;;  %v6322_v38 = vld [vmem:[#allocation24 + $0x124] sm:$0xf0] }
 0x4e2   : > { %v2074_v43 = vpop.f32.mrf.mxu3  ;;  %v5476_v8 = vor.u32 %v6377_v60, %v5475_v57  ;;  %v5379_v47 = vld [vmem:[#allocation24 + $0x200] sm:$0xf]  ;;  %v5125_v51 = vld [vmem:[#allocation24 + $0x20] sm:$0xf0]  ;;  %v6386_v40 = vld [vmem:[#allocation24 + $0x324] sm:$0xf0] }
 0x4e3   : > { %v2075_v36 = vadd.f32 %v2074_v43, %v2061_v62  ;;  %v5221_v62 = vld [vmem:[#allocation24 + $0xe0] sm:$0xf0]  ;;  %v6353_v49 = vld [vmem:[#allocation24 + $0x21c] sm:$0xf0]  ;;  %v6318_v41 = vld [vmem:[#allocation24 + $0x10c] sm:$0xf] }
 0x4e4   : > { %v5224_v9 = vor.u32 %v6309_v61, %v5221_v62  ;;  %2991 = vmatpush.bf16.msrb.mxu3 %v5512_v58  ;;  %2964 = vmatpush.bf16.msrb.mxu1 %v5476_v8  ;;  %v5380_v52 = vor.u32 %v6353_v49, %v5379_v47  ;;  %v5381_v57 = vld [vmem:[#allocation24 + $0x220] sm:$0xf0]  ;;  %v5355_v58 = vld [vmem:[#allocation24 + $0x1c8] sm:$0xf]  ;;  %v6406_v8 = vld [vmem:[#allocation24 + $0x3cc] sm:$0xf] }
 0x4e5   : > { %v7719_v42 = vadd.f32 %v2075_v36, %v1395_v5  ;;  %v5477_v5 = vld [vmem:[#allocation24 + $0x2e0] sm:$0xf0]  ;;  %v5220_v36 = vor.u32 %v6313_v56, %v5219_v53  ;;  %v5128_v53 = vor.u32 %v6285_v50, %v5125_v51  ;;  %v6346_v61 = vld [vmem:[#allocation24 + $0x1e4] sm:$0xf0]  ;;  %v6382_v47 = vld [vmem:[#allocation24 + $0x30c] sm:$0xf] }
 0x4e6   : > { %v5480_v1 = vor.u32 %v6373_v39, %v5477_v5  ;;  %2978 = vmatpush.bf16.msrb.mxu2 %v5224_v9  ;;  %v6349_v56 = vld [vmem:[#allocation24 + $0x204] sm:$0xf]  ;;  %v5611_v62 = vld [vmem:[#allocation24 + $0x3c8] sm:$0xf]  ;;  %v5356_v5 = vor.u32 %v6346_v61, %v5355_v58  ;;  %v5229_v58 = vld [vmem:[#allocation24 + $0xe8] sm:$0xf0] }
 0x4e7   : > { %v2086_v7 = vadd.f32 %v7719_v42, %v7717_v6  ;;  %2950 = vmatpush.bf16.msrb.mxu0 %v5220_v36  ;;  %v5384_v60 = vor.u32 %v6349_v56, %v5381_v57  ;;  %v6410_v39 = vld [vmem:[#allocation24 + $0x3e4] sm:$0xf0]  ;;  %v6342_v36 = vld [vmem:[#allocation24 + $0x1cc] sm:$0xf] }
 0x4e8   : > { %2992 = vmatpush.bf16.msrb.mxu3 %v5480_v1  ;;  %2965 = vmatpush.bf16.msrb.mxu1 %v5444_v10  ;;  %v5613_v1 = vld [vmem:[#allocation24 + $0x3e8] sm:$0xf0]  ;;  %v5547_v10 = vld [vmem:[#allocation24 + $0x348] sm:$0xf] }
 0x4e9   : > { %2087 = vadd.xlane.f32.xlu1 %v2086_v7  ;;  %v5548_v31 = vor.u32 %v6394_v28, %v5547_v10  ;;  %v5227_v50 = vld [vmem:[#allocation24 + $0xc8] sm:$0xf]  ;;  %v6310_v57 = vld [vmem:[#allocation24 + $0xcc] sm:$0xf] }
 0x4ea   : > { %2979 = vmatpush.bf16.msrb.mxu2 %v5192_v26  ;;  %v5292_v26 = vor.u32 %v6330_v25, %v5291_v24  ;;  %v6314_v51 = vld [vmem:[#allocation24 + $0xe4] sm:$0xf0]  ;;  %v5232_v61 = vor.u32 %v6310_v57, %v5229_v58  ;;  %v6294_v24 = vld [vmem:[#allocation24 + $0x4c] sm:$0xf] }
 0x4eb   : > { %2951 = vmatpush.bf16.msrb.mxu0 %v5188_v22  ;;  %v6378_v56 = vld [vmem:[#allocation24 + $0x2e4] sm:$0xf0]  ;;  %v5165_v25 = vld [vmem:[#allocation24 + $0x68] sm:$0xf0] }
 0x4ec   : > { %2993 = vmatpush.bf16.msrb.mxu3 %v5448_v30  ;;  %2966 = vmatpush.bf16.msrb.mxu1 %v5412_v0  ;;  %v5293_v30 = vld [vmem:[#allocation24 + $0x168] sm:$0xf0]  ;;  %v5515_v0 = vld [vmem:[#allocation24 + $0x308] sm:$0xf] }
 0x4ed   : > { %v5296_v32 = vor.u32 %v6326_v29, %v5293_v30  ;;  %v5516_v45 = vor.u32 %v6386_v40, %v5515_v0  ;;  %v6358_v28 = vld [vmem:[#allocation24 + $0x24c] sm:$0xf] }
 0x4ee   : > { %2980 = vmatpush.bf16.msrb.mxu2 %v5160_v27  ;;  %v5260_v27 = vor.u32 %v6322_v38, %v5259_v37  ;;  %v5421_v29 = vld [vmem:[#allocation24 + $0x268] sm:$0xf0]  ;;  %v6354_v37 = vld [vmem:[#allocation24 + $0x224] sm:$0xf0] }
 0x4ef   : > { %2952 = vmatpush.bf16.msrb.mxu0 %v5156_v34  ;;  %v5549_v34 = vld [vmem:[#allocation24 + $0x368] sm:$0xf0] }
 0x4f0   : > { %2994 = vmatpush.bf16.msrb.mxu3 %v5416_v44  ;;  %2967 = vmatpush.bf16.msrb.mxu1 %v5380_v52  ;;  %v5552_v35 = vor.u32 %v6390_v33, %v5549_v34  ;;  %v5261_v44 = vld [vmem:[#allocation24 + $0x128] sm:$0xf0]  ;;  %v5483_v52 = vld [vmem:[#allocation24 + $0x2c8] sm:$0xf] }
 0x4f1   : > { %v5264_v46 = vor.u32 %v6318_v41, %v5261_v44  ;;  %v6290_v33 = vld [vmem:[#allocation24 + $0x24] sm:$0xf0]  ;;  %v6286_v38 = vld [vmem:[#allocation24 + $0xc] sm:$0xf] }
 0x4f2   : > { %2981 = vmatpush.bf16.msrb.mxu2 %v5128_v53  ;;  %v5228_v53 = vor.u32 %v6314_v51, %v5227_v50  ;;  %v5387_v34 = vld [vmem:[#allocation24 + $0x208] sm:$0xf]  ;;  %v5133_v0 = vld [vmem:[#allocation24 + $0x28] sm:$0xf0] }
 0x4f3   : > { %2953 = vmatpush.bf16.msrb.mxu0 %v5124_v48  ;;  %v5517_v48 = vld [vmem:[#allocation24 + $0x328] sm:$0xf0]  ;;  %v5136_v40 = vor.u32 %v6286_v38, %v5133_v0  ;;  %v6335_v38 = vld [vmem:[#allocation24 + $0x194] sm:$0xf] }
 0x4f4   : > { %2995 = vmatpush.bf16.msrb.mxu3 %v5384_v60  ;;  %v5520_v49 = vor.u32 %v6382_v47, %v5517_v48  ;;  %v5484_v60 = vor.u32 %v6378_v56, %v5483_v52  ;;  %v6350_v41 = vld [vmem:[#allocation24 + $0x20c] sm:$0xf]  ;;  %v5333_v0 = vld [vmem:[#allocation24 + $0x1b0] sm:$0xf0] }
 0x4f5   : > { %v5389_v44 = vld [vmem:[#allocation24 + $0x228] sm:$0xf0] }
 0x4f7   : > { %3002 = vmatpush.bf16.msra.mxu0 %v5356_v5 }
 0x554   : > { %v2085_v43 = vpop.xlane.xlu0 %2084 }
 0x555   : > { %v2096_v7 = vmul.f32 %v2085_v43, %v7633_v59  ;;  %v5612_v43 = vor.u32 %v6410_v39, %v5611_v62  ;;  %v6374_v62 = vld [vmem:[#allocation24 + $0x2cc] sm:$0xf] }
 0x556   : > { %v5485_v39 = vld [vmem:[#allocation24 + $0x2e8] sm:$0xf0] }
 0x557   : > { %v7725_v11 = vsub.f32 %v7709_v54, %v2096_v7  ;;  %v7728_v12 = vsub.f32 %v7711_v55, %v2096_v7  ;;  %v5357_v7 = vld [vmem:[#allocation24 + $0x1e8] sm:$0xf0]  ;;  %3016 = vmatpush.bf16.msra.mxu1 %v5612_v43  ;;  %v5488_v5 = vor.u32 %v6374_v62, %v5485_v39  ;;  %v5195_v43 = vld [vmem:[#allocation24 + $0x88] sm:$0xf] }
 0x558   : > { %v5360_v9 = vor.u32 %v6342_v36, %v5357_v7  ;;  %v6306_v36 = vld [vmem:[#allocation24 + $0xa4] sm:$0xf0] }
 0x559   : > { %v2102_v13 = vmul.f32 %v7725_v11, %v7725_v11  ;;  %v2103_v14 = vmul.f32 %v7728_v12, %v7728_v12  ;;  %v5451_v7 = vld [vmem:[#allocation24 + $0x288] sm:$0xf] }
 0x55a   : > { %3030 = vmatpush.bf16.msra.mxu2 %v5360_v9  ;;  %v6370_v9 = vld [vmem:[#allocation24 + $0x2a4] sm:$0xf0] }
 0x55b   : > { %v2106_v63 = vadd.f32 %v2103_v14, %v2102_v13  ;;  %v5323_v13 = vld [vmem:[#allocation24 + $0x188] sm:$0xf] }
 0x55c   : > { %v2088_v15 = vpop.xlane.xlu1 %2087  ;;  %v6338_v14 = vld [vmem:[#allocation24 + $0x1a4] sm:$0xf0] }
 0x55d   : > { %v2097_v2 = vmul.f32 %v2088_v15, %v7633_v59  ;;  %2107 = vadd.xlane.f32.xlu2 %v2106_v63  ;;  %v5616_v63 = vor.u32 %v6406_v8, %v5613_v1  ;;  %v5324_v15 = vor.u32 %v6338_v14, %v5323_v13  ;;  %v5196_v8 = vor.u32 %v6306_v36, %v5195_v43  ;;  %v6302_v1 = vld [vmem:[#allocation24 + $0x8c] sm:$0xf] }
 0x55e   : > { %v5197_v13 = vld [vmem:[#allocation24 + $0xa8] sm:$0xf0]  ;;  %v5452_v14 = vor.u32 %v6370_v9, %v5451_v7 }
 0x55f   : > { %v7736_v16 = vsub.f32 %v7717_v6, %v2097_v2  ;;  %v7739_v17 = vsub.f32 %v7719_v42, %v2097_v2  ;;  %v5579_v2 = vld [vmem:[#allocation24 + $0x388] sm:$0xf]  ;;  %3044 = vmatpush.bf16.msra.mxu3 %v5616_v63  ;;  %3003 = vmatpush.bf16.msra.mxu0 %v5324_v15  ;;  %v5200_v63 = vor.u32 %v6302_v1, %v5197_v13  ;;  %v6366_v15 = vld [vmem:[#allocation24 + $0x28c] sm:$0xf] }
 0x561   : > { %v2104_v18 = vmul.f32 %v7736_v16, %v7736_v16  ;;  %v2105_v19 = vmul.f32 %v7739_v17, %v7739_v17 }
 0x563   : > { %v2109_v3 = vadd.f32 %v2105_v19, %v2104_v18  ;;  %v6402_v18 = vld [vmem:[#allocation24 + $0x3a4] sm:$0xf0]  ;;  %v6334_v19 = vld [vmem:[#allocation24 + $0x18c] sm:$0xf]  ;;  %3045 = vmatpush.bf16.msra.mxu3 %v5584_v23  ;;  %3004 = vmatpush.bf16.msra.mxu0 %v5292_v26  ;;  %v5168_v26 = vor.u32 %v6294_v24, %v5165_v25 }
 0x564   : > { %v5328_v22 = vor.u32 %v6334_v19, %v5325_v20  ;;  %v6298_v20 = vld [vmem:[#allocation24 + $0x64] sm:$0xf0] }
 0x565   : > { %2110 = vadd.xlane.f32.xlu0 %v2109_v3  ;;  %v5580_v3 = vor.u32 %v6402_v18, %v5579_v2  ;;  %v5453_v2 = vld [vmem:[#allocation24 + $0x2a8] sm:$0xf0]  ;;  %v6362_v23 = vld [vmem:[#allocation24 + $0x264] sm:$0xf0] }
 0x566   : > { %3031 = vmatpush.bf16.msra.mxu2 %v5328_v22  ;;  %v5456_v18 = vor.u32 %v6366_v15, %v5453_v2  ;;  %v5420_v10 = vor.u32 %v6362_v23, %v5419_v21  ;;  %v6347_v21 = vld [vmem:[#allocation24 + $0x1ec] sm:$0xf0] }
 0x567   : > { %3017 = vmatpush.bf16.msra.mxu1 %v5580_v3  ;;  %3046 = vmatpush.bf16.msra.mxu3 %v5552_v35  ;;  %v5163_v3 = vld [vmem:[#allocation24 + $0x48] sm:$0xf] }
 0x568   : > { %3005 = vmatpush.bf16.msra.mxu0 %v5260_v27  ;;  %v5164_v22 = vor.u32 %v6298_v20, %v5163_v3  ;;  %v5388_v27 = vor.u32 %v6354_v37, %v5387_v34  ;;  %v5363_v20 = vld [vmem:[#allocation24 + $0x1d0] sm:$0xf] }
 0x569   : > { %v6403_v37 = vld [vmem:[#allocation24 + $0x3ac] sm:$0xf0] }
 0x56a   : > { %3032 = vmatpush.bf16.msra.mxu2 %v5296_v32  ;;  %v5131_v32 = vld [vmem:[#allocation24 + $0x8] sm:$0xf] }
 0x56b   : > { %3018 = vmatpush.bf16.msra.mxu1 %v5548_v31  ;;  %3047 = vmatpush.bf16.msra.mxu3 %v5520_v49  ;;  %v5424_v31 = vor.u32 %v6358_v28, %v5421_v29  ;;  %v5132_v35 = vor.u32 %v6290_v33, %v5131_v32  ;;  %v5621_v28 = vld [vmem:[#allocation24 + $0x3f0] sm:$0xf0]  ;;  %v6339_v32 = vld [vmem:[#allocation24 + $0x1ac] sm:$0xf0] }
 0x56c   : > { %3006 = vmatpush.bf16.msra.mxu0 %v5228_v53 }
 0x56e   : > { %3033 = vmatpush.bf16.msra.mxu2 %v5264_v46 }
 0x56f   : > { %3019 = vmatpush.bf16.msra.mxu1 %v5516_v45  ;;  %3048 = vmatpush.bf16.msra.mxu3 %v5488_v5  ;;  %v5392_v45 = vor.u32 %v6350_v41, %v5389_v44  ;;  %v2082_v5 = vld [vmem:[#allocation23] sm:$0x3] }
 0x570   : > { %3007 = vmatpush.bf16.msra.mxu0 %v5196_v8  ;;  %v2150_v1 = vperm.slane %v2082_v5, 0  ;;  %v2151_v13 = vperm.slane %v2082_v5, 1  ;;  %v6387_v5 = vld [vmem:[#allocation24 + $0x32c] sm:$0xf0] }
 0x572   : > { %3034 = vmatpush.bf16.msra.mxu2 %v5232_v61  ;;  %v2081_v61 = vld [vmem:[#allocation21] sm:$0x3] }
 0x573   : > { %3020 = vmatpush.bf16.msra.mxu1 %v5484_v60  ;;  %3049 = vmatpush.bf16.msra.mxu3 %v5456_v18  ;;  %v2141_v43 = vperm.slane %v2081_v61, 0  ;;  %v2142_v36 = vperm.slane %v2081_v61, 1  ;;  %v6323_v61 = vld [vmem:[#allocation24 + $0x12c] sm:$0xf0] }
 0x574   : > { %3008 = vmatpush.bf16.msra.mxu0 %v5164_v22  ;;  %v6343_v22 = vld [vmem:[#allocation24 + $0x1d4] sm:$0xf] }
 0x576   : > { %3035 = vmatpush.bf16.msra.mxu2 %v5200_v63 }
 0x577   : > { %3021 = vmatpush.bf16.msra.mxu1 %v5452_v14  ;;  %3050 = vmatpush.bf16.msra.mxu3 %v5424_v31  ;;  %v5331_v31 = vld [vmem:[#allocation24 + $0x190] sm:$0xf] }
 0x578   : > { %3009 = vmatpush.bf16.msra.mxu0 %v5132_v35  ;;  %v5587_v35 = vld [vmem:[#allocation24 + $0x390] sm:$0xf]  ;;  %v5332_v41 = vor.u32 %v6339_v32, %v5331_v31 }
 0x579   : > { %v5588_v44 = vor.u32 %v6403_v37, %v5587_v35 }
 0x57a   : > { %3036 = vmatpush.bf16.msra.mxu2 %v5168_v26  ;;  %v6407_v26 = vld [vmem:[#allocation24 + $0x3d4] sm:$0xf] }
 0x57b   : > { %3022 = vmatpush.bf16.msra.mxu1 %v5420_v10  ;;  %3051 = vmatpush.bf16.msra.mxu3 %v5392_v45  ;;  %v5365_v10 = vld [vmem:[#allocation24 + $0x1f0] sm:$0xf0]  ;;  %v5624_v34 = vor.u32 %v6407_v26, %v5621_v28  ;;  %v5299_v45 = vld [vmem:[#allocation24 + $0x150] sm:$0xf] }
 0x57c   : > { %v5368_v33 = vor.u32 %v6343_v22, %v5365_v10  ;;  %v5203_v22 = vld [vmem:[#allocation24 + $0x90] sm:$0xf]  ;;  %v6303_v26 = vld [vmem:[#allocation24 + $0x94] sm:$0xf] }
 0x57d   : > { %v6371_v10 = vld [vmem:[#allocation24 + $0x2ac] sm:$0xf0]  ;;  %v5205_v28 = vld [vmem:[#allocation24 + $0xb0] sm:$0xf0] }
 0x57e   : > { %3037 = vmatpush.bf16.msra.mxu2 %v5136_v40  ;;  %v5589_v40 = vld [vmem:[#allocation24 + $0x3b0] sm:$0xf0]  ;;  %v5208_v35 = vor.u32 %v6303_v26, %v5205_v28  ;;  %v5563_v26 = vld [vmem:[#allocation24 + $0x358] sm:$0xf] }
 0x57f   : > { %3023 = vmatpush.bf16.msra.mxu1 %v5388_v27  ;;  %v6399_v27 = vld [vmem:[#allocation24 + $0x394] sm:$0xf]  ;;  %v6396_v28 = vld [vmem:[#allocation24 + $0x374] sm:$0xf0] }
 0x5d0   : > { %v2108_v19 = vpop.xlane.xlu2 %2107 }
 0x5d1   : > { %v2112_v4 = vmul.f32 %v2108_v19, %v7633_v59 }
 0x5d3   : > { %v2114_v30 = vadd.f32 1e-05, %v2112_v4  ;;  %v5619_v4 = vld [vmem:[#allocation24 + $0x3d0] sm:$0xf] }
 0x5d5   : > { %6756 = vrsqrt.f32 %v2114_v30  ;;  %vm2122_vm9 = vweird.f32 %v2114_v30 }
 0x5d8   : > { %v2111_v46 = vpop.xlane.xlu0 %2110 }
 0x5d9   : > { %v2113_v47 = vmul.f32 %v2111_v46, %v7633_v59  ;;  %v6331_v46 = vld [vmem:[#allocation24 + $0x16c] sm:$0xf0] }
 0x5db   : > { %v6757_v48 = vpop.eup %6756  ;;  %v2115_v49 = vadd.f32 1e-05, %v2113_v47  ;;  %v5336_v47 = vor.u32 %v6335_v38, %v5333_v0  ;;  %v5427_v38 = vld [vmem:[#allocation24 + $0x250] sm:$0xf] }
 0x5dc   : > { %v2117_v50 = vmul.f32 %v6757_v48, %v2114_v30  ;;  %vm2123_vm8 = vweird.f32 %v6757_v48  ;;  %v6363_v0 = vld [vmem:[#allocation24 + $0x26c] sm:$0xf0] }
 0x5dd   : > { %6758 = vrsqrt.f32 %v2115_v49  ;;  %vm2124_vm10 = vmor %vm2122_vm9, %vm2123_vm8  ;;  %vm2132_vm12 = vweird.f32 %v2115_v49 }
 0x5de   : > { %v2118_v51 = vmul.f32 %v6757_v48, %v2117_v50  ;;  %v6395_v50 = vld [vmem:[#allocation24 + $0x36c] sm:$0xf0] }
 0x5e0   : > { %v2119_v52 = vmul.f32 0.5, %v2118_v51  ;;  %v6327_v51 = vld [vmem:[#allocation24 + $0x154] sm:$0xf] }
 0x5e2   : > { %v2120_v53 = vsub.f32 1.5, %v2119_v52  ;;  %v5301_v52 = vld [vmem:[#allocation24 + $0x170] sm:$0xf0] }
 0x5e3   : > { %v6759_v56 = vpop.eup %6758 }
 0x5e4   : > { %v2121_v57 = vmul.f32 %v6757_v48, %v2120_v53  ;;  %v2127_v58 = vmul.f32 %v6759_v56, %v2115_v49  ;;  %vm2133_vm11 = vweird.f32 %v6759_v56  ;;  %v5555_v49 = vld [vmem:[#allocation24 + $0x350] sm:$0xf]  ;;  %v6391_v53 = vld [vmem:[#allocation24 + $0x354] sm:$0xf] }
 0x5e5   : > { %vm2134_vm13 = vmor %vm2132_vm12, %vm2133_vm11 }
 0x5e6   : > { %v2128_v60 = vmul.f32 %v6759_v56, %v2127_v58  ;;  %v2125_v59 = vsel %vm2124_vm10, %v6757_v48, %v2121_v57  ;;  %v5592_v48 = vor.u32 %v6399_v27, %v5589_v40  ;;  %v5300_v57 = vor.u32 %v6331_v46, %v5299_v45  ;;  %v6295_v27 = vld [vmem:[#allocation24 + $0x54] sm:$0xf]  ;;  %v5139_v45 = vld [vmem:[#allocation24 + $0x10] sm:$0xf] }
 0x5e7   : > { %v2136_v7 = vmul.f32 %v2125_v59, %v7725_v11  ;;  %v2137_v8 = vmul.f32 %v2125_v59, %v7728_v12  ;;  %v6411_v11 = vld [vmem:[#allocation24 + $0x3ec] sm:$0xf0]  ;;  %v5556_v58 = vor.u32 %v6395_v50, %v5555_v49  ;;  %v5304_v59 = vor.u32 %v6327_v51, %v5301_v52  ;;  %v5173_v40 = vld [vmem:[#allocation24 + $0x70] sm:$0xf0] }
 0x5e8   : > { %v2129_v62 = vmul.f32 0.5, %v2128_v60  ;;  %v5267_v60 = vld [vmem:[#allocation24 + $0x110] sm:$0xf]  ;;  %v5176_v51 = vor.u32 %v6295_v27, %v5173_v40  ;;  %v5531_v27 = vld [vmem:[#allocation24 + $0x318] sm:$0xf] }
 0x5e9   : > { %v2145_v63 = vmul.f32 %v2141_v43, %v2136_v7  ;;  %v2146_v15 = vmul.f32 %v2142_v36, %v2137_v8  ;;  %v6383_v7 = vld [vmem:[#allocation24 + $0x314] sm:$0xf]  ;;  %v5395_v49 = vld [vmem:[#allocation24 + $0x210] sm:$0xf]  ;;  %v6388_v40 = vld [vmem:[#allocation24 + $0x334] sm:$0xf0] }
 0x5ea   : > { %v2130_v39 = vsub.f32 1.5, %v2129_v62  ;;  %v5525_v8 = vld [vmem:[#allocation24 + $0x330] sm:$0xf0]  ;;  %v6355_v50 = vld [vmem:[#allocation24 + $0x22c] sm:$0xf0] }
 0x5eb   : > { %v2154_v12 = vadd.f32 %v2150_v1, %v2145_v63  ;;  %v2155_v23 = vadd.f32 %v2151_v13, %v2146_v15  ;;  %v5528_v15 = vor.u32 %v6383_v7, %v5525_v8  ;;  %v6408_v7 = vld [vmem:[#allocation24 + $0x3dc] sm:$0xf] }
 0x5ec   : > { %v2131_v9 = vmul.f32 %v6759_v56, %v2130_v39  ;;  %v5523_v39 = vld [vmem:[#allocation24 + $0x310] sm:$0xf]  ;;  %v5629_v8 = vld [vmem:[#allocation24 + $0x3f8] sm:$0xf0] }
 0x5ee   : > { %v2135_v14 = vsel %vm2134_vm13, %v6759_v56, %v2131_v9  ;;  %v5557_v56 = vld [vmem:[#allocation24 + $0x370] sm:$0xf0]  ;;  %v5268_v9 = vor.u32 %v6323_v61, %v5267_v60  ;;  %v5371_v60 = vld [vmem:[#allocation24 + $0x1d8] sm:$0xf] }
 0x5ef   : > { %v2138_v2 = vmul.f32 %v2135_v14, %v7736_v16  ;;  %v2139_v18 = vmul.f32 %v2135_v14, %v7739_v17  ;;  %v5364_v16 = vor.u32 %v6347_v21, %v5363_v20  ;;  %v5620_v17 = vor.u32 %v6411_v11, %v5619_v4  ;;  %v6315_v14 = vld [vmem:[#allocation24 + $0xec] sm:$0xf0]  ;;  %v6375_v20 = vld [vmem:[#allocation24 + $0x2d4] sm:$0xf]  ;;  %v6348_v61 = vld [vmem:[#allocation24 + $0x1f4] sm:$0xf0] }
 0x5f0   : > { %v5560_v62 = vor.u32 %v6391_v53, %v5557_v56  ;;  %v5493_v21 = vld [vmem:[#allocation24 + $0x2f0] sm:$0xf0] }
 0x5f1   : > { %v2147_v19 = vmul.f32 %v2141_v43, %v2138_v2  ;;  %v2148_v3 = vmul.f32 %v2142_v36, %v2139_v18  ;;  %v6319_v43 = vld [vmem:[#allocation24 + $0x114] sm:$0xf]  ;;  %v5491_v2 = vld [vmem:[#allocation24 + $0x2d0] sm:$0xf] }
 0x5f2   : > { %v5269_v36 = vld [vmem:[#allocation24 + $0x130] sm:$0xf0]  ;;  %v6379_v18 = vld [vmem:[#allocation24 + $0x2ec] sm:$0xf0] }
 0x5f3   : > { %v2156_v24 = vadd.f32 %v2150_v1, %v2147_v19  ;;  %v2157_v25 = vadd.f32 %v2151_v13, %v2148_v3  ;;  %v5524_v1 = vor.u32 %v6387_v5, %v5523_v39  ;;  %v5235_v13 = vld [vmem:[#allocation24 + $0xd0] sm:$0xf]  ;;  %v5272_v63 = vor.u32 %v6319_v43, %v5269_v36  ;;  %v6311_v19 = vld [vmem:[#allocation24 + $0xd4] sm:$0xf]  ;;  %v6344_v39 = vld [vmem:[#allocation24 + $0x1dc] sm:$0xf] }
 0x5f4   : > { %v5237_v3 = vld [vmem:[#allocation24 + $0xf0] sm:$0xf0]  ;;  %v5236_v4 = vor.u32 %v6315_v14, %v5235_v13  ;;  %v5492_v11 = vor.u32 %v6379_v18, %v5491_v2  ;;  %v5396_v43 = vor.u32 %v6355_v50, %v5395_v49  ;;  %v5373_v36 = vld [vmem:[#allocation24 + $0x1f8] sm:$0xf0]  ;;  %v5372_v13 = vor.u32 %v6348_v61, %v5371_v60  ;;  %v5243_v49 = vld [vmem:[#allocation24 + $0xd8] sm:$0xf] }
 0x5f5   : > { %v7751_v29 = vpack.c.bf16 %v2156_v24, %v2154_v12  ;;  %v7753_v30 = vpack.c.bf16 %v2157_v25, %v2155_v23  ;;  %v6307_v12 = vld [vmem:[#allocation24 + $0xac] sm:$0xf0]  ;;  %v5240_v23 = vor.u32 %v6311_v19, %v5237_v3  ;;  %v5496_v24 = vor.u32 %v6375_v20, %v5493_v21  ;;  %v6287_v53 = vld [vmem:[#allocation24 + $0x14] sm:$0xf]  ;;  %v5595_v19 = vld [vmem:[#allocation24 + $0x398] sm:$0xf] }
 0x5f6   : > { %v5459_v25 = vld [vmem:[#allocation24 + $0x290] sm:$0xf]  ;;  %v5204_v31 = vor.u32 %v6307_v12, %v5203_v22  ;;  %v5141_v56 = vld [vmem:[#allocation24 + $0x30] sm:$0xf0]  ;;  %v5376_v2 = vor.u32 %v6344_v39, %v5373_v36  ;;  %v5632_v18 = vor.u32 %v6408_v7, %v5629_v8  ;;  %v6404_v3 = vld [vmem:[#allocation24 + $0x3b4] sm:$0xf0] }
 0x5f7   : > { %2954 = vmatmul.bf16.vlgmr.msrb.gmra.mxu0 %v7751_v29  ;;  %2968 = vmatmul.bf16.vlgmr.msrb.gmra.mxu1 %v7753_v30  ;;  %v5460_v32 = vor.u32 %v6371_v10, %v5459_v25  ;;  %v6336_v20 = vld [vmem:[#allocation24 + $0x19c] sm:$0xf]  ;;  %v5596_v12 = vor.u32 %v6404_v3, %v5595_v19  ;;  %v6316_v50 = vld [vmem:[#allocation24 + $0xf4] sm:$0xf0] }
 0x5f8   : > { %2982 = vmatmul.bf16.vlgmr.msrb.gmra.mxu2 %v7751_v29  ;;  %2996 = vmatmul.bf16.vlgmr.msrb.gmra.mxu3 %v7753_v30  ;;  %v5341_v21 = vld [vmem:[#allocation24 + $0x1b8] sm:$0xf0]  ;;  %v5211_v39 = vld [vmem:[#allocation24 + $0x98] sm:$0xf] }
 0x5f9   : > { %3058 = vmatpush.bf16.msrb.mxu0 %v5364_v16  ;;  %3072 = vmatpush.bf16.msrb.mxu1 %v5620_v17  ;;  %v6367_v16 = vld [vmem:[#allocation24 + $0x294] sm:$0xf]  ;;  %v5344_v25 = vor.u32 %v6336_v20, %v5341_v21  ;;  %v6376_v60 = vld [vmem:[#allocation24 + $0x2dc] sm:$0xf]  ;;  %v5467_v7 = vld [vmem:[#allocation24 + $0x298] sm:$0xf] }
 0x5fa   : > { %3086 = vmatpush.bf16.msrb.mxu2 %v5368_v33  ;;  %3100 = vmatpush.bf16.msrb.mxu3 %v5624_v34  ;;  %v5461_v17 = vld [vmem:[#allocation24 + $0x2b0] sm:$0xf0]  ;;  %v5171_v33 = vld [vmem:[#allocation24 + $0x50] sm:$0xf]  ;;  %v5501_v61 = vld [vmem:[#allocation24 + $0x2f8] sm:$0xf0] }
 0x5fb   : > { %v6299_v34 = vld [vmem:[#allocation24 + $0x6c] sm:$0xf0]  ;;  %v5464_v37 = vor.u32 %v6367_v16, %v5461_v17  ;;  %v6328_v16 = vld [vmem:[#allocation24 + $0x15c] sm:$0xf]  ;;  %v5504_v36 = vor.u32 %v6376_v60, %v5501_v61  ;;  %v6372_v8 = vld [vmem:[#allocation24 + $0x2b4] sm:$0xf0] }
 0x5fc   : > { %v5172_v46 = vor.u32 %v6299_v34, %v5171_v33  ;;  %v5309_v17 = vld [vmem:[#allocation24 + $0x178] sm:$0xf0]  ;;  %v5564_v34 = vor.u32 %v6396_v28, %v5563_v26  ;;  %v5435_v20 = vld [vmem:[#allocation24 + $0x258] sm:$0xf] }
 0x5fd   : > { %3059 = vmatpush.bf16.msrb.mxu0 %v5332_v41  ;;  %3073 = vmatpush.bf16.msrb.mxu1 %v5588_v44  ;;  %v6359_v41 = vld [vmem:[#allocation24 + $0x254] sm:$0xf]  ;;  %v6364_v21 = vld [vmem:[#allocation24 + $0x274] sm:$0xf0] }
 0x5fe   : > { %3087 = vmatpush.bf16.msrb.mxu2 %v5336_v47  ;;  %3101 = vmatpush.bf16.msrb.mxu3 %v5592_v48  ;;  %v5429_v44 = vld [vmem:[#allocation24 + $0x270] sm:$0xf0]  ;;  %v5428_v47 = vor.u32 %v6363_v0, %v5427_v38  ;;  %v6291_v48 = vld [vmem:[#allocation24 + $0x2c] sm:$0xf0]  ;;  %v5312_v38 = vor.u32 %v6328_v16, %v5309_v17  ;;  %v5403_v26 = vld [vmem:[#allocation24 + $0x218] sm:$0xf] }
 0x5ff   : > { %v5432_v52 = vor.u32 %v6359_v41, %v5429_v44  ;;  %v5140_v5 = vor.u32 %v6291_v48, %v5139_v45  ;;  %v6320_v41 = vld [vmem:[#allocation24 + $0x11c] sm:$0xf]  ;;  %v5532_v48 = vor.u32 %v6388_v40, %v5531_v27  ;;  %v6356_v17 = vld [vmem:[#allocation24 + $0x234] sm:$0xf0] }
 0x600   : > { %v5277_v44 = vld [vmem:[#allocation24 + $0x138] sm:$0xf0]  ;;  %v5404_v40 = vor.u32 %v6356_v17, %v5403_v26  ;;  %v5707_v26 = vld [vmem:[#allocation26 + $0x90] sm:$0xf]  ;;  %v5811_v17 = vld [vmem:[#allocation26 + $0x160] sm:$0xf] }
 0x601   : > { %3060 = vmatpush.bf16.msrb.mxu0 %v5300_v57  ;;  %3074 = vmatpush.bf16.msrb.mxu1 %v5556_v58  ;;  %v6351_v57 = vld [vmem:[#allocation24 + $0x214] sm:$0xf]  ;;  %v6384_v45 = vld [vmem:[#allocation24 + $0x31c] sm:$0xf] }
 0x602   : > { %3088 = vmatpush.bf16.msrb.mxu2 %v5304_v59  ;;  %3102 = vmatpush.bf16.msrb.mxu3 %v5560_v62  ;;  %v5397_v58 = vld [vmem:[#allocation24 + $0x230] sm:$0xf0]  ;;  %v5627_v59 = vld [vmem:[#allocation24 + $0x3d8] sm:$0xf] }
 0x603   : > { %v6412_v62 = vld [vmem:[#allocation24 + $0x3f4] sm:$0xf0] }
 0x604   : > { %v5628_v14 = vor.u32 %v6412_v62, %v5627_v59  ;;  %v5244_v59 = vor.u32 %v6316_v50, %v5243_v49  ;;  %v5747_v49 = vld [vmem:[#allocation26 + $0xe0] sm:$0xf]  ;;  %v6442_v50 = vld [vmem:[#allocation26 + $0xe4] sm:$0xf0] }
 0x605   : > { %3061 = vmatpush.bf16.msrb.mxu0 %v5268_v9  ;;  %3075 = vmatpush.bf16.msrb.mxu1 %v5524_v1  ;;  %v5144_v9 = vor.u32 %v6287_v53, %v5141_v56  ;;  %v5400_v1 = vor.u32 %v6351_v57, %v5397_v58  ;;  %v5499_v53 = vld [vmem:[#allocation24 + $0x2d8] sm:$0xf]  ;;  %v6312_v57 = vld [vmem:[#allocation24 + $0xdc] sm:$0xf] }
 0x606   : > { %3089 = vmatpush.bf16.msrb.mxu2 %v5272_v63  ;;  %3103 = vmatpush.bf16.msrb.mxu3 %v5528_v15  ;;  %v5339_v63 = vld [vmem:[#allocation24 + $0x198] sm:$0xf]  ;;  %v5245_v58 = vld [vmem:[#allocation24 + $0xf8] sm:$0xf0] }
 0x607   : > { %3010 = vmatmul.bf16.vlgmr.msra.gmra.mxu0 %v7751_v29  ;;  %3024 = vmatmul.bf16.vlgmr.msra.gmra.mxu1 %v7753_v30  ;;  %v6340_v15 = vld [vmem:[#allocation24 + $0x1b4] sm:$0xf0] }
 0x608   : > { %3038 = vmatmul.bf16.vlgmr.msra.gmra.mxu2 %v7751_v29  ;;  %3052 = vmatmul.bf16.vlgmr.msra.gmra.mxu3 %v7753_v30  ;;  %v5340_v22 = vor.u32 %v6340_v15, %v5339_v63  ;;  %v6380_v56 = vld [vmem:[#allocation24 + $0x2f4] sm:$0xf0]  ;;  %v5468_v15 = vor.u32 %v6372_v8, %v5467_v7  ;;  %v5731_v7 = vld [vmem:[#allocation26 + $0xc0] sm:$0xf]  ;;  %v6438_v8 = vld [vmem:[#allocation26 + $0xc4] sm:$0xf0] }
 0x609   : > { %3062 = vmatpush.bf16.msrb.mxu0 %v5236_v4  ;;  %3076 = vmatpush.bf16.msrb.mxu1 %v5492_v11  ;;  %v6400_v4 = vld [vmem:[#allocation24 + $0x39c] sm:$0xf]  ;;  %v5500_v62 = vor.u32 %v6380_v56, %v5499_v53  ;;  %v5748_v53 = vor.u32 %v6442_v50, %v5747_v49  ;;  %v6424_v56 = vld [vmem:[#allocation26 + $0x54] sm:$0xf0]  ;;  %v5931_v50 = vld [vmem:[#allocation26 + $0x250] sm:$0xf] }
 0x60a   : > { %3090 = vmatpush.bf16.msrb.mxu2 %v5240_v23  ;;  %3104 = vmatpush.bf16.msrb.mxu3 %v5496_v24  ;;  %v5597_v11 = vld [vmem:[#allocation24 + $0x3b8] sm:$0xf0]  ;;  %v5307_v23 = vld [vmem:[#allocation24 + $0x158] sm:$0xf] }
 0x60b   : > { %v6332_v24 = vld [vmem:[#allocation24 + $0x174] sm:$0xf0]  ;;  %v5600_v10 = vor.u32 %v6400_v4, %v5597_v11  ;;  %v6296_v4 = vld [vmem:[#allocation24 + $0x5c] sm:$0xf] }
 0x60c   : > { %v5308_v33 = vor.u32 %v6332_v24, %v5307_v23  ;;  %v5181_v11 = vld [vmem:[#allocation24 + $0x78] sm:$0xf0]  ;;  %v5436_v24 = vor.u32 %v6364_v21, %v5435_v20  ;;  %v5635_v21 = vld [vmem:[#allocation26] sm:$0xf] }
 0x60d   : > { %3063 = vmatpush.bf16.msrb.mxu0 %v5204_v31  ;;  %3077 = vmatpush.bf16.msrb.mxu1 %v5460_v32  ;;  %v6392_v31 = vld [vmem:[#allocation24 + $0x35c] sm:$0xf]  ;;  %v5184_v28 = vor.u32 %v6296_v4, %v5181_v11  ;;  %v6414_v4 = vld [vmem:[#allocation26 + $0x4] sm:$0xf0]  ;;  %v5819_v11 = vld [vmem:[#allocation26 + $0x170] sm:$0xf] }
 0x60e   : > { %3091 = vmatpush.bf16.msrb.mxu2 %v5208_v35  ;;  %3105 = vmatpush.bf16.msrb.mxu3 %v5464_v37  ;;  %v5565_v32 = vld [vmem:[#allocation24 + $0x378] sm:$0xf0]  ;;  %v5275_v35 = vld [vmem:[#allocation24 + $0x118] sm:$0xf] }
 0x60f   : > { %v6324_v37 = vld [vmem:[#allocation24 + $0x134] sm:$0xf0]  ;;  %v5568_v0 = vor.u32 %v6392_v31, %v5565_v32  ;;  %v6288_v31 = vld [vmem:[#allocation24 + $0x1c] sm:$0xf] }
 0x610   : > { %v5149_v32 = vld [vmem:[#allocation24 + $0x38] sm:$0xf0] }
 0x611   : > { %3064 = vmatpush.bf16.msrb.mxu0 %v5172_v46  ;;  %3078 = vmatpush.bf16.msrb.mxu1 %v5428_v47  ;;  %v5533_v46 = vld [vmem:[#allocation24 + $0x338] sm:$0xf0]  ;;  %v5276_v47 = vor.u32 %v6324_v37, %v5275_v35  ;;  %v5691_v35 = vld [vmem:[#allocation26 + $0x70] sm:$0xf]  ;;  %v6428_v37 = vld [vmem:[#allocation26 + $0x74] sm:$0xf0] }
 0x612   : > { %3092 = vmatpush.bf16.msrb.mxu2 %v5176_v51  ;;  %3106 = vmatpush.bf16.msrb.mxu3 %v5432_v52  ;;  %v5280_v51 = vor.u32 %v6320_v41, %v5277_v44  ;;  %v5536_v52 = vor.u32 %v6384_v45, %v5533_v46  ;;  %v5152_v41 = vor.u32 %v6288_v31, %v5149_v32  ;;  %v5683_v46 = vld [vmem:[#allocation26 + $0x60] sm:$0xf]  ;;  %v6458_v31 = vld [vmem:[#allocation26 + $0x164] sm:$0xf0] }
 0x613   : > { %v5692_v45 = vor.u32 %v6428_v37, %v5691_v35  ;;  %v5812_v32 = vor.u32 %v6458_v31, %v5811_v17  ;;  %v5699_v37 = vld [vmem:[#allocation26 + $0x80] sm:$0xf]  ;;  %v6482_v17 = vld [vmem:[#allocation26 + $0x224] sm:$0xf0] }
 0x615   : > { %3065 = vmatpush.bf16.msrb.mxu0 %v5140_v5  ;;  %3079 = vmatpush.bf16.msrb.mxu1 %v5396_v43  ;;  %v6308_v5 = vld [vmem:[#allocation24 + $0xb4] sm:$0xf0]  ;;  %v5248_v43 = vor.u32 %v6312_v57, %v5245_v58  ;;  %v5739_v57 = vld [vmem:[#allocation26 + $0xd0] sm:$0xf] }
 0x616   : > { %3093 = vmatpush.bf16.msrb.mxu2 %v5144_v9  ;;  %3107 = vmatpush.bf16.msrb.mxu3 %v5400_v1  ;;  %v6304_v9 = vld [vmem:[#allocation24 + $0x9c] sm:$0xf]  ;;  %v5212_v63 = vor.u32 %v6308_v5, %v5211_v39  ;;  %v6440_v58 = vld [vmem:[#allocation26 + $0xd4] sm:$0xf0]  ;;  %v5659_v5 = vld [vmem:[#allocation26 + $0x30] sm:$0xf] }
 0x617   : > { %v5213_v1 = vld [vmem:[#allocation24 + $0xb8] sm:$0xf0]  ;;  %v5740_v61 = vor.u32 %v6440_v58, %v5739_v57  ;;  %v6003_v58 = vld [vmem:[#allocation26 + $0x2e0] sm:$0xf] }
 0x618   : > { %3066 = vmatmul.bf16.vlgmr.msrb.gmra.mxu0 %v7751_v29  ;;  %3080 = vmatmul.bf16.vlgmr.msrb.gmra.mxu1 %v7753_v30  ;;  %v5216_v19 = vor.u32 %v6304_v9, %v5213_v1  ;;  %v5732_v9 = vor.u32 %v6438_v8, %v5731_v7  ;;  %v6418_v1 = vld [vmem:[#allocation26 + $0x24] sm:$0xf0]  ;;  %v5867_v8 = vld [vmem:[#allocation26 + $0x1d0] sm:$0xf] }
 0x619   : > { %3114 = vmatpush.bf16.msra.mxu0 %v5372_v13  ;;  %3128 = vmatpush.bf16.msra.mxu1 %v5628_v14  ;;  %v6368_v13 = vld [vmem:[#allocation24 + $0x29c] sm:$0xf] }
 0x61a   : > { %3142 = vmatpush.bf16.msra.mxu2 %v5376_v2  ;;  %3156 = vmatpush.bf16.msra.mxu3 %v5632_v18  ;;  %v5469_v14 = vld [vmem:[#allocation24 + $0x2b8] sm:$0xf0]  ;;  %v5179_v2 = vld [vmem:[#allocation24 + $0x58] sm:$0xf] }
 0x61b   : > { %3094 = vmatmul.bf16.vlgmr.msrb.gmra.mxu2 %v7751_v29  ;;  %3108 = vmatmul.bf16.vlgmr.msrb.gmra.mxu3 %v7753_v30  ;;  %v6300_v18 = vld [vmem:[#allocation24 + $0x74] sm:$0xf0]  ;;  %v5472_v3 = vor.u32 %v6368_v13, %v5469_v14  ;;  %v5723_v13 = vld [vmem:[#allocation26 + $0xb0] sm:$0xf] }
 0x61c   : > { %v5180_v23 = vor.u32 %v6300_v18, %v5179_v2  ;;  %v6436_v14 = vld [vmem:[#allocation26 + $0xb4] sm:$0xf0] }
 0x61d   : > { %3115 = vmatpush.bf16.msra.mxu0 %v5340_v22  ;;  %3129 = vmatpush.bf16.msra.mxu1 %v5596_v12  ;;  %v6360_v22 = vld [vmem:[#allocation24 + $0x25c] sm:$0xf]  ;;  %v6416_v2 = vld [vmem:[#allocation26 + $0x14] sm:$0xf0] }
 0x61e   : > { %3143 = vmatpush.bf16.msra.mxu2 %v5344_v25  ;;  %3157 = vmatpush.bf16.msra.mxu3 %v5600_v10  ;;  %v5437_v12 = vld [vmem:[#allocation24 + $0x278] sm:$0xf0]  ;;  %v5147_v25 = vld [vmem:[#allocation24 + $0x18] sm:$0xf] }
 0x61f   : > { %v6292_v10 = vld [vmem:[#allocation24 + $0x34] sm:$0xf0]  ;;  %v5440_v16 = vor.u32 %v6360_v22, %v5437_v12  ;;  %v5636_v22 = vor.u32 %v6414_v4, %v5635_v21  ;;  %v6470_v21 = vld [vmem:[#allocation26 + $0x1c4] sm:$0xf0] }
 0x620   : > { %v5148_v27 = vor.u32 %v6292_v10, %v5147_v25  ;;  %v6460_v12 = vld [vmem:[#allocation26 + $0x174] sm:$0xf0] }
 0x621   : > { %3116 = vmatpush.bf16.msra.mxu0 %v5308_v33  ;;  %3130 = vmatpush.bf16.msra.mxu1 %v5564_v34  ;;  %v6352_v33 = vld [vmem:[#allocation24 + $0x21c] sm:$0xf]  ;;  %v5820_v25 = vor.u32 %v6460_v12, %v5819_v11  ;;  %v5987_v12 = vld [vmem:[#allocation26 + $0x2c0] sm:$0xf] }
 0x622   : > { %3144 = vmatpush.bf16.msra.mxu2 %v5312_v38  ;;  %3158 = vmatpush.bf16.msra.mxu3 %v5568_v0  ;;  %v5405_v34 = vld [vmem:[#allocation24 + $0x238] sm:$0xf0]  ;;  %v5755_v38 = vld [vmem:[#allocation26 + $0xf0] sm:$0xf]  ;;  %v6444_v0 = vld [vmem:[#allocation26 + $0xf4] sm:$0xf0] }
 0x623   : > { %v5408_v44 = vor.u32 %v6352_v33, %v5405_v34  ;;  %v5939_v33 = vld [vmem:[#allocation26 + $0x260] sm:$0xf]  ;;  %v6490_v34 = vld [vmem:[#allocation26 + $0x264] sm:$0xf0] }
 0x624   : > { %v5940_v35 = vor.u32 %v6490_v34, %v5939_v33  ;;  %v5851_v33 = vld [vmem:[#allocation26 + $0x1b0] sm:$0xf]  ;;  %v6468_v34 = vld [vmem:[#allocation26 + $0x1b4] sm:$0xf0] }
 0x625   : > { %3117 = vmatpush.bf16.msra.mxu0 %v5276_v47  ;;  %3131 = vmatpush.bf16.msra.mxu1 %v5532_v48  ;;  %v5756_v47 = vor.u32 %v6444_v0, %v5755_v38  ;;  %v6426_v48 = vld [vmem:[#allocation26 + $0x64] sm:$0xf0] }
 0x626   : > { %3145 = vmatpush.bf16.msra.mxu2 %v5280_v51  ;;  %3159 = vmatpush.bf16.msra.mxu3 %v5536_v52  ;;  %v5684_v51 = vor.u32 %v6426_v48, %v5683_v46  ;;  %v5675_v52 = vld [vmem:[#allocation26 + $0x50] sm:$0xf]  ;;  %v6430_v38 = vld [vmem:[#allocation26 + $0x84] sm:$0xf0] }
 0x627   : > { %v5676_v60 = vor.u32 %v6424_v56, %v5675_v52  ;;  %v5700_v0 = vor.u32 %v6430_v38, %v5699_v37  ;;  %v5803_v46 = vld [vmem:[#allocation26 + $0x150] sm:$0xf]  ;;  %v6474_v56 = vld [vmem:[#allocation26 + $0x1e4] sm:$0xf0]  ;;  %v5852_v37 = vor.u32 %v6468_v34, %v5851_v33 }
 0x628   : > { %v5979_v38 = vld [vmem:[#allocation26 + $0x2b0] sm:$0xf]  ;;  %v6462_v33 = vld [vmem:[#allocation26 + $0x184] sm:$0xf0] }
 0x629   : > { %3118 = vmatpush.bf16.msra.mxu0 %v5244_v59  ;;  %3132 = vmatpush.bf16.msra.mxu1 %v5500_v62  ;;  %v5667_v59 = vld [vmem:[#allocation26 + $0x40] sm:$0xf]  ;;  %v6422_v62 = vld [vmem:[#allocation26 + $0x44] sm:$0xf0] }
 0x62a   : > { %3146 = vmatpush.bf16.msra.mxu2 %v5248_v43  ;;  %3160 = vmatpush.bf16.msra.mxu3 %v5504_v36  ;;  %v5668_v39 = vor.u32 %v6422_v62, %v5667_v59  ;;  %v6420_v43 = vld [vmem:[#allocation26 + $0x34] sm:$0xf0]  ;;  %v5795_v59 = vld [vmem:[#allocation26 + $0x140] sm:$0xf]  ;;  %v6454_v62 = vld [vmem:[#allocation26 + $0x144] sm:$0xf0] }
 0x62b   : > { %v5660_v36 = vor.u32 %v6420_v43, %v5659_v5  ;;  %v5796_v5 = vor.u32 %v6454_v62, %v5795_v59  ;;  %v5923_v43 = vld [vmem:[#allocation26 + $0x240] sm:$0xf]  ;;  %v6498_v59 = vld [vmem:[#allocation26 + $0x2a4] sm:$0xf0] }
 0x62d   : > { %3119 = vmatpush.bf16.msra.mxu0 %v5212_v63  ;;  %3133 = vmatpush.bf16.msra.mxu1 %v5468_v15  ;;  %v5724_v63 = vor.u32 %v6436_v14, %v5723_v13  ;;  %v5643_v15 = vld [vmem:[#allocation26 + $0x10] sm:$0xf] }
 0x62e   : > { %3147 = vmatpush.bf16.msra.mxu2 %v5216_v19  ;;  %3161 = vmatpush.bf16.msra.mxu3 %v5472_v3  ;;  %v5644_v18 = vor.u32 %v6416_v2, %v5643_v15  ;;  %v5715_v19 = vld [vmem:[#allocation26 + $0xa0] sm:$0xf]  ;;  %v6434_v3 = vld [vmem:[#allocation26 + $0xa4] sm:$0xf0]  ;;  %v6452_v15 = vld [vmem:[#allocation26 + $0x134] sm:$0xf0] }
 0x62f   : > { %v5716_v20 = vor.u32 %v6434_v3, %v5715_v19  ;;  %v6484_v19 = vld [vmem:[#allocation26 + $0x234] sm:$0xf0] }
 0x631   : > { %3120 = vmatpush.bf16.msra.mxu0 %v5180_v23  ;;  %3134 = vmatpush.bf16.msra.mxu1 %v5436_v24  ;;  %v5947_v23 = vld [vmem:[#allocation26 + $0x270] sm:$0xf]  ;;  %v6492_v24 = vld [vmem:[#allocation26 + $0x274] sm:$0xf0] }
 0x632   : > { %3148 = vmatpush.bf16.msra.mxu2 %v5184_v28  ;;  %3162 = vmatpush.bf16.msra.mxu3 %v5440_v16  ;;  %v5948_v10 = vor.u32 %v6492_v24, %v5947_v23  ;;  %v6432_v28 = vld [vmem:[#allocation26 + $0x94] sm:$0xf0]  ;;  %v6502_v23 = vld [vmem:[#allocation26 + $0x2c4] sm:$0xf0] }
 0x633   : > { %v5708_v16 = vor.u32 %v6432_v28, %v5707_v26  ;;  %v6450_v26 = vld [vmem:[#allocation26 + $0x124] sm:$0xf0] }
 0x635   : > { %3121 = vmatpush.bf16.msra.mxu0 %v5148_v27  ;;  %3135 = vmatpush.bf16.msra.mxu1 %v5404_v40  ;;  %v5883_v27 = vld [vmem:[#allocation26 + $0x1f0] sm:$0xf]  ;;  %v6476_v40 = vld [vmem:[#allocation26 + $0x1f4] sm:$0xf0] }
 0x636   : > { %3149 = vmatpush.bf16.msra.mxu2 %v5152_v41  ;;  %3163 = vmatpush.bf16.msra.mxu3 %v5408_v44  ;;  %v6011_v41 = vld [vmem:[#allocation26 + $0x2f0] sm:$0xf]  ;;  %v5884_v44 = vor.u32 %v6476_v40, %v5883_v27 }
 0x638   : > { %3122 = vmatmul.bf16.vlgmr.msra.gmra.mxu0 %v7751_v29  ;;  %3136 = vmatmul.bf16.vlgmr.msra.gmra.mxu1 %v7753_v30 }
 0x639   : > { %4096 = vmatpush.bf16.msrb.mxu0 %v5692_v45  ;;  %4110 = vmatpush.bf16.msrb.mxu1 %v5756_v47  ;;  %v6508_v45 = vld [vmem:[#allocation26 + $0x2f4] sm:$0xf0] }
 0x63a   : > { %3150 = vmatmul.bf16.vlgmr.msra.gmra.mxu2 %v7751_v29  ;;  %3164 = vmatmul.bf16.vlgmr.msra.gmra.mxu3 %v7753_v30  ;;  %v5651_v29 = vld [vmem:[#allocation26 + $0x20] sm:$0xf]  ;;  %v6456_v47 = vld [vmem:[#allocation26 + $0x154] sm:$0xf0]  ;;  %v6012_v48 = vor.u32 %v6508_v45, %v6011_v41  ;;  %v5771_v41 = vld [vmem:[#allocation26 + $0x110] sm:$0xf] }
 0x63b   : > { %v5652_v30 = vor.u32 %v6418_v1, %v5651_v29  ;;  %4124 = vmatpush.bf16.msrb.mxu2 %v5820_v25  ;;  %v5804_v49 = vor.u32 %v6456_v47, %v5803_v46  ;;  %4138 = vmatpush.bf16.msrb.mxu3 %v5884_v44  ;;  %v5995_v1 = vld [vmem:[#allocation26 + $0x2d0] sm:$0xf]  ;;  %v5988_v25 = vor.u32 %v6502_v23, %v5987_v12  ;;  %v6448_v44 = vld [vmem:[#allocation26 + $0x114] sm:$0xf0] }
 0x63c   : > { %v5772_v45 = vor.u32 %v6448_v44, %v5771_v41  ;;  %v5899_v46 = vld [vmem:[#allocation26 + $0x210] sm:$0xf]  ;;  %v6480_v47 = vld [vmem:[#allocation26 + $0x214] sm:$0xf0] }
 0x63d   : > { %4097 = vmatpush.bf16.msrb.mxu0 %v5684_v51  ;;  %4111 = vmatpush.bf16.msrb.mxu1 %v5748_v53  ;;  %v6488_v51 = vld [vmem:[#allocation26 + $0x254] sm:$0xf0]  ;;  %v5875_v53 = vld [vmem:[#allocation26 + $0x1e0] sm:$0xf] }
 0x63e   : > { %v5932_v52 = vor.u32 %v6488_v51, %v5931_v50  ;;  %v5876_v57 = vor.u32 %v6474_v56, %v5875_v53  ;;  %v5900_v51 = vor.u32 %v6480_v47, %v5899_v46  ;;  %v6466_v53 = vld [vmem:[#allocation26 + $0x1a4] sm:$0xf0]  ;;  %v6496_v12 = vld [vmem:[#allocation26 + $0x294] sm:$0xf0]  ;;  %v6139_v46 = vld [vmem:[#allocation26 + $0x3f0] sm:$0xf] }
 0x63f   : > { %4125 = vmatpush.bf16.msrb.mxu2 %v5812_v32 }
 0x640   : > { %4139 = vmatpush.bf16.msrb.mxu3 %v5876_v57 }
 0x641   : > { %4098 = vmatpush.bf16.msrb.mxu0 %v5676_v60  ;;  %4112 = vmatpush.bf16.msrb.mxu1 %v5740_v61  ;;  %v6506_v60 = vld [vmem:[#allocation26 + $0x2e4] sm:$0xf0] }
 0x642   : > { %v6004_v61 = vor.u32 %v6506_v60, %v6003_v58 }
 0x643   : > { %4126 = vmatpush.bf16.msrb.mxu2 %v5804_v49 }
 0x645   : > { %4099 = vmatpush.bf16.msrb.mxu0 %v5668_v39  ;;  %4113 = vmatpush.bf16.msrb.mxu1 %v5732_v9  ;;  %v7774_v39 = vld [vmem:[%s8066_s1] sm:$0xff]  ;;  %v6472_v9 = vld [vmem:[#allocation26 + $0x1d4] sm:$0xf0] }
 0x646   : > { %v5868_v29 = vor.u32 %v6472_v9, %v5867_v8  ;;  %v2290_v13 = vperm.slane %v7774_v39, 0  ;;  %v6446_v8 = vld [vmem:[#allocation26 + $0x104] sm:$0xf0]  ;;  %v5891_v9 = vld [vmem:[#allocation26 + $0x200] sm:$0xf] }
 0x647   : > { %4127 = vmatpush.bf16.msrb.mxu2 %v5796_v5 }
 0x648   : > { %4140 = vmatpush.bf16.msrb.mxu3 %v5868_v29  ;;  %v6478_v29 = vld [vmem:[#allocation26 + $0x204] sm:$0xf0] }
 0x649   : > { %4100 = vmatpush.bf16.msrb.mxu0 %v5660_v36  ;;  %4114 = vmatpush.bf16.msrb.mxu1 %v5724_v63  ;;  %v6486_v36 = vld [vmem:[#allocation26 + $0x244] sm:$0xf0]  ;;  %v5787_v63 = vld [vmem:[#allocation26 + $0x130] sm:$0xf] }
 0x64a   : > { %v5924_v7 = vor.u32 %v6486_v36, %v5923_v43  ;;  %v5788_v2 = vor.u32 %v6452_v15, %v5787_v63  ;;  %v5763_v36 = vld [vmem:[#allocation26 + $0x100] sm:$0xf]  ;;  %v5892_v63 = vor.u32 %v6478_v29, %v5891_v9  ;;  %v6075_v15 = vld [vmem:[#allocation26 + $0x370] sm:$0xf] }
 0x64b   : > { %v6051_v29 = vld [vmem:[#allocation26 + $0x340] sm:$0xf] }
 0x64c   : > { %4128 = vmatpush.bf16.msrb.mxu2 %v5788_v2  ;;  %v6524_v2 = vld [vmem:[#allocation26 + $0x374] sm:$0xf0] }
 0x64d   : > { %4101 = vmatpush.bf16.msrb.mxu0 %v5652_v30  ;;  %4115 = vmatpush.bf16.msrb.mxu1 %v5716_v20  ;;  %v6504_v30 = vld [vmem:[#allocation26 + $0x2d4] sm:$0xf0]  ;;  %v5859_v20 = vld [vmem:[#allocation26 + $0x1c0] sm:$0xf] }
 0x64e   : > { %v5996_v14 = vor.u32 %v6504_v30, %v5995_v1 }
 0x651   : > { %4102 = vmatpush.bf16.msrb.mxu0 %v5644_v18  ;;  %4116 = vmatpush.bf16.msrb.mxu1 %v5708_v16  ;;  %v5915_v18 = vld [vmem:[#allocation26 + $0x230] sm:$0xf]  ;;  %v5907_v16 = vld [vmem:[#allocation26 + $0x220] sm:$0xf] }
 0x652   : > { %v5916_v3 = vor.u32 %v6484_v19, %v5915_v18  ;;  %v5908_v32 = vor.u32 %v6482_v17, %v5907_v16  ;;  %v5835_v18 = vld [vmem:[#allocation26 + $0x190] sm:$0xf]  ;;  %v2292_v19 = vperm.slane %v7774_v39, 2 }
 0x655   : > { %4103 = vmatpush.bf16.msrb.mxu0 %v5636_v22  ;;  %4117 = vmatpush.bf16.msrb.mxu1 %v5700_v0  ;;  %v5860_v22 = vor.u32 %v6470_v21, %v5859_v20  ;;  %v6500_v0 = vld [vmem:[#allocation26 + $0x2b4] sm:$0xf0] }
 0x656   : > { %v5980_v40 = vor.u32 %v6500_v0, %v5979_v38  ;;  %v6464_v20 = vld [vmem:[#allocation26 + $0x194] sm:$0xf0] }
 0x657   : > { %4141 = vmatpush.bf16.msrb.mxu3 %v5860_v22  ;;  %v5963_v22 = vld [vmem:[#allocation26 + $0x290] sm:$0xf] }
 0x659   : > { %4152 = vmatpush.bf16.msra.mxu0 %v5948_v10  ;;  %4166 = vmatpush.bf16.msra.mxu1 %v6012_v48  ;;  %v5779_v10 = vld [vmem:[#allocation26 + $0x120] sm:$0xf] }
 0x65a   : > { %v5780_v28 = vor.u32 %v6450_v26, %v5779_v10  ;;  %v6522_v10 = vld [vmem:[#allocation26 + $0x364] sm:$0xf0] }
 0x65b   : > { %4142 = vmatpush.bf16.msrb.mxu3 %v5852_v37 }
 0x65c   : > { %4129 = vmatpush.bf16.msrb.mxu2 %v5780_v28 }
 0x65d   : > { %4153 = vmatpush.bf16.msra.mxu0 %v5940_v35  ;;  %4167 = vmatpush.bf16.msra.mxu1 %v6004_v61  ;;  %v2291_v35 = vperm.slane %v7774_v39, 1  ;;  %v5971_v61 = vld [vmem:[#allocation26 + $0x2a0] sm:$0xf] }
 0x65e   : > { %v5972_v43 = vor.u32 %v6498_v59, %v5971_v61  ;;  %v6131_v59 = vld [vmem:[#allocation26 + $0x3e0] sm:$0xf] }
 0x660   : > { %4130 = vmatpush.bf16.msrb.mxu2 %v5772_v45  ;;  %v6494_v45 = vld [vmem:[#allocation26 + $0x284] sm:$0xf0] }
 0x661   : > { %4154 = vmatpush.bf16.msra.mxu0 %v5932_v52  ;;  %4168 = vmatpush.bf16.msra.mxu1 %v5996_v14  ;;  %v5843_v52 = vld [vmem:[#allocation26 + $0x1a0] sm:$0xf]  ;;  %v5764_v14 = vor.u32 %v6446_v8, %v5763_v36 }
 0x662   : > { %v5844_v60 = vor.u32 %v6466_v53, %v5843_v52  ;;  %v6059_v53 = vld [vmem:[#allocation26 + $0x350] sm:$0xf] }
 0x664   : > { %4143 = vmatpush.bf16.msrb.mxu3 %v5844_v60  ;;  %4131 = vmatpush.bf16.msrb.mxu2 %v5764_v14  ;;  %v2293_v60 = vperm.slane %v7774_v39, 3 }
 0x665   : > { %4155 = vmatpush.bf16.msra.mxu0 %v5924_v7  ;;  %4169 = vmatpush.bf16.msra.mxu1 %v5988_v25  ;;  %v6067_v25 = vld [vmem:[#allocation26 + $0x360] sm:$0xf] }
 0x666   : > { %v6068_v17 = vor.u32 %v6522_v10, %v6067_v25  ;;  %v6043_v10 = vld [vmem:[#allocation26 + $0x330] sm:$0xf] }
 0x669   : > { %4156 = vmatpush.bf16.msra.mxu0 %v5916_v3  ;;  %4170 = vmatpush.bf16.msra.mxu1 %v5980_v40  ;;  %v6076_v3 = vor.u32 %v6524_v2, %v6075_v15  ;;  %v5955_v40 = vld [vmem:[#allocation26 + $0x280] sm:$0xf]  ;;  %v6518_v15 = vld [vmem:[#allocation26 + $0x344] sm:$0xf0] }
 0x66b   : > { %4180 = vmatpush.bf16.msra.mxu2 %v6076_v3 }
 0x66d   : > { %4157 = vmatpush.bf16.msra.mxu0 %v5908_v32  ;;  %4171 = vmatpush.bf16.msra.mxu1 %v5972_v43  ;;  %v5827_v32 = vld [vmem:[#allocation26 + $0x180] sm:$0xf]  ;;  %v6538_v43 = vld [vmem:[#allocation26 + $0x3e4] sm:$0xf0] }
 0x66e   : > { %v6132_v9 = vor.u32 %v6538_v43, %v6131_v59 }
 0x66f   : > { %4181 = vmatpush.bf16.msra.mxu2 %v6068_v17 }
 0x671   : > { %4158 = vmatpush.bf16.msra.mxu0 %v5900_v51 }
 0x674   : > { %v2955_v4 = vpop.f32.mrf.mxu0  ;;  %v2969_v11 = vpop.f32.mrf.mxu1 }
 0x675   : > { %v2956_v24 = vadd.f32 %v2955_v4, %v2290_v13  ;;  %4159 = vmatpush.bf16.msra.mxu0 %v5892_v63 }
 0x677   : > { %v7777_v31 = vadd.f32 %v2969_v11, %v2956_v24  ;;  %v5836_v11 = vor.u32 %v6464_v20, %v5835_v18  ;;  %v5964_v24 = vor.u32 %v6496_v12, %v5963_v22  ;;  %v6052_v20 = vor.u32 %v6518_v15, %v6051_v29  ;;  %v6536_v12 = vld [vmem:[#allocation26 + $0x3d4] sm:$0xf0] }
 0x679   : > { %v3170_v27 = vmul.f32 %v7777_v31, %v7777_v31  ;;  %4144 = vmatpush.bf16.msrb.mxu3 %v5836_v11  ;;  %4172 = vmatpush.bf16.msra.mxu1 %v5964_v24 }
 0x67b   : > { %v3186_v48 = vmul.f32 %v3170_v27, %v7777_v31  ;;  %v2983_v49 = vpop.f32.mrf.mxu2  ;;  %v2997_v50 = vpop.f32.mrf.mxu3  ;;  %v5828_v27 = vor.u32 %v6462_v33, %v5827_v32 }
 0x67c   : > { %v2984_v56 = vadd.f32 %v2983_v49, %v2291_v35  ;;  %v2957_v57 = vpop.f32.mrf.mxu0  ;;  %v2971_v58 = vpop.f32.mrf.mxu1  ;;  %v5956_v49 = vor.u32 %v6494_v45, %v5955_v40 }
 0x67d   : > { %v3202_v62 = vmul.f32 0.044715, %v3186_v48  ;;  %v2958_v5 = vadd.f32 %v2957_v57, %v2290_v13  ;;  %4145 = vmatpush.bf16.msrb.mxu3 %v5828_v27 }
 0x67e   : > { %v7785_v7 = vadd.f32 %v2997_v50, %v2984_v56  ;;  %v6540_v50 = vld [vmem:[#allocation26 + $0x3f4] sm:$0xf0]  ;;  %4173 = vmatpush.bf16.msra.mxu1 %v5956_v49 }
 0x67f   : > { %v3218_v1 = vadd.f32 %v3202_v62, %v7777_v31  ;;  %v7788_v30 = vadd.f32 %v2971_v58, %v2958_v5  ;;  %v6140_v52 = vor.u32 %v6540_v50, %v6139_v46  ;;  %v6520_v56 = vld [vmem:[#allocation26 + $0x354] sm:$0xf0]  ;;  %v2294_v46 = vperm.slane %v7774_v39, 4 }
 0x680   : > { %v3171_v13 = vmul.f32 %v7785_v7, %v7785_v7  ;;  %v6060_v61 = vor.u32 %v6520_v56, %v6059_v53  ;;  %v2295_v53 = vperm.slane %v7774_v39, 5  ;;  %v6427_v56 = vld [vmem:[#allocation26 + $0x74] sm:$0xf] }
 0x681   : > { %v3234_v21 = vmul.f32 0.7978846, %v3218_v1  ;;  %v3178_v4 = vmul.f32 %v7788_v30, %v7788_v30  ;;  %4194 = vmatpush.bf16.msra.mxu3 %v6140_v52 }
 0x682   : > { %v3187_v23 = vmul.f32 %v3171_v13, %v7785_v7  ;;  %4182 = vmatpush.bf16.msra.mxu2 %v6060_v61 }
 0x683   : > { %v3194_v26 = vmul.f32 %v3178_v4, %v7788_v30  ;;  %v2985_v28 = vpop.f32.mrf.mxu2  ;;  %v2999_v16 = vpop.f32.mrf.mxu3  ;;  %6760 = vtanh.f32 %v3234_v21  ;;  %v6123_v21 = vld [vmem:[#allocation26 + $0x3d0] sm:$0xf] }
 0x684   : > { %v3203_v34 = vmul.f32 0.044715, %v3187_v23  ;;  %v2986_v37 = vadd.f32 %v2985_v28, %v2291_v35  ;;  %v3011_v38 = vpop.f32.mrf.mxu0  ;;  %v3025_v0 = vpop.f32.mrf.mxu1  ;;  %v6124_v25 = vor.u32 %v6536_v12, %v6123_v21  ;;  %v6512_v21 = vld [vmem:[#allocation26 + $0x314] sm:$0xf0] }
 0x685   : > { %v3210_v41 = vmul.f32 0.044715, %v3194_v26  ;;  %v3012_v44 = vadd.f32 %v3011_v38, %v2292_v19  ;;  %4195 = vmatpush.bf16.msra.mxu3 %v6132_v9  ;;  %v6516_v26 = vld [vmem:[#allocation26 + $0x334] sm:$0xf0] }
 0x686   : > { %v3219_v47 = vadd.f32 %v3203_v34, %v7785_v7  ;;  %v7802_v48 = vadd.f32 %v2999_v16, %v2986_v37  ;;  %4183 = vmatpush.bf16.msra.mxu2 %v6052_v20  ;;  %v6044_v17 = vor.u32 %v6516_v26, %v6043_v10  ;;  %v6115_v34 = vld [vmem:[#allocation26 + $0x3c0] sm:$0xf]  ;;  %v6534_v37 = vld [vmem:[#allocation26 + $0x3c4] sm:$0xf0]  ;;  %v6532_v9 = vld [vmem:[#allocation26 + $0x3b4] sm:$0xf0] }
 0x687   : > { %v3226_v35 = vadd.f32 %v3210_v41, %v7788_v30  ;;  %v7805_v51 = vadd.f32 %v3025_v0, %v3012_v44  ;;  %v6116_v41 = vor.u32 %v6534_v37, %v6115_v34  ;;  %v5685_v20 = vld [vmem:[#allocation26 + $0x68] sm:$0xf0]  ;;  %v5757_v37 = vld [vmem:[#allocation26 + $0xf8] sm:$0xf0] }
 0x688   : > { %v3235_v57 = vmul.f32 0.7978846, %v3219_v47  ;;  %v3179_v58 = vmul.f32 %v7802_v48, %v7802_v48  ;;  %v6035_v47 = vld [vmem:[#allocation26 + $0x320] sm:$0xf] }
 0x689   : > { %v3242_v62 = vmul.f32 0.7978846, %v3226_v35  ;;  %v3172_v5 = vmul.f32 %v7805_v51, %v7805_v51  ;;  %v6761_v36 = vpop.eup %6760  ;;  %4196 = vmatpush.bf16.msra.mxu3 %v6124_v25  ;;  %v6530_v25 = vld [vmem:[#allocation26 + $0x3a4] sm:$0xf0] }
 0x68a   : > { %6762 = vtanh.f32 %v3235_v57  ;;  %v3195_v8 = vmul.f32 %v3179_v58, %v7802_v48  ;;  %v3266_v4 = vadd.f32 1.0, %v6761_v36  ;;  %4184 = vmatpush.bf16.msra.mxu2 %v6044_v17  ;;  %v6514_v57 = vld [vmem:[#allocation26 + $0x324] sm:$0xf0] }
 0x68b   : > { %6764 = vtanh.f32 %v3242_v62  ;;  %v3188_v1 = vmul.f32 %v3172_v5, %v7805_v51  ;;  %v3039_v14 = vpop.f32.mrf.mxu2  ;;  %v3053_v63 = vpop.f32.mrf.mxu3  ;;  %v5693_v62 = vld [vmem:[#allocation26 + $0x78] sm:$0xf0]  ;;  %v6036_v36 = vor.u32 %v6514_v57, %v6035_v47 }
 0x68c   : > { %v3211_v2 = vmul.f32 0.044715, %v3195_v8  ;;  %v3040_v18 = vadd.f32 %v3039_v14, %v2293_v60  ;;  %v3013_v13 = vpop.f32.mrf.mxu0  ;;  %v3027_v3 = vpop.f32.mrf.mxu1  ;;  %v3282_v0 = vmul.f32 0.5, %v3266_v4  ;;  %v6107_v8 = vld [vmem:[#allocation26 + $0x3b0] sm:$0xf] }
 0x68d   : > { %v3204_v11 = vmul.f32 0.044715, %v3188_v1  ;;  %v3014_v22 = vadd.f32 %v3013_v13, %v2292_v19  ;;  %4197 = vmatpush.bf16.msra.mxu3 %v6116_v41  ;;  %v5696_v13 = vor.u32 %v6427_v56, %v5693_v62  ;;  %v5677_v41 = vld [vmem:[#allocation26 + $0x58] sm:$0xf0] }
 0x68e   : > { %v3227_v23 = vadd.f32 %v3211_v2, %v7802_v48  ;;  %v7819_v24 = vadd.f32 %v3053_v63, %v3040_v18  ;;  %v3298_v5 = vmul.f32 %v3282_v0, %v7777_v31  ;;  %v6108_v2 = vor.u32 %v6532_v9, %v6107_v8  ;;  %v6027_v18 = vld [vmem:[#allocation26 + $0x310] sm:$0xf]  ;;  %4185 = vmatpush.bf16.msra.mxu2 %v6036_v36  ;;  %v6019_v0 = vld [vmem:[#allocation26 + $0x300] sm:$0xf]  ;;  %v6441_v8 = vld [vmem:[#allocation26 + $0xe4] sm:$0xf] }
 0x68f   : > { %v3220_v28 = vadd.f32 %v3204_v11, %v7805_v51  ;;  %v7822_v16 = vadd.f32 %v3027_v3, %v3014_v22  ;;  %v6425_v3 = vld [vmem:[#allocation26 + $0x64] sm:$0xf]  ;;  %v6028_v12 = vor.u32 %v6512_v21, %v6027_v18  ;;  %v5749_v9 = vld [vmem:[#allocation26 + $0xe8] sm:$0xf0] }
 0x690   : > { %v6763_v32 = vpop.eup %6762  ;;  %v3243_v33 = vmul.f32 0.7978846, %v3227_v23  ;;  %v3173_v19 = vmul.f32 %v7819_v24, %v7819_v24  ;;  %v6099_v23 = vld [vmem:[#allocation26 + $0x3a0] sm:$0xf]  ;;  %v5688_v34 = vor.u32 %v6425_v3, %v5685_v20 }
 0x691   : > { %v6765_v38 = vpop.eup %6764  ;;  %v3236_v27 = vmul.f32 0.7978846, %v3220_v28  ;;  %v3180_v40 = vmul.f32 %v7822_v16, %v7822_v16  ;;  %v3267_v49 = vadd.f32 1.0, %v6763_v32  ;;  %v6443_v32 = vld [vmem:[#allocation26 + $0xf4] sm:$0xf]  ;;  %4198 = vmatpush.bf16.msra.mxu3 %v6108_v2 }
 0x692   : > { %v3274_v44 = vadd.f32 1.0, %v6765_v38  ;;  %6766 = vtanh.f32 %v3243_v33  ;;  %v3189_v45 = vmul.f32 %v3173_v19, %v7819_v24  ;;  %v6423_v38 = vld [vmem:[#allocation26 + $0x54] sm:$0xf]  ;;  %4186 = vmatpush.bf16.msra.mxu2 %v6028_v12 }
 0x693   : > { %v3196_v50 = vmul.f32 %v3180_v40, %v7822_v16  ;;  %v3041_v35 = vpop.f32.mrf.mxu2  ;;  %v3055_v52 = vpop.f32.mrf.mxu3  ;;  %6768 = vtanh.f32 %v3236_v27  ;;  %v3283_v10 = vmul.f32 0.5, %v3267_v49  ;;  %v5680_v36 = vor.u32 %v6423_v38, %v5677_v41 }
 0x694   : > { %v3290_v58 = vmul.f32 0.5, %v3274_v44  ;;  %v3205_v61 = vmul.f32 0.044715, %v3189_v45  ;;  %v3042_v59 = vadd.f32 %v3041_v35, %v2293_v60  ;;  %v6100_v44 = vor.u32 %v6530_v25, %v6099_v23  ;;  %v6510_v45 = vld [vmem:[#allocation26 + $0x304] sm:$0xf0] }
 0x695   : > { %v3212_v43 = vmul.f32 0.044715, %v3196_v50  ;;  %v3067_v63 = vpop.f32.mrf.mxu0  ;;  %v3081_v15 = vpop.f32.mrf.mxu1  ;;  %v6020_v49 = vor.u32 %v6510_v45, %v6019_v0  ;;  %v3299_v50 = vmul.f32 %v3283_v10, %v7785_v7  ;;  %v6528_v7 = vld [vmem:[#allocation26 + $0x394] sm:$0xf0]  ;;  %v6439_v25 = vld [vmem:[#allocation26 + $0xd4] sm:$0xf] }
 0x696   : > { %v3306_v29 = vmul.f32 %v3290_v58, %v7788_v30  ;;  %v3221_v1 = vadd.f32 %v3205_v61, %v7819_v24  ;;  %v7837_v14 = vadd.f32 %v3055_v52, %v3042_v59  ;;  %v3068_v31 = vadd.f32 %v3067_v63, %v2294_v46  ;;  %4199 = vmatpush.bf16.msra.mxu3 %v6100_v44  ;;  %v6091_v61 = vld [vmem:[#allocation26 + $0x390] sm:$0xf]  ;;  %v5741_v10 = vld [vmem:[#allocation26 + $0xd8] sm:$0xf0]  ;;  %v6459_v0 = vld [vmem:[#allocation26 + $0x174] sm:$0xf] }
 0x697   : > { %v3228_v60 = vadd.f32 %v3212_v43, %v7822_v16  ;;  %v5760_v43 = vor.u32 %v6443_v32, %v5757_v37  ;;  %4187 = vmatpush.bf16.msra.mxu2 %v6020_v49  ;;  %v6092_v63 = vor.u32 %v6528_v7, %v6091_v61  ;;  %v5744_v45 = vor.u32 %v6439_v25, %v5741_v10  ;;  %v5733_v61 = vld [vmem:[#allocation26 + $0xc8] sm:$0xf0]  ;;  %v5805_v25 = vld [vmem:[#allocation26 + $0x158] sm:$0xf0] }
 0x698   : > { %v6767_v4 = vpop.eup %6766  ;;  %v3237_v30 = vmul.f32 0.7978846, %v3221_v1  ;;  %v3181_v11 = vmul.f32 %v7837_v14, %v7837_v14  ;;  %v7844_v22 = vpack.c.bf16 %v3306_v29, %v3298_v5  ;;  %v7846_v17 = vadd.f32 %v3081_v15, %v3068_v31  ;;  %v5669_v31 = vld [vmem:[#allocation26 + $0x48] sm:$0xf0] }
 0x699   : > { %v3275_v26 = vadd.f32 1.0, %v6767_v4  ;;  %v3244_v28 = vmul.f32 0.7978846, %v3228_v60  ;;  %v6769_v33 = vpop.eup %6768  ;;  %v6421_v60 = vld [vmem:[#allocation26 + $0x44] sm:$0xf] }
 0x69a   : > { %v3197_v19 = vmul.f32 %v3181_v11, %v7837_v14  ;;  %4104 = vmatmul.bf16.vlgmr.msrb.gmra.mxu0 %v7844_v22  ;;  %v3174_v40 = vmul.f32 %v7846_v17, %v7846_v17  ;;  %v3268_v52 = vadd.f32 1.0, %v6769_v33  ;;  %4200 = vmatpush.bf16.msra.mxu3 %v6092_v63  ;;  %v6083_v4 = vld [vmem:[#allocation26 + $0x380] sm:$0xf]  ;;  %v5672_v33 = vor.u32 %v6421_v60, %v5669_v31  ;;  %v5725_v63 = vld [vmem:[#allocation26 + $0xb8] sm:$0xf0] }
 0x69b   : > { %v3291_v27 = vmul.f32 0.5, %v3275_v26  ;;  %6770 = vtanh.f32 %v3244_v28  ;;  %4208 = vmatpush.bf16.msrb.mxu0 %v5696_v13  ;;  %v6415_v31 = vld [vmem:[#allocation26 + $0x14] sm:$0xf] }
 0x69c   : > { %6772 = vtanh.f32 %v3237_v30  ;;  %v3213_v47 = vmul.f32 0.044715, %v3197_v19  ;;  %v3190_v56 = vmul.f32 %v3174_v40, %v7846_v17  ;;  %v3284_v3 = vmul.f32 0.5, %v3268_v52  ;;  %v6526_v30 = vld [vmem:[#allocation26 + $0x384] sm:$0xf0] }
 0x69d   : > { %v3307_v35 = vmul.f32 %v3291_v27, %v7802_v48  ;;  %v3069_v5 = vpop.f32.mrf.mxu0  ;;  %v3083_v18 = vpop.f32.mrf.mxu1  ;;  %v6084_v26 = vor.u32 %v6526_v30, %v6083_v4  ;;  %v6419_v19 = vld [vmem:[#allocation26 + $0x34] sm:$0xf]  ;;  %v5821_v27 = vld [vmem:[#allocation26 + $0x178] sm:$0xf0]  ;;  %v6437_v52 = vld [vmem:[#allocation26 + $0xc4] sm:$0xf] }
 0x69e   : > { %v3095_v57 = vpop.f32.mrf.mxu2  ;;  %v3109_v58 = vpop.f32.mrf.mxu3  ;;  %v3229_v59 = vadd.f32 %v3213_v47, %v7837_v14  ;;  %v3206_v29 = vmul.f32 0.044715, %v3190_v56  ;;  %v3070_v48 = vadd.f32 %v3069_v5, %v2294_v46  ;;  %v5752_v46 = vor.u32 %v6441_v8, %v5749_v9  ;;  %v6457_v8 = vld [vmem:[#allocation26 + $0x164] sm:$0xf]  ;;  %v5885_v30 = vld [vmem:[#allocation26 + $0x1f8] sm:$0xf0] }
 0x69f   : > { %v3096_v62 = vadd.f32 %v3095_v57, %v2295_v53  ;;  %v7860_v1 = vpack.c.bf16 %v3307_v35, %v3299_v50  ;;  %4209 = vmatpush.bf16.msrb.mxu0 %v5688_v34  ;;  %v5661_v34 = vld [vmem:[#allocation26 + $0x38] sm:$0xf0]  ;;  %4201 = vmatpush.bf16.msra.mxu3 %v6084_v26  ;;  %v3300_v47 = vmul.f32 %v3284_v3, %v7805_v51 }
 0x6a0   : > { %v3245_v15 = vmul.f32 0.7978846, %v3229_v59  ;;  %v3222_v20 = vadd.f32 %v3206_v29, %v7846_v17  ;;  %v7865_v21 = vadd.f32 %v3083_v18, %v3070_v48  ;;  %v6417_v59 = vld [vmem:[#allocation26 + $0x24] sm:$0xf]  ;;  %v6435_v48 = vld [vmem:[#allocation26 + $0xb4] sm:$0xf]  ;;  %v5736_v60 = vor.u32 %v6437_v52, %v5733_v61 }
 0x6a1   : > { %v7862_v2 = vadd.f32 %v3109_v58, %v3096_v62  ;;  %v6771_v13 = vpop.eup %6770  ;;  %4118 = vmatmul.bf16.vlgmr.msrb.gmra.mxu1 %v7860_v1  ;;  %v5664_v58 = vor.u32 %v6419_v19, %v5661_v34  ;;  %v5824_v62 = vor.u32 %v6459_v0, %v5821_v27  ;;  %v5728_v19 = vor.u32 %v6435_v48, %v5725_v63  ;;  %v5717_v34 = vld [vmem:[#allocation26 + $0xa8] sm:$0xf0]  ;;  %v6451_v48 = vld [vmem:[#allocation26 + $0x134] sm:$0xf]  ;;  %v5789_v63 = vld [vmem:[#allocation26 + $0x138] sm:$0xf0] }
 0x6a2   : > { %v6773_v11 = vpop.eup %6772  ;;  %v3276_v12 = vadd.f32 1.0, %v6771_v13  ;;  %6774 = vtanh.f32 %v3245_v15  ;;  %4222 = vmatpush.bf16.msrb.mxu1 %v5760_v43  ;;  %v3238_v28 = vmul.f32 0.7978846, %v3222_v20  ;;  %v3182_v32 = vmul.f32 %v7865_v21, %v7865_v21  ;;  %v6475_v13 = vld [vmem:[#allocation26 + $0x1f4] sm:$0xf] }
 0x6a3   : > { %v3175_v23 = vmul.f32 %v7862_v2, %v7862_v2  ;;  %4210 = vmatpush.bf16.msrb.mxu0 %v5680_v36  ;;  %v3269_v40 = vadd.f32 1.0, %v6773_v11  ;;  %v5653_v36 = vld [vmem:[#allocation26 + $0x28] sm:$0xf0] }
 0x6a4   : > { %v3292_v37 = vmul.f32 0.5, %v3276_v12  ;;  %v3198_v41 = vmul.f32 %v3182_v32, %v7865_v21  ;;  %6776 = vtanh.f32 %v3238_v28  ;;  %v5645_v12 = vld [vmem:[#allocation26 + $0x18] sm:$0xf0]  ;;  %v6433_v32 = vld [vmem:[#allocation26 + $0xa4] sm:$0xf] }
 0x6a5   : > { %v3191_v38 = vmul.f32 %v3175_v23, %v7862_v2  ;;  %v3285_v9 = vmul.f32 0.5, %v3269_v40  ;;  %v6455_v23 = vld [vmem:[#allocation26 + $0x154] sm:$0xf]  ;;  %v5648_v27 = vor.u32 %v6415_v31, %v5645_v12  ;;  %v5637_v40 = vld [vmem:[#allocation26 + $0x8] sm:$0xf0]  ;;  %v5720_v52 = vor.u32 %v6433_v32, %v5717_v34 }
 0x6a6   : > { %v3097_v44 = vpop.f32.mrf.mxu2  ;;  %v3308_v49 = vmul.f32 %v3292_v37, %v7822_v16  ;;  %4223 = vmatpush.bf16.msrb.mxu1 %v5752_v46  ;;  %v3214_v56 = vmul.f32 0.044715, %v3198_v41  ;;  %v3111_v57 = vpop.f32.mrf.mxu3  ;;  %v5656_v46 = vor.u32 %v6417_v59, %v5653_v36  ;;  %v6413_v37 = vld [vmem:[#allocation26 + $0x4] sm:$0xf]  ;;  %v5808_v41 = vor.u32 %v6455_v23, %v5805_v25  ;;  %v6471_v36 = vld [vmem:[#allocation26 + $0x1d4] sm:$0xf] }
 0x6a7   : > { %v3207_v50 = vmul.f32 0.044715, %v3191_v38  ;;  %v3098_v35 = vadd.f32 %v3097_v44, %v2295_v53  ;;  %4211 = vmatpush.bf16.msrb.mxu0 %v5672_v33  ;;  %v5813_v53 = vld [vmem:[#allocation26 + $0x168] sm:$0xf0]  ;;  %v3301_v26 = vmul.f32 %v3285_v9, %v7819_v24  ;;  %v5888_v38 = vor.u32 %v6475_v13, %v5885_v30  ;;  %v6473_v44 = vld [vmem:[#allocation26 + $0x1e4] sm:$0xf] }
 0x6a8   : > { %v6775_v5 = vpop.eup %6774  ;;  %v7881_v16 = vpack.c.bf16 %v3308_v49, %v3300_v47  ;;  %v3230_v29 = vadd.f32 %v3214_v56, %v7865_v21  ;;  %v5816_v4 = vor.u32 %v6457_v8, %v5813_v53  ;;  %v5877_v24 = vld [vmem:[#allocation26 + $0x1e8] sm:$0xf0]  ;;  %v2296_v47 = vperm.slane %v7774_v39, 6  ;;  %v6453_v49 = vld [vmem:[#allocation26 + $0x144] sm:$0xf] }
 0x6a9   : > { %v3223_v43 = vadd.f32 %v3207_v50, %v7862_v2  ;;  %v7879_v51 = vadd.f32 %v3111_v57, %v3098_v35  ;;  %v3277_v7 = vadd.f32 1.0, %v6775_v5  ;;  %v5797_v50 = vld [vmem:[#allocation26 + $0x148] sm:$0xf0]  ;;  %v6431_v56 = vld [vmem:[#allocation26 + $0x94] sm:$0xf]  ;;  %v5880_v57 = vor.u32 %v6473_v44, %v5877_v24 }
 0x6aa   : > { %4132 = vmatmul.bf16.vlgmr.msrb.gmra.mxu2 %v7881_v16  ;;  %4224 = vmatpush.bf16.msrb.mxu1 %v5744_v45  ;;  %v3246_v20 = vmul.f32 0.7978846, %v3230_v29  ;;  %v6777_v10 = vpop.eup %6776  ;;  %v5709_v5 = vld [vmem:[#allocation26 + $0x98] sm:$0xf0]  ;;  %v2297_v30 = vperm.slane %v7774_v39, 7 }
 0x6ab   : > { %v3239_v15 = vmul.f32 0.7978846, %v3223_v43  ;;  %v3183_v18 = vmul.f32 %v7879_v51, %v7879_v51  ;;  %v3293_v3 = vmul.f32 0.5, %v3277_v7  ;;  %4212 = vmatpush.bf16.msrb.mxu0 %v5664_v58  ;;  %4236 = vmatpush.bf16.msrb.mxu2 %v5824_v62  ;;  %v3270_v45 = vadd.f32 1.0, %v6777_v10  ;;  %v5869_v8 = vld [vmem:[#allocation26 + $0x1d8] sm:$0xf0] }
 0x6ac   : > { %6778 = vtanh.f32 %v3246_v20  ;;  %v5640_v62 = vor.u32 %v6413_v37, %v5637_v40  ;;  %v5800_v43 = vor.u32 %v6453_v49, %v5797_v50  ;;  %v5712_v13 = vor.u32 %v6431_v56, %v5709_v5  ;;  %v5701_v20 = vld [vmem:[#allocation26 + $0x88] sm:$0xf0]  ;;  %v6469_v12 = vld [vmem:[#allocation26 + $0x1c4] sm:$0xf]  ;;  %v6467_v50 = vld [vmem:[#allocation26 + $0x1b4] sm:$0xf] }
 0x6ad   : > { %v3199_v11 = vmul.f32 %v3183_v18, %v7879_v51  ;;  %v3309_v28 = vmul.f32 %v3293_v3, %v7837_v14  ;;  %6780 = vtanh.f32 %v3239_v15  ;;  %v3286_v9 = vmul.f32 0.5, %v3270_v45  ;;  %v6491_v15 = vld [vmem:[#allocation26 + $0x274] sm:$0xf]  ;;  %v5949_v18 = vld [vmem:[#allocation26 + $0x278] sm:$0xf0] }
 0x6ae   : > { %4225 = vmatpush.bf16.msrb.mxu1 %v5736_v60  ;;  %v6429_v3 = vld [vmem:[#allocation26 + $0x84] sm:$0xf]  ;;  %v5861_v23 = vld [vmem:[#allocation26 + $0x1c8] sm:$0xf0]  ;;  %v5997_v39 = vld [vmem:[#allocation26 + $0x2d8] sm:$0xf0] }
 0x6af   : > { %v3215_v33 = vmul.f32 0.044715, %v3199_v11  ;;  %v7890_v0 = vpack.c.bf16 %v3309_v28, %v3301_v26  ;;  %4213 = vmatpush.bf16.msrb.mxu0 %v5656_v46  ;;  %4237 = vmatpush.bf16.msrb.mxu2 %v5816_v4  ;;  %v5872_v46 = vor.u32 %v6471_v36, %v5869_v8  ;;  %v5792_v11 = vor.u32 %v6451_v48, %v5789_v63  ;;  %v6449_v28 = vld [vmem:[#allocation26 + $0x124] sm:$0xf]  ;;  %v5781_v32 = vld [vmem:[#allocation26 + $0x128] sm:$0xf0] }
 0x6b0   : > { %v3302_v25 = vmul.f32 %v3286_v9, %v7846_v17  ;;  %v5941_v44 = vld [vmem:[#allocation26 + $0x268] sm:$0xf0]  ;;  %v5864_v17 = vor.u32 %v6469_v12, %v5861_v23  ;;  %v5784_v49 = vor.u32 %v6449_v28, %v5781_v32  ;;  %v6013_v36 = vld [vmem:[#allocation26 + $0x2f8] sm:$0xf0]  ;;  %v6487_v9 = vld [vmem:[#allocation26 + $0x254] sm:$0xf] }
 0x6b1   : > { %v3231_v14 = vadd.f32 %v3215_v33, %v7879_v51  ;;  %4146 = vmatmul.bf16.vlgmr.msrb.gmra.mxu3 %v7890_v0  ;;  %v5952_v33 = vor.u32 %v6491_v15, %v5949_v18  ;;  %v6465_v18 = vld [vmem:[#allocation26 + $0x1a4] sm:$0xf]  ;;  %v6005_v23 = vld [vmem:[#allocation26 + $0x2e8] sm:$0xf0] }
 0x6b2   : > { %4226 = vmatpush.bf16.msrb.mxu1 %v5728_v19  ;;  %4250 = vmatpush.bf16.msrb.mxu3 %v5888_v38  ;;  %v6779_v58 = vpop.eup %6778  ;;  %v5704_v19 = vor.u32 %v6429_v3, %v5701_v20  ;;  %v6505_v12 = vld [vmem:[#allocation26 + $0x2e4] sm:$0xf]  ;;  %v5925_v28 = vld [vmem:[#allocation26 + $0x248] sm:$0xf0] }
 0x6b3   : > { %v3247_v35 = vmul.f32 0.7978846, %v3231_v14  ;;  %4214 = vmatpush.bf16.msrb.mxu0 %v5648_v27  ;;  %4238 = vmatpush.bf16.msrb.mxu2 %v5808_v41  ;;  %v6781_v53 = vpop.eup %6780  ;;  %v3278_v7 = vadd.f32 1.0, %v6779_v58  ;;  %v6489_v41 = vld [vmem:[#allocation26 + $0x264] sm:$0xf] }
 0x6b4   : > { %v3271_v4 = vadd.f32 1.0, %v6781_v53  ;;  %v5773_v58 = vld [vmem:[#allocation26 + $0x118] sm:$0xf0]  ;;  %v5944_v5 = vor.u32 %v6489_v41, %v5941_v44  ;;  %v6008_v44 = vor.u32 %v6505_v12, %v6005_v23 }
 0x6b5   : > { %v3123_v61 = vpop.f32.mrf.mxu0  ;;  %v3137_v59 = vpop.f32.mrf.mxu1  ;;  %6782 = vtanh.f32 %v3247_v35  ;;  %v3294_v60 = vmul.f32 0.5, %v3278_v7  ;;  %v5853_v35 = vld [vmem:[#allocation26 + $0x1b8] sm:$0xf0] }
 0x6b6   : > { %v3124_v29 = vadd.f32 %v3123_v61, %v2296_v47  ;;  %4227 = vmatpush.bf16.msrb.mxu1 %v5720_v52  ;;  %4251 = vmatpush.bf16.msrb.mxu3 %v5880_v57  ;;  %v6447_v57 = vld [vmem:[#allocation26 + $0x114] sm:$0xf]  ;;  %v5933_v7 = vld [vmem:[#allocation26 + $0x258] sm:$0xf0] }
 0x6b7   : > { %4215 = vmatpush.bf16.msrb.mxu0 %v5640_v62  ;;  %4239 = vmatpush.bf16.msrb.mxu2 %v5800_v43  ;;  %v3310_v10 = vmul.f32 %v3294_v60, %v7865_v21  ;;  %v3287_v21 = vmul.f32 0.5, %v3271_v4  ;;  %v6507_v43 = vld [vmem:[#allocation26 + $0x2f4] sm:$0xf]  ;;  %v5776_v15 = vor.u32 %v6447_v57, %v5773_v58  ;;  %v5845_v60 = vld [vmem:[#allocation26 + $0x1a8] sm:$0xf0] }
 0x6b8   : > { %v7897_v31 = vadd.f32 %v3137_v59, %v3124_v29  ;;  %v6016_v20 = vor.u32 %v6507_v43, %v6013_v36  ;;  %v5765_v4 = vld [vmem:[#allocation26 + $0x108] sm:$0xf0]  ;;  %v5848_v32 = vor.u32 %v6465_v18, %v5845_v60  ;;  %v6501_v43 = vld [vmem:[#allocation26 + $0x2c4] sm:$0xf]  ;;  %v6499_v60 = vld [vmem:[#allocation26 + $0x2b4] sm:$0xf] }
 0x6b9   : > { %v7905_v40 = vpack.c.bf16 %v3310_v10, %v3302_v25  ;;  %v3303_v29 = vmul.f32 %v3287_v21, %v7862_v2  ;;  %v5829_v57 = vld [vmem:[#allocation26 + $0x188] sm:$0xf0] }
 0x6ba   : > { %v3176_v26 = vmul.f32 %v7897_v31, %v7897_v31  ;;  %4228 = vmatpush.bf16.msrb.mxu1 %v5712_v13  ;;  %4252 = vmatpush.bf16.msrb.mxu3 %v5872_v46  ;;  %v6445_v46 = vld [vmem:[#allocation26 + $0x104] sm:$0xf]  ;;  %v5989_v36 = vld [vmem:[#allocation26 + $0x2c8] sm:$0xf0] }
 0x6bb   : > { %v6783_v34 = vpop.eup %6782  ;;  %4240 = vmatpush.bf16.msrb.mxu2 %v5792_v11  ;;  %4160 = vmatmul.bf16.vlgmr.msra.gmra.mxu0 %v7905_v40 }
 0x6bc   : > { %v3192_v37 = vmul.f32 %v3176_v26, %v7897_v31  ;;  %v3279_v24 = vadd.f32 1.0, %v6783_v34  ;;  %4264 = vmatpush.bf16.msra.mxu0 %v5952_v33  ;;  %v6485_v26 = vld [vmem:[#allocation26 + $0x244] sm:$0xf]  ;;  %v5768_v34 = vor.u32 %v6445_v46, %v5765_v4 }
 0x6bd   : > { %v3151_v38 = vpop.f32.mrf.mxu2  ;;  %v3165_v27 = vpop.f32.mrf.mxu3 }
 0x6be   : > { %v3152_v45 = vadd.f32 %v3151_v38, %v2297_v30  ;;  %v3125_v14 = vpop.f32.mrf.mxu0  ;;  %v3208_v52 = vmul.f32 0.044715, %v3192_v37  ;;  %v3295_v61 = vmul.f32 0.5, %v3279_v24  ;;  %v3139_v62 = vpop.f32.mrf.mxu1  ;;  %4229 = vmatpush.bf16.msrb.mxu1 %v5704_v19  ;;  %4253 = vmatpush.bf16.msrb.mxu3 %v5864_v17  ;;  %v6463_v37 = vld [vmem:[#allocation26 + $0x194] sm:$0xf]  ;;  %v5928_v24 = vor.u32 %v6485_v26, %v5925_v28 }
 0x6bf   : > { %v3126_v56 = vadd.f32 %v3125_v14, %v2296_v47  ;;  %v5856_v47 = vor.u32 %v6467_v50, %v5853_v35  ;;  %4241 = vmatpush.bf16.msrb.mxu2 %v5784_v49  ;;  %v5837_v38 = vld [vmem:[#allocation26 + $0x198] sm:$0xf0]  ;;  %v6483_v14 = vld [vmem:[#allocation26 + $0x234] sm:$0xf]  ;;  %v6477_v26 = vld [vmem:[#allocation26 + $0x204] sm:$0xf] }
 0x6c0   : > { %v7912_v59 = vadd.f32 %v3165_v27, %v3152_v45  ;;  %v3224_v8 = vadd.f32 %v3208_v52, %v7897_v31  ;;  %v3311_v48 = vmul.f32 %v3295_v61, %v7879_v51  ;;  %4265 = vmatpush.bf16.msra.mxu0 %v5944_v5  ;;  %v5936_v51 = vor.u32 %v6487_v9, %v5933_v7  ;;  %v6503_v45 = vld [vmem:[#allocation26 + $0x2d4] sm:$0xf]  ;;  %v5917_v49 = vld [vmem:[#allocation26 + $0x238] sm:$0xf0]  ;;  %v6481_v9 = vld [vmem:[#allocation26 + $0x224] sm:$0xf] }
 0x6c1   : > { %v7915_v53 = vadd.f32 %v3139_v62, %v3126_v56  ;;  %v5840_v50 = vor.u32 %v6463_v37, %v5837_v38  ;;  %v6461_v56 = vld [vmem:[#allocation26 + $0x184] sm:$0xf]  ;;  %v6000_v61 = vor.u32 %v6503_v45, %v5997_v39  ;;  %v5920_v5 = vor.u32 %v6483_v14, %v5917_v49  ;;  %v5909_v7 = vld [vmem:[#allocation26 + $0x228] sm:$0xf0] }
 0x6c2   : > { %v3177_v63 = vmul.f32 %v7912_v59, %v7912_v59  ;;  %v3240_v13 = vmul.f32 0.7978846, %v3224_v8  ;;  %v7924_v2 = vpack.c.bf16 %v3311_v48, %v3303_v29  ;;  %4254 = vmatpush.bf16.msrb.mxu3 %v5856_v47  ;;  %v5832_v47 = vor.u32 %v6461_v56, %v5829_v57  ;;  %v5893_v28 = vld [vmem:[#allocation26 + $0x208] sm:$0xf0]  ;;  %v6539_v56 = vld [vmem:[#allocation26 + $0x3f4] sm:$0xf] }
 0x6c3   : > { %v3184_v3 = vmul.f32 %v7915_v53, %v7915_v53  ;;  %4242 = vmatpush.bf16.msrb.mxu2 %v5776_v15  ;;  %v5992_v48 = vor.u32 %v6501_v43, %v5989_v36  ;;  %v5912_v18 = vor.u32 %v6481_v9, %v5909_v7  ;;  %v6069_v14 = vld [vmem:[#allocation26 + $0x368] sm:$0xf0]  ;;  %v6141_v57 = vld [vmem:[#allocation26 + $0x3f8] sm:$0xf0]  ;;  %v6537_v7 = vld [vmem:[#allocation26 + $0x3e4] sm:$0xf] }
 0x6c4   : > { %v3193_v11 = vmul.f32 %v3177_v63, %v7912_v59  ;;  %4174 = vmatmul.bf16.vlgmr.msra.gmra.mxu1 %v7924_v2  ;;  %6784 = vtanh.f32 %v3240_v13  ;;  %4266 = vmatpush.bf16.msra.mxu0 %v5936_v51  ;;  %v5981_v13 = vld [vmem:[#allocation26 + $0x2b8] sm:$0xf0]  ;;  %v6144_v36 = vor.u32 %v6539_v56, %v6141_v57 }
 0x6c5   : > { %v3200_v25 = vmul.f32 %v3184_v3, %v7915_v53  ;;  %v3153_v10 = vpop.f32.mrf.mxu2  ;;  %v3167_v41 = vpop.f32.mrf.mxu3  ;;  %4278 = vmatpush.bf16.msra.mxu1 %v6016_v20  ;;  %v6479_v3 = vld [vmem:[#allocation26 + $0x214] sm:$0xf]  ;;  %v5901_v20 = vld [vmem:[#allocation26 + $0x218] sm:$0xf0] }
 0x6c6   : > { %v3209_v33 = vmul.f32 0.044715, %v3193_v11  ;;  %v3154_v19 = vadd.f32 %v3153_v10, %v2297_v30  ;;  %4255 = vmatpush.bf16.msrb.mxu3 %v5848_v32  ;;  %v5984_v11 = vor.u32 %v6499_v60, %v5981_v13  ;;  %v5973_v10 = vld [vmem:[#allocation26 + $0x2a8] sm:$0xf0] }
 0x6c7   : > { %v3216_v27 = vmul.f32 0.044715, %v3200_v25  ;;  %4243 = vmatpush.bf16.msrb.mxu2 %v5768_v34  ;;  %v6497_v25 = vld [vmem:[#allocation26 + $0x2a4] sm:$0xf] }
 0x6c8   : > { %v3225_v17 = vadd.f32 %v3209_v33, %v7912_v59  ;;  %v7931_v21 = vadd.f32 %v3167_v41, %v3154_v19  ;;  %4267 = vmatpush.bf16.msra.mxu0 %v5928_v24  ;;  %v6523_v33 = vld [vmem:[#allocation26 + $0x374] sm:$0xf]  ;;  %v6077_v19 = vld [vmem:[#allocation26 + $0x378] sm:$0xf0]  ;;  %v5976_v37 = vor.u32 %v6497_v25, %v5973_v10  ;;  %v5896_v41 = vor.u32 %v6477_v26, %v5893_v28  ;;  %v6529_v26 = vld [vmem:[#allocation26 + $0x3a4] sm:$0xf] }
 0x6c9   : > { %v3232_v30 = vadd.f32 %v3216_v27, %v7915_v53  ;;  %4279 = vmatpush.bf16.msra.mxu1 %v6008_v44  ;;  %v6495_v44 = vld [vmem:[#allocation26 + $0x294] sm:$0xf]  ;;  %v6080_v24 = vor.u32 %v6523_v33, %v6077_v19  ;;  %v6101_v28 = vld [vmem:[#allocation26 + $0x3a8] sm:$0xf0] }
 0x6ca   : > { %v3241_v35 = vmul.f32 0.7978846, %v3225_v17  ;;  %v3185_v52 = vmul.f32 %v7931_v21, %v7931_v21  ;;  %v6785_v8 = vpop.eup %6784  ;;  %4256 = vmatpush.bf16.msrb.mxu3 %v5840_v50  ;;  %v5965_v17 = vld [vmem:[#allocation26 + $0x298] sm:$0xf0]  ;;  %v6021_v33 = vld [vmem:[#allocation26 + $0x308] sm:$0xf0]  ;;  %v6104_v19 = vor.u32 %v6529_v26, %v6101_v28 }
 0x6cb   : > { %v3248_v58 = vmul.f32 0.7978846, %v3232_v30  ;;  %4216 = vmatmul.bf16.vlgmr.msrb.gmra.mxu0 %v7844_v22  ;;  %v3272_v63 = vadd.f32 1.0, %v6785_v8  ;;  %v5904_v22 = vor.u32 %v6479_v3, %v5901_v20  ;;  %v6521_v30 = vld [vmem:[#allocation26 + $0x364] sm:$0xf]  ;;  %v5968_v50 = vor.u32 %v6495_v44, %v5965_v17 }
 0x6cc   : > { %v3201_v62 = vmul.f32 %v3185_v52, %v7931_v21  ;;  %4268 = vmatpush.bf16.msra.mxu0 %v5920_v5  ;;  %v6072_v52 = vor.u32 %v6521_v30, %v6069_v14  ;;  %v6533_v3 = vld [vmem:[#allocation26 + $0x3c4] sm:$0xf]  ;;  %v6117_v20 = vld [vmem:[#allocation26 + $0x3c8] sm:$0xf0] }
 0x6cd   : > { %6786 = vtanh.f32 %v3248_v58  ;;  %4280 = vmatpush.bf16.msra.mxu1 %v6000_v61  ;;  %v3288_v12 = vmul.f32 0.5, %v3272_v63  ;;  %v6519_v58 = vld [vmem:[#allocation26 + $0x354] sm:$0xf]  ;;  %v6061_v61 = vld [vmem:[#allocation26 + $0x358] sm:$0xf0] }
 0x6ce   : > { %6788 = vtanh.f32 %v3241_v35  ;;  %v3217_v29 = vmul.f32 0.044715, %v3201_v62  ;;  %4257 = vmatpush.bf16.msrb.mxu3 %v5832_v47  ;;  %v5957_v35 = vld [vmem:[#allocation26 + $0x288] sm:$0xf0]  ;;  %v6064_v9 = vor.u32 %v6519_v58, %v6061_v61  ;;  %v3450_v14 = vld [vmem:[%s8067_s27] sm:$0x3] }
 0x6cf   : > { %v3304_v38 = vmul.f32 %v3288_v12, %v7897_v31  ;;  %v6493_v31 = vld [vmem:[#allocation26 + $0x284] sm:$0xf]  ;;  %v6133_v47 = vld [vmem:[#allocation26 + $0x3e8] sm:$0xf0]  ;;  %v6531_v12 = vld [vmem:[#allocation26 + $0x3b4] sm:$0xf] }
 0x6d0   : > { %v3233_v15 = vadd.f32 %v3217_v29, %v7931_v21  ;;  %4269 = vmatpush.bf16.msra.mxu0 %v5912_v18  ;;  %v5960_v43 = vor.u32 %v6493_v31, %v5957_v35  ;;  %v6517_v29 = vld [vmem:[#allocation26 + $0x344] sm:$0xf]  ;;  %v6136_v63 = vor.u32 %v6537_v7, %v6133_v47  ;;  %v6045_v18 = vld [vmem:[#allocation26 + $0x338] sm:$0xf0] }
 0x6d1   : > { %4281 = vmatpush.bf16.msra.mxu1 %v5992_v48  ;;  %v6053_v48 = vld [vmem:[#allocation26 + $0x348] sm:$0xf0] }
 0x6d2   : > { %v3249_v46 = vmul.f32 0.7978846, %v3233_v15  ;;  %v6535_v15 = vld [vmem:[#allocation26 + $0x3d4] sm:$0xf] }
 0x6d3   : > { %v6787_v4 = vpop.eup %6786 }
 0x6d4   : > { %v6789_v51 = vpop.eup %6788  ;;  %v3280_v23 = vadd.f32 1.0, %v6787_v4  ;;  %6790 = vtanh.f32 %v3249_v46  ;;  %4230 = vmatmul.bf16.vlgmr.msrb.gmra.mxu1 %v7860_v1  ;;  %4270 = vmatpush.bf16.msra.mxu0 %v5904_v22  ;;  %v6513_v46 = vld [vmem:[#allocation26 + $0x324] sm:$0xf]  ;;  %v6037_v4 = vld [vmem:[#allocation26 + $0x328] sm:$0xf0] }
 0x6d5   : > { %v3273_v34 = vadd.f32 1.0, %v6789_v51  ;;  %4282 = vmatpush.bf16.msra.mxu1 %v5984_v11  ;;  %v6120_v11 = vor.u32 %v6533_v3, %v6117_v20  ;;  %v6040_v51 = vor.u32 %v6513_v46, %v6037_v4  ;;  %v6511_v22 = vld [vmem:[#allocation26 + $0x314] sm:$0xf]  ;;  %v3453_v46 = vperm.slane %v3450_v14, 1 }
 0x6d6   : > { %v3296_v32 = vmul.f32 0.5, %v3280_v23  ;;  %v6109_v23 = vld [vmem:[#allocation26 + $0x3b8] sm:$0xf0] }
 0x6d7   : > { %v3289_v1 = vmul.f32 0.5, %v3273_v34  ;;  %v6112_v25 = vor.u32 %v6531_v12, %v6109_v23  ;;  %v6527_v34 = vld [vmem:[#allocation26 + $0x394] sm:$0xf] }
 0x6d8   : > { %v3312_v27 = vmul.f32 %v3296_v32, %v7915_v53  ;;  %4271 = vmatpush.bf16.msra.mxu0 %v5896_v41  ;;  %v6509_v32 = vld [vmem:[#allocation26 + $0x304] sm:$0xf]  ;;  %v6085_v41 = vld [vmem:[#allocation26 + $0x388] sm:$0xf0] }
 0x6d9   : > { %4283 = vmatpush.bf16.msra.mxu1 %v5976_v37  ;;  %v3305_v62 = vmul.f32 %v3289_v1, %v7912_v59  ;;  %v6056_v59 = vor.u32 %v6517_v29, %v6053_v48  ;;  %v6093_v37 = vld [vmem:[#allocation26 + $0x398] sm:$0xf0] }
 0x6da   : > { %v6791_v45 = vpop.eup %6790  ;;  %v7942_v39 = vpack.c.bf16 %v3312_v27, %v3304_v38  ;;  %v6096_v38 = vor.u32 %v6527_v34, %v6093_v37  ;;  %v6525_v27 = vld [vmem:[#allocation26 + $0x384] sm:$0xf] }
 0x6db   : > { %v3281_v49 = vadd.f32 1.0, %v6791_v45  ;;  %4272 = vmatmul.bf16.vlgmr.msra.gmra.mxu0 %v7905_v40  ;;  %v6515_v40 = vld [vmem:[#allocation26 + $0x334] sm:$0xf]  ;;  %v6088_v44 = vor.u32 %v6525_v27, %v6085_v41 }
 0x6dc   : > { %4188 = vmatmul.bf16.vlgmr.msra.gmra.mxu2 %v7942_v39  ;;  %v6048_v13 = vor.u32 %v6515_v40, %v6045_v18 }
 0x6dd   : > { %v3297_v53 = vmul.f32 0.5, %v3281_v49  ;;  %4292 = vmatpush.bf16.msra.mxu2 %v6080_v24  ;;  %4284 = vmatpush.bf16.msra.mxu1 %v5968_v50  ;;  %v3452_v50 = vperm.slane %v3450_v14, 0 }
 0x6df   : > { %v3313_v5 = vmul.f32 %v3297_v53, %v7931_v21  ;;  %v6125_v21 = vld [vmem:[#allocation26 + $0x3d8] sm:$0xf0] }
 0x6e0   : > { %v6128_v60 = vor.u32 %v6535_v15, %v6125_v21 }
 0x6e1   : > { %4293 = vmatpush.bf16.msra.mxu2 %v6072_v52  ;;  %v3321_v8 = vpack.c.bf16 %v3313_v5, %v3305_v62  ;;  %4285 = vmatpush.bf16.msra.mxu1 %v5960_v43 }
 0x6e3   : > { %4202 = vmatmul.bf16.vlgmr.msra.gmra.mxu3 %v3321_v8 }
 0x6e4   : > { %4306 = vmatpush.bf16.msra.mxu3 %v6144_v36  ;;  %4286 = vmatmul.bf16.vlgmr.msra.gmra.mxu1 %v7924_v2  ;;  %v6029_v2 = vld [vmem:[#allocation26 + $0x318] sm:$0xf0] }
 0x6e5   : > { %4294 = vmatpush.bf16.msra.mxu2 %v6064_v9  ;;  %v6032_v10 = vor.u32 %v6511_v22, %v6029_v2 }
 0x6e8   : > { %4307 = vmatpush.bf16.msra.mxu3 %v6136_v63 }
 0x6e9   : > { %4295 = vmatpush.bf16.msra.mxu2 %v6056_v59 }
 0x6ec   : > { %4308 = vmatpush.bf16.msra.mxu3 %v6128_v60  ;;  %4244 = vmatmul.bf16.vlgmr.msrb.gmra.mxu2 %v7881_v16  ;;  %v6024_v16 = vor.u32 %v6509_v32, %v6021_v33 }
 0x6ed   : > { %4296 = vmatpush.bf16.msra.mxu2 %v6048_v13 }
 0x6f0   : > { %4309 = vmatpush.bf16.msra.mxu3 %v6120_v11 }
 0x6f1   : > { %4297 = vmatpush.bf16.msra.mxu2 %v6040_v51 }
 0x6f3   : > { %4258 = vmatmul.bf16.vlgmr.msrb.gmra.mxu3 %v7890_v0 }
 0x6f4   : > { %4310 = vmatpush.bf16.msra.mxu3 %v6112_v25 }
 0x6f5   : > { %4298 = vmatpush.bf16.msra.mxu2 %v6032_v10 }
 0x6f8   : > { %4311 = vmatpush.bf16.msra.mxu3 %v6104_v19 }
 0x6f9   : > { %4299 = vmatpush.bf16.msra.mxu2 %v6024_v16 }
 0x6fc   : > { %4312 = vmatpush.bf16.msra.mxu3 %v6096_v38  ;;  %4300 = vmatmul.bf16.vlgmr.msra.gmra.mxu2 %v7942_v39 }
 0x700   : > { %4313 = vmatpush.bf16.msra.mxu3 %v6088_v44 }
 0x703   : > { %4314 = vmatmul.bf16.vlgmr.msra.gmra.mxu3 %v3321_v8 }
 0x717   : > { %v4105_v17 = vpop.f32.mrf.mxu0 }
 0x718   : > { %v4106_v53 = vadd.f32 %v4105_v17, %v3452_v50 }
 0x71e   : > { %v4119_v24 = vpop.f32.mrf.mxu1 }
 0x71f   : > { %v4107_v0 = vpop.f32.mrf.mxu0  ;;  %v4120_v52 = vadd.f32 %v4119_v24, %v4106_v53 }
 0x720   : > { %v4108_v62 = vadd.f32 %v4107_v0, %v3452_v50 }
 0x726   : > { %v4121_v30 = vpop.f32.mrf.mxu1 }
 0x727   : > { %v4122_v36 = vadd.f32 %v4121_v30, %v4108_v62 }
 0x72d   : > { %v4133_v45 = vpop.f32.mrf.mxu2 }
 0x72e   : > { %v4134_v39 = vadd.f32 %v4133_v45, %v4120_v52 }
 0x734   : > { %v4147_v1 = vpop.f32.mrf.mxu3 }
 0x735   : > { %v4135_v31 = vpop.f32.mrf.mxu2  ;;  %v4148_v58 = vadd.f32 %v4147_v1, %v4134_v39 }
 0x736   : > { %v4136_v9 = vadd.f32 %v4135_v31, %v4122_v36 }
 0x738   : > { %v4161_v49 = vpop.f32.mrf.mxu0 }
 0x739   : > { %v4162_v5 = vadd.f32 %v4161_v49, %v4148_v58 }
 0x73c   : > { %v4149_v56 = vpop.f32.mrf.mxu3 }
 0x73d   : > { %v4150_v29 = vadd.f32 %v4149_v56, %v4136_v9 }
 0x740   : > { %v4163_v57 = vpop.f32.mrf.mxu0 }
 0x741   : > { %v4175_v35 = vpop.f32.mrf.mxu1  ;;  %v4164_v15 = vadd.f32 %v4163_v57, %v4150_v29 }
 0x742   : > { %v4176_v8 = vadd.f32 %v4175_v35, %v4162_v5 }
 0x748   : > { %v4217_v59 = vpop.f32.mrf.mxu0 }
 0x749   : > { %v4177_v43 = vpop.f32.mrf.mxu1  ;;  %v4218_v51 = vadd.f32 %v4217_v59, %v3453_v46 }
 0x74a   : > { %v4178_v40 = vadd.f32 %v4177_v43, %v4164_v15 }
 0x750   : > { %v4219_v11 = vpop.f32.mrf.mxu0 }
 0x751   : > { %v4231_v18 = vpop.f32.mrf.mxu1  ;;  %v4220_v26 = vadd.f32 %v4219_v11, %v3453_v46 }
 0x752   : > { %v4232_v23 = vadd.f32 %v4231_v18, %v4218_v51 }
 0x758   : > { %v4273_v10 = vpop.f32.mrf.mxu0 }
 0x759   : > { %v4233_v12 = vpop.f32.mrf.mxu1 }
 0x75a   : > { %v4234_v32 = vadd.f32 %v4233_v12, %v4220_v26 }
 0x75f   : > { %v4189_v61 = vpop.f32.mrf.mxu2 }
 0x760   : > { %v4190_v7 = vadd.f32 %v4189_v61, %v4176_v8  ;;  %v4275_v27 = vpop.f32.mrf.mxu0 }
 0x761   : > { %v4287_v19 = vpop.f32.mrf.mxu1 }
 0x766   : > { %v4203_v47 = vpop.f32.mrf.mxu3 }
 0x767   : > { %v4204_v48 = vadd.f32 %v4203_v47, %v4190_v7  ;;  %v4191_v63 = vpop.f32.mrf.mxu2 }
 0x768   : > { %v4192_v60 = vadd.f32 %v4191_v63, %v4178_v40 }
 0x769   : > { %v4320_v21 = vadd.f32 %v4204_v48, %v7709_v54  ;;  %v4289_v0 = vpop.f32.mrf.mxu1 }
 0x76b   : > { %4324 = vst [vmem:[%s7958_s22] sm:$0xff] %v4320_v21 }
 0x76e   : > { %v4205_v13 = vpop.f32.mrf.mxu3 }
 0x76f   : > { %v4206_v3 = vadd.f32 %v4205_v13, %v4192_v60  ;;  %v4245_v20 = vpop.f32.mrf.mxu2 }
 0x770   : > { %v4246_v2 = vadd.f32 %v4245_v20, %v4232_v23 }
 0x771   : > { %v4322_v4 = vadd.f32 %v4206_v3, %v7717_v6 }
 0x773   : > { %4326 = vst [vmem:[%s7958_s22 + $0x10] sm:$0xff] %v4322_v4 }
 0x776   : > { %v4259_v54 = vpop.f32.mrf.mxu3 }
 0x777   : > { %v4247_v22 = vpop.f32.mrf.mxu2  ;;  %v4260_v25 = vadd.f32 %v4259_v54, %v4246_v2 }
 0x778   : > { %v4248_v6 = vadd.f32 %v4247_v22, %v4234_v32 }
 0x779   : > { %v4274_v33 = vadd.f32 %v4273_v10, %v4260_v25 }
 0x77b   : > { %v4288_v37 = vadd.f32 %v4287_v19, %v4274_v33 }
 0x77e   : > { %v4261_v28 = vpop.f32.mrf.mxu3 }
 0x77f   : > { %v4301_v16 = vpop.f32.mrf.mxu2  ;;  %v4262_v34 = vadd.f32 %v4261_v28, %v4248_v6 }
 0x780   : > { %v4302_v38 = vadd.f32 %v4301_v16, %v4288_v37 }
 0x781   : > { %v4276_v44 = vadd.f32 %v4275_v27, %v4262_v34 }
 0x783   : > { %v4290_v30 = vadd.f32 %v4289_v0, %v4276_v44 }
 0x786   : > { %v4315_v41 = vpop.f32.mrf.mxu3 }
 0x787   : > { %v4316_v17 = vadd.f32 %v4315_v41, %v4302_v38  ;;  %v4303_v45 = vpop.f32.mrf.mxu2 }
 0x788   : > { %v4304_v14 = vadd.f32 %v4303_v45, %v4290_v30 }
 0x789   : > { %v4321_v24 = vadd.f32 %v4316_v17, %v7711_v55 }
 0x78b   : > { %4325 = vst [vmem:[%s7958_s22 + $0x8] sm:$0xff] %v4321_v24 }
 0x78e   : > { %v4317_v1 = vpop.f32.mrf.mxu3 }
 0x78f   : > { %v4318_v49 = vadd.f32 %v4317_v1, %v4304_v14 }
 0x791   : > { %v4323_v50 = vadd.f32 %v4318_v49, %v7719_v42 }
 0x793   : > { %4327 = vst [vmem:[%s7958_s22 + $0x18] sm:$0xff] %v4323_v50 }
 0x794   : > { %7209 = shalt.err (!%p7206_p13)
}
 0x795   : > { %s7309_s10 = smov 256   ;;  %s7310_s22 = smov 16  }
 0x796   : > { %6592 = dma.vmem_to_hbm [thread:$0]  (%p7552_p2), %s4345_s30, 512, %s4347_s21, %s4329_s3, %s7309_s10, %s7309_s10, %s7310_s22  }
 0x797 PF: > { %s4361_s19 = sand.u32 1, %s7268_s24   ;;  %p6636_p0 = pnand %p4564_p4, %p7559_p6 }
 0x798   : > { %s4362_s20 = scalar_lea.sflag [#allocation8], %s4361_s19 }
 0x799   : > { %p6637_p5 = pneg %p6636_p0 }
 0x79b   : > { %7263 = dma.done.wait (%p6637_p5), %s4362_s20, 512  }
 0x79c   : > { %7265 = vsyncadd (%p6637_p5), %s4362_s20, 4294966784  ;;  %s39_s29 = sadd.s32 1, %s7288_s29   ;;  %s8070_s24 = smov %s7272_s25 }
 0x79d   : > { %p36_p7 = scmp.ge.s32.totalorder %s39_s29, 4   ;;  %s8071_s25 = smov %s7276_s26 }
 0x79e   : > { %s8072_s26 = smov %s7557_s0  ;;  %s8073_s27 = smov %s7284_s28 }
 0x79f   : > { %s8074_s28 = smov %s8076_s9  ;;  %38 = sbr.rel (!%p36_p7) target bundleno = 27 (0x1b), region = 187 }
 0x7a4   :  { %4368 = vsyncpa [#allocation7], 1 }
 0x7a5   :  { %4370 = vsyncpa [#allocation7 + $0x1], 1 }
 0x7a6   :  { %4371 = vsyncpa [#allocation10], 1 }
 0x7a7   :  { %4372 = vsyncpa [#allocation13], 1 }
 0x7a8   :  { %4373 = vsyncpa [#allocation16], 1 }
 0x7a9   :  { %4374 = vsyncpa [#allocation19], 1 }
 0x7aa   :  { %4375 = vsyncpa [#allocation22], 1 }
 0x7ab   :  { %4376 = vsyncpa [#allocation25], 1 }
 0x7ac   :  { %4377 = vsyncpa [#allocation8], 1 }
 0x7ad   :  { %4379 = vsyncpa [#allocation8 + $0x1], 1 }

</bundles_post_ra>
